<compile_context>
chip_gen: v5e
topology: v5e:2x2
jax: 0.10.0
libtpu: 0.0.40
codegen_flags: <defaults>
</compile_context>

<pallas_src>
import math

import jax
import jax.numpy as jnp
import numpy as np
from jax.experimental import pallas as pl
from jax.experimental.pallas import tpu as pltpu

# Small, module-consistent shapes (original is (3, 512, 512)).
IMG_SHAPE = (3, 16, 16)                   # C, H, W
IN_DIM = int(np.prod(IMG_SHAPE))          # 768
HIDDEN = (512, 256, 128, 64, 1)           # Linear stack output dims
NEG_SLOPE = 0.2
TILE_M_MAX = 512                          # large-batch tile (multiple of 128)
SINGLE_TILE_MAX_B = 128                   # below this, use one batch tile


def _round_up(x, m):
    return ((x + m - 1) // m) * m


def _leaky_relu(x):
    # max(x, 0.2*x) == LeakyReLU(0.2) for 0 < slope < 1 (single VALU op).
    return jnp.maximum(x, NEG_SLOPE * x)


def disc_kernel(x_ref, w1_ref, b1_ref, w2_ref, b2_ref, w3_ref, b3_ref,
                w4_ref, b4_ref, w5t_ref, b5_ref, out_ref):
    # Whole Linear chain in one invocation: bf16 weights total ~1.1 MiB, so
    # full-K blocks fit trivially even under v7x's 64 MiB VMEM.
    cdt = w1_ref.dtype                                   # bfloat16
    h = jnp.dot(x_ref[...].astype(cdt), w1_ref[...],
                preferred_element_type=jnp.float32) + b1_ref[...]
    h = _leaky_relu(h)
    h = _leaky_relu(jnp.dot(h.astype(cdt), w2_ref[...],
                            preferred_element_type=jnp.float32) + b2_ref[...])
    h = _leaky_relu(jnp.dot(h.astype(cdt), w3_ref[...],
                            preferred_element_type=jnp.float32) + b3_ref[...])
    h = _leaky_relu(jnp.dot(h.astype(cdt), w4_ref[...],
                            preferred_element_type=jnp.float32) + b4_ref[...])
    # Final 64 -> 1 Linear as a VPU reduction (skip an N=1 MXU pass).
    w5 = w5t_ref[...].astype(jnp.float32)                # (1, 64)
    out = jnp.sum(h * w5, axis=-1, keepdims=True) + b5_ref[...]   # (tile_m, 1)
    # Lane-major writeback: tiny XLU transpose -> (1, tile_m) row, so the
    # output DMA moves only 4 bytes per batch element.
    out_ref[...] = jnp.transpose(out).astype(out_ref.dtype)


def _choose_tiling(B):
    """Pick (tile_m, b_pad) per the perf review.

    Small B: one 8-row-aligned tile.  Large B: 128-aligned tiles up to 512
    rows, sized so the grid has >= 2 steps (v7x has 2 TensorCores and the
    batch axis is "parallel").
    """
    if B <= SINGLE_TILE_MAX_B:
        tile_m = max(8, _round_up(B, 8))
        return tile_m, tile_m
    b128 = _round_up(B, 128)
    tile_m = max(128, min(TILE_M_MAX, (b128 // 2) // 128 * 128))
    b_pad = _round_up(B, tile_m)
    return tile_m, b_pad


def _pallas_forward(x, w1b, b1, w2b, b2, w3b, b3, w4b, b4, w5t, b5,
                    tile_m, b_pad, single_buffer_consts):
    if single_buffer_consts:
        # Constant index_map -> fetched once; single-buffer to save VMEM and
        # per-step revisit bookkeeping.
        const_spec = lambda a: pl.BlockSpec(a.shape, lambda m: (0, 0),
                                            pipeline_mode=pl.Buffered(1))
    else:
        const_spec = lambda a: pl.BlockSpec(a.shape, lambda m: (0, 0))

    grid_spec = pltpu.PrefetchScalarGridSpec(
        num_scalar_prefetch=0,
        grid=(b_pad // tile_m,),
        in_specs=[
            pl.BlockSpec((tile_m, IN_DIM), lambda m: (m, 0)),   # x batch tile
            const_spec(w1b), const_spec(b1),
            const_spec(w2b), const_spec(b2),
            const_spec(w3b), const_spec(b3),
            const_spec(w4b), const_spec(b4),
            const_spec(w5t), const_spec(b5),
        ],
        # Lane-major output row: block (1, tile_m) of a (1, b_pad) array.
        out_specs=pl.BlockSpec((1, tile_m), lambda m: (0, m)),
    )

    layer_flops = (IN_DIM * HIDDEN[0] + HIDDEN[0] * HIDDEN[1]
                   + HIDDEN[1] * HIDDEN[2] + HIDDEN[2] * HIDDEN[3]
                   + HIDDEN[3] * HIDDEN[4])
    bytes_accessed = (b_pad * IN_DIM * 4                # x (f32)
                      + 2 * layer_flops                 # bf16 weights
                      + 4 * sum(HIDDEN)                 # biases (f32)
                      + b_pad * 4)                      # output row (f32)

    return pl.pallas_call(
        disc_kernel,
        out_shape=jax.ShapeDtypeStruct((1, b_pad), jnp.float32),
        grid_spec=grid_spec,
        compiler_params=pltpu.CompilerParams(
            dimension_semantics=("parallel",)),
        cost_estimate=pl.CostEstimate(
            flops=2 * b_pad * layer_flops,
            transcendentals=0,
            bytes_accessed=bytes_accessed),
    )(x, w1b, b1, w2b, b2, w3b, b3, w4b, b4, w5t, b5)


def init_params(key):
    """Deterministic PyTorch-style (uniform +-1/sqrt(fan_in)) init, f32."""
    dims = (IN_DIM,) + HIDDEN
    params = []
    for i in range(len(HIDDEN)):
        fan_in, fan_out = dims[i], dims[i + 1]
        key, kw, kb = jax.random.split(key, 3)
        bound = 1.0 / math.sqrt(fan_in)
        w = jax.random.uniform(kw, (fan_in, fan_out), jnp.float32, -bound, bound)
        b = jax.random.uniform(kb, (1, fan_out), jnp.float32, -bound, bound)
        params.append((w, b))
    return params


def discriminator_forward(img, params):
    """img: (B, C, H, W) float32 -> (B, 1) float32."""
    B = img.shape[0]
    x = jnp.reshape(img, (B, -1))                      # (B, IN_DIM), NCHW flatten
    assert x.shape[1] == IN_DIM

    tile_m, b_pad = _choose_tiling(B)
    if b_pad != B:
        x = jnp.pad(x, ((0, b_pad - B), (0, 0)))

    (w1, b1), (w2, b2), (w3, b3), (w4, b4), (w5, b5) = params

    # bf16 weights: halve HBM->VMEM weight traffic.
    bf = lambda w: w.astype(jnp.bfloat16)
    w1b, w2b, w3b, w4b = bf(w1), bf(w2), bf(w3), bf(w4)
    w5t = bf(w5).T                                     # (1, 64) for VPU reduction

    args = (x, w1b, b1, w2b, b2, w3b, b3, w4b, b4, w5t, b5)
    try:
        out = _pallas_forward(*args, tile_m=tile_m, b_pad=b_pad,
                              single_buffer_consts=True)
    except Exception:
        # Fallback if this jax build rejects Buffered(1) single-buffering.
        out = _pallas_forward(*args, tile_m=tile_m, b_pad=b_pad,
                              single_buffer_consts=False)

    return out[0, :B, None]                            # (B, 1)


def reference_forward(img, params):
    """Pure f32 reference matching the PyTorch module exactly."""
    x = jnp.reshape(img, (img.shape[0], -1))
    for i, (w, b) in enumerate(params):
        x = x @ w + b
        if i < len(params) - 1:
            x = jnp.where(x > 0, x, NEG_SLOPE * x)
    return x


if __name__ == "__main__":
    key = jax.random.PRNGKey(0)
    k_img, k_par = jax.random.split(key)

    B = 2
    img = jax.random.normal(k_img, (B,) + IMG_SHAPE, jnp.float32)
    params = init_params(k_par)

    out = discriminator_forward(img, params)
    out = jax.block_until_ready(out)

    ref = reference_forward(img, params)
    # bf16 weights/activations (f32 accumulation) -> loosened tolerance vs f32.
    np.testing.assert_allclose(np.asarray(out), np.asarray(ref),
                               rtol=3e-2, atol=3e-2)
    assert out.shape == (B, 1)
    print("KERNEL_OK")
</pallas_src>

<mosaic_0001>
module attributes {stable_mosaic.version = 11 : i64} {
  func.func @disc_kernel(%arg0: i32, %arg1: memref<8x768xf32, #tpu.memory_space<vmem>>, %arg2: memref<768x512xbf16, #tpu.memory_space<vmem>>, %arg3: memref<1x512xf32, #tpu.memory_space<vmem>>, %arg4: memref<512x256xbf16, #tpu.memory_space<vmem>>, %arg5: memref<1x256xf32, #tpu.memory_space<vmem>>, %arg6: memref<256x128xbf16, #tpu.memory_space<vmem>>, %arg7: memref<1x128xf32, #tpu.memory_space<vmem>>, %arg8: memref<128x64xbf16, #tpu.memory_space<vmem>>, %arg9: memref<1x64xf32, #tpu.memory_space<vmem>>, %arg10: memref<1x64xbf16, #tpu.memory_space<vmem>>, %arg11: memref<1x1xf32, #tpu.memory_space<vmem>>, %arg12: memref<1x8xf32, #tpu.memory_space<vmem>>) attributes {dimension_semantics = [#tpu.dimension_semantics<parallel>], iteration_bounds = array<i64: 1>, scalar_prefetch = 0 : i64, scratch_operands = 0 : i64, tpu.core_type = #tpu.core_type<tc>, window_params = [{transform_indices = @transform_0, window_bounds = array<i64: 8, 768>}, {pipeline_mode = #tpu.pipeline_mode<synchronous>, transform_indices = @transform_1, window_bounds = array<i64: 768, 512>}, {pipeline_mode = #tpu.pipeline_mode<synchronous>, transform_indices = @transform_2, window_bounds = array<i64: 1, 512>}, {pipeline_mode = #tpu.pipeline_mode<synchronous>, transform_indices = @transform_3, window_bounds = array<i64: 512, 256>}, {pipeline_mode = #tpu.pipeline_mode<synchronous>, transform_indices = @transform_4, window_bounds = array<i64: 1, 256>}, {pipeline_mode = #tpu.pipeline_mode<synchronous>, transform_indices = @transform_5, window_bounds = array<i64: 256, 128>}, {pipeline_mode = #tpu.pipeline_mode<synchronous>, transform_indices = @transform_6, window_bounds = array<i64: 1, 128>}, {pipeline_mode = #tpu.pipeline_mode<synchronous>, transform_indices = @transform_7, window_bounds = array<i64: 128, 64>}, {pipeline_mode = #tpu.pipeline_mode<synchronous>, transform_indices = @transform_8, window_bounds = array<i64: 1, 64>}, {pipeline_mode = #tpu.pipeline_mode<synchronous>, transform_indices = @transform_9, window_bounds = array<i64: 1, 64>}, {pipeline_mode = #tpu.pipeline_mode<synchronous>, transform_indices = @transform_10, window_bounds = array<i64: 1, 1>}, {transform_indices = @transform_11, window_bounds = array<i64: 1, 8>}]} {
    %c0 = arith.constant 0 : index
    %c0_0 = arith.constant 0 : index
    %0 = vector.load %arg1[%c0, %c0_0] : memref<8x768xf32, #tpu.memory_space<vmem>>, vector<8x768xf32>
    %1 = arith.truncf %0 : vector<8x768xf32> to vector<8x768xbf16>
    %c0_1 = arith.constant 0 : index
    %c0_2 = arith.constant 0 : index
    %2 = vector.load %arg2[%c0_1, %c0_2] : memref<768x512xbf16, #tpu.memory_space<vmem>>, vector<768x512xbf16>
    %cst = arith.constant dense<0.000000e+00> : vector<8x512xf32>
    %3 = tpu.matmul %1, %2, %cst {dimension_numbers = #tpu.dot_dimension_numbers<[1], [0], [0], [1], [0, 0, 1, 1], [], []>} : vector<8x768xbf16>, vector<768x512xbf16>, vector<8x512xf32> -> vector<8x512xf32>
    %c0_3 = arith.constant 0 : index
    %c0_4 = arith.constant 0 : index
    %4 = vector.load %arg3[%c0_3, %c0_4] : memref<1x512xf32, #tpu.memory_space<vmem>>, vector<1x512xf32>
    %5 = vector.broadcast %4 : vector<1x512xf32> to vector<8x512xf32>
    %6 = arith.addf %3, %5 : vector<8x512xf32>
    %cst_5 = arith.constant 2.000000e-01 : f32
    %7 = vector.broadcast %cst_5 : f32 to vector<8x512xf32>
    %8 = arith.mulf %7, %6 : vector<8x512xf32>
    %9 = arith.maximumf %6, %8 : vector<8x512xf32>
    %10 = arith.truncf %9 : vector<8x512xf32> to vector<8x512xbf16>
    %c0_6 = arith.constant 0 : index
    %c0_7 = arith.constant 0 : index
    %11 = vector.load %arg4[%c0_6, %c0_7] : memref<512x256xbf16, #tpu.memory_space<vmem>>, vector<512x256xbf16>
    %cst_8 = arith.constant dense<0.000000e+00> : vector<8x256xf32>
    %12 = tpu.matmul %10, %11, %cst_8 {dimension_numbers = #tpu.dot_dimension_numbers<[1], [0], [0], [1], [0, 0, 1, 1], [], []>} : vector<8x512xbf16>, vector<512x256xbf16>, vector<8x256xf32> -> vector<8x256xf32>
    %c0_9 = arith.constant 0 : index
    %c0_10 = arith.constant 0 : index
    %13 = vector.load %arg5[%c0_9, %c0_10] : memref<1x256xf32, #tpu.memory_space<vmem>>, vector<1x256xf32>
    %14 = vector.broadcast %13 : vector<1x256xf32> to vector<8x256xf32>
    %15 = arith.addf %12, %14 : vector<8x256xf32>
    %cst_11 = arith.constant 2.000000e-01 : f32
    %16 = vector.broadcast %cst_11 : f32 to vector<8x256xf32>
    %17 = arith.mulf %16, %15 : vector<8x256xf32>
    %18 = arith.maximumf %15, %17 : vector<8x256xf32>
    %19 = arith.truncf %18 : vector<8x256xf32> to vector<8x256xbf16>
    %c0_12 = arith.constant 0 : index
    %c0_13 = arith.constant 0 : index
    %20 = vector.load %arg6[%c0_12, %c0_13] : memref<256x128xbf16, #tpu.memory_space<vmem>>, vector<256x128xbf16>
    %cst_14 = arith.constant dense<0.000000e+00> : vector<8x128xf32>
    %21 = tpu.matmul %19, %20, %cst_14 {dimension_numbers = #tpu.dot_dimension_numbers<[1], [0], [0], [1], [0, 0, 1, 1], [], []>} : vector<8x256xbf16>, vector<256x128xbf16>, vector<8x128xf32> -> vector<8x128xf32>
    %c0_15 = arith.constant 0 : index
    %c0_16 = arith.constant 0 : index
    %22 = vector.load %arg7[%c0_15, %c0_16] : memref<1x128xf32, #tpu.memory_space<vmem>>, vector<1x128xf32>
    %23 = vector.broadcast %22 : vector<1x128xf32> to vector<8x128xf32>
    %24 = arith.addf %21, %23 : vector<8x128xf32>
    %cst_17 = arith.constant 2.000000e-01 : f32
    %25 = vector.broadcast %cst_17 : f32 to vector<8x128xf32>
    %26 = arith.mulf %25, %24 : vector<8x128xf32>
    %27 = arith.maximumf %24, %26 : vector<8x128xf32>
    %28 = arith.truncf %27 : vector<8x128xf32> to vector<8x128xbf16>
    %c0_18 = arith.constant 0 : index
    %c0_19 = arith.constant 0 : index
    %29 = vector.load %arg8[%c0_18, %c0_19] : memref<128x64xbf16, #tpu.memory_space<vmem>>, vector<128x64xbf16>
    %cst_20 = arith.constant dense<0.000000e+00> : vector<8x64xf32>
    %30 = tpu.matmul %28, %29, %cst_20 {dimension_numbers = #tpu.dot_dimension_numbers<[1], [0], [0], [1], [0, 0, 1, 1], [], []>} : vector<8x128xbf16>, vector<128x64xbf16>, vector<8x64xf32> -> vector<8x64xf32>
    %c0_21 = arith.constant 0 : index
    %c0_22 = arith.constant 0 : index
    %31 = vector.load %arg9[%c0_21, %c0_22] : memref<1x64xf32, #tpu.memory_space<vmem>>, vector<1x64xf32>
    %32 = vector.broadcast %31 : vector<1x64xf32> to vector<8x64xf32>
    %33 = arith.addf %30, %32 : vector<8x64xf32>
    %cst_23 = arith.constant 2.000000e-01 : f32
    %34 = vector.broadcast %cst_23 : f32 to vector<8x64xf32>
    %35 = arith.mulf %34, %33 : vector<8x64xf32>
    %36 = arith.maximumf %33, %35 : vector<8x64xf32>
    %c0_24 = arith.constant 0 : index
    %c0_25 = arith.constant 0 : index
    %37 = vector.load %arg10[%c0_24, %c0_25] : memref<1x64xbf16, #tpu.memory_space<vmem>>, vector<1x64xbf16>
    %38 = arith.extf %37 : vector<1x64xbf16> to vector<1x64xf32>
    %39 = vector.broadcast %38 : vector<1x64xf32> to vector<8x64xf32>
    %40 = arith.mulf %36, %39 : vector<8x64xf32>
    %cst_26 = arith.constant dense<0.000000e+00> : vector<8xf32>
    %41 = vector.multi_reduction <add>, %40, %cst_26 [1] : vector<8x64xf32> to vector<8xf32>
    %42 = vector.shape_cast %41 : vector<8xf32> to vector<8x1xf32>
    %c0_27 = arith.constant 0 : index
    %c0_28 = arith.constant 0 : index
    %43 = vector.load %arg11[%c0_27, %c0_28] : memref<1x1xf32, #tpu.memory_space<vmem>>, vector<1x1xf32>
    %44 = vector.broadcast %43 : vector<1x1xf32> to vector<8x1xf32>
    %45 = arith.addf %42, %44 : vector<8x1xf32>
    %46 = tpu.transpose %45, [1, 0] : vector<8x1xf32> -> vector<1x8xf32>
    %c0_29 = arith.constant 0 : index
    %c0_30 = arith.constant 0 : index
    %47 = vector.load %arg12[%c0_29, %c0_30] : memref<1x8xf32, #tpu.memory_space<vmem>>, vector<1x8xf32>
    tpu.vector_store %arg12[%c0_29, %c0_30], %46 {strides = array<i32>} : memref<1x8xf32, #tpu.memory_space<vmem>>, vector<1x8xf32>,
    return
  }
  func.func @transform_0(%arg0: i32) -> (i32, i32) {
    %c0_i32 = arith.constant 0 : i32
    %c0_i32_0 = arith.constant 0 : i32
    return %arg0, %c0_i32 : i32, i32
  }
  func.func @transform_1(%arg0: i32) -> (i32, i32) {
    %c0_i32 = arith.constant 0 : i32
    %c0_i32_0 = arith.constant 0 : i32
    %c0_i32_1 = arith.constant 0 : i32
    return %c0_i32, %c0_i32_0 : i32, i32
  }
  func.func @transform_2(%arg0: i32) -> (i32, i32) {
    %c0_i32 = arith.constant 0 : i32
    %c0_i32_0 = arith.constant 0 : i32
    %c0_i32_1 = arith.constant 0 : i32
    return %c0_i32, %c0_i32_0 : i32, i32
  }
  func.func @transform_3(%arg0: i32) -> (i32, i32) {
    %c0_i32 = arith.constant 0 : i32
    %c0_i32_0 = arith.constant 0 : i32
    %c0_i32_1 = arith.constant 0 : i32
    return %c0_i32, %c0_i32_0 : i32, i32
  }
  func.func @transform_4(%arg0: i32) -> (i32, i32) {
    %c0_i32 = arith.constant 0 : i32
    %c0_i32_0 = arith.constant 0 : i32
    %c0_i32_1 = arith.constant 0 : i32
    return %c0_i32, %c0_i32_0 : i32, i32
  }
  func.func @transform_5(%arg0: i32) -> (i32, i32) {
    %c0_i32 = arith.constant 0 : i32
    %c0_i32_0 = arith.constant 0 : i32
    %c0_i32_1 = arith.constant 0 : i32
    return %c0_i32, %c0_i32_0 : i32, i32
  }
  func.func @transform_6(%arg0: i32) -> (i32, i32) {
    %c0_i32 = arith.constant 0 : i32
    %c0_i32_0 = arith.constant 0 : i32
    %c0_i32_1 = arith.constant 0 : i32
    return %c0_i32, %c0_i32_0 : i32, i32
  }
  func.func @transform_7(%arg0: i32) -> (i32, i32) {
    %c0_i32 = arith.constant 0 : i32
    %c0_i32_0 = arith.constant 0 : i32
    %c0_i32_1 = arith.constant 0 : i32
    return %c0_i32, %c0_i32_0 : i32, i32
  }
  func.func @transform_8(%arg0: i32) -> (i32, i32) {
    %c0_i32 = arith.constant 0 : i32
    %c0_i32_0 = arith.constant 0 : i32
    %c0_i32_1 = arith.constant 0 : i32
    return %c0_i32, %c0_i32_0 : i32, i32
  }
  func.func @transform_9(%arg0: i32) -> (i32, i32) {
    %c0_i32 = arith.constant 0 : i32
    %c0_i32_0 = arith.constant 0 : i32
    %c0_i32_1 = arith.constant 0 : i32
    return %c0_i32, %c0_i32_0 : i32, i32
  }
  func.func @transform_10(%arg0: i32) -> (i32, i32) {
    %c0_i32 = arith.constant 0 : i32
    %c0_i32_0 = arith.constant 0 : i32
    %c0_i32_1 = arith.constant 0 : i32
    return %c0_i32, %c0_i32_0 : i32, i32
  }
  func.func @transform_11(%arg0: i32) -> (i32, i32) {
    %c0_i32 = arith.constant 0 : i32
    %c0_i32_0 = arith.constant 0 : i32
    return %c0_i32, %arg0 : i32, i32
  }
}

module attributes {stable_mosaic.version = 11 : i64} {
  func.func @disc_kernel(%arg0: i32, %arg1: memref<8x768xf32, #tpu.memory_space<vmem>>, %arg2: memref<768x512xbf16, #tpu.memory_space<vmem>>, %arg3: memref<1x512xf32, #tpu.memory_space<vmem>>, %arg4: memref<512x256xbf16, #tpu.memory_space<vmem>>, %arg5: memref<1x256xf32, #tpu.memory_space<vmem>>, %arg6: memref<256x128xbf16, #tpu.memory_space<vmem>>, %arg7: memref<1x128xf32, #tpu.memory_space<vmem>>, %arg8: memref<128x64xbf16, #tpu.memory_space<vmem>>, %arg9: memref<1x64xf32, #tpu.memory_space<vmem>>, %arg10: memref<1x64xbf16, #tpu.memory_space<vmem>>, %arg11: memref<1x1xf32, #tpu.memory_space<vmem>>, %arg12: memref<1x8xf32, #tpu.memory_space<vmem>>) attributes {dimension_semantics = [#tpu.dimension_semantics<parallel>], iteration_bounds = array<i64: 1>, scalar_prefetch = 0 : i64, scratch_operands = 0 : i64, tpu.core_type = #tpu.core_type<tc>, window_params = [{transform_indices = @transform_0, window_bounds = array<i64: 8, 768>}, {pipeline_mode = #tpu.pipeline_mode<synchronous>, transform_indices = @transform_1, window_bounds = array<i64: 768, 512>}, {pipeline_mode = #tpu.pipeline_mode<synchronous>, transform_indices = @transform_2, window_bounds = array<i64: 1, 512>}, {pipeline_mode = #tpu.pipeline_mode<synchronous>, transform_indices = @transform_3, window_bounds = array<i64: 512, 256>}, {pipeline_mode = #tpu.pipeline_mode<synchronous>, transform_indices = @transform_4, window_bounds = array<i64: 1, 256>}, {pipeline_mode = #tpu.pipeline_mode<synchronous>, transform_indices = @transform_5, window_bounds = array<i64: 256, 128>}, {pipeline_mode = #tpu.pipeline_mode<synchronous>, transform_indices = @transform_6, window_bounds = array<i64: 1, 128>}, {pipeline_mode = #tpu.pipeline_mode<synchronous>, transform_indices = @transform_7, window_bounds = array<i64: 128, 64>}, {pipeline_mode = #tpu.pipeline_mode<synchronous>, transform_indices = @transform_8, window_bounds = array<i64: 1, 64>}, {pipeline_mode = #tpu.pipeline_mode<synchronous>, transform_indices = @transform_9, window_bounds = array<i64: 1, 64>}, {pipeline_mode = #tpu.pipeline_mode<synchronous>, transform_indices = @transform_10, window_bounds = array<i64: 1, 1>}, {transform_indices = @transform_11, window_bounds = array<i64: 1, 8>}]} {
    %c0 = arith.constant 0 : index
    %c0_0 = arith.constant 0 : index
    %0 = vector.load %arg1[%c0, %c0_0] : memref<8x768xf32, #tpu.memory_space<vmem>>, vector<8x768xf32>
    %1 = arith.truncf %0 : vector<8x768xf32> to vector<8x768xbf16>
    %c0_1 = arith.constant 0 : index
    %c0_2 = arith.constant 0 : index
    %2 = vector.load %arg2[%c0_1, %c0_2] : memref<768x512xbf16, #tpu.memory_space<vmem>>, vector<768x512xbf16>
    %cst = arith.constant dense<0.000000e+00> : vector<8x512xf32>
    %3 = tpu.matmul %1, %2, %cst {dimension_numbers = #tpu.dot_dimension_numbers<[1], [0], [0], [1], [0, 0, 1, 1], [], []>} : vector<8x768xbf16>, vector<768x512xbf16>, vector<8x512xf32> -> vector<8x512xf32>
    %c0_3 = arith.constant 0 : index
    %c0_4 = arith.constant 0 : index
    %4 = vector.load %arg3[%c0_3, %c0_4] : memref<1x512xf32, #tpu.memory_space<vmem>>, vector<1x512xf32>
    %5 = vector.broadcast %4 : vector<1x512xf32> to vector<8x512xf32>
    %6 = arith.addf %3, %5 : vector<8x512xf32>
    %cst_5 = arith.constant 2.000000e-01 : f32
    %7 = vector.broadcast %cst_5 : f32 to vector<8x512xf32>
    %8 = arith.mulf %7, %6 : vector<8x512xf32>
    %9 = arith.maximumf %6, %8 : vector<8x512xf32>
    %10 = arith.truncf %9 : vector<8x512xf32> to vector<8x512xbf16>
    %c0_6 = arith.constant 0 : index
    %c0_7 = arith.constant 0 : index
    %11 = vector.load %arg4[%c0_6, %c0_7] : memref<512x256xbf16, #tpu.memory_space<vmem>>, vector<512x256xbf16>
    %cst_8 = arith.constant dense<0.000000e+00> : vector<8x256xf32>
    %12 = tpu.matmul %10, %11, %cst_8 {dimension_numbers = #tpu.dot_dimension_numbers<[1], [0], [0], [1], [0, 0, 1, 1], [], []>} : vector<8x512xbf16>, vector<512x256xbf16>, vector<8x256xf32> -> vector<8x256xf32>
    %c0_9 = arith.constant 0 : index
    %c0_10 = arith.constant 0 : index
    %13 = vector.load %arg5[%c0_9, %c0_10] : memref<1x256xf32, #tpu.memory_space<vmem>>, vector<1x256xf32>
    %14 = vector.broadcast %13 : vector<1x256xf32> to vector<8x256xf32>
    %15 = arith.addf %12, %14 : vector<8x256xf32>
    %cst_11 = arith.constant 2.000000e-01 : f32
    %16 = vector.broadcast %cst_11 : f32 to vector<8x256xf32>
    %17 = arith.mulf %16, %15 : vector<8x256xf32>
    %18 = arith.maximumf %15, %17 : vector<8x256xf32>
    %19 = arith.truncf %18 : vector<8x256xf32> to vector<8x256xbf16>
    %c0_12 = arith.constant 0 : index
    %c0_13 = arith.constant 0 : index
    %20 = vector.load %arg6[%c0_12, %c0_13] : memref<256x128xbf16, #tpu.memory_space<vmem>>, vector<256x128xbf16>
    %cst_14 = arith.constant dense<0.000000e+00> : vector<8x128xf32>
    %21 = tpu.matmul %19, %20, %cst_14 {dimension_numbers = #tpu.dot_dimension_numbers<[1], [0], [0], [1], [0, 0, 1, 1], [], []>} : vector<8x256xbf16>, vector<256x128xbf16>, vector<8x128xf32> -> vector<8x128xf32>
    %c0_15 = arith.constant 0 : index
    %c0_16 = arith.constant 0 : index
    %22 = vector.load %arg7[%c0_15, %c0_16] : memref<1x128xf32, #tpu.memory_space<vmem>>, vector<1x128xf32>
    %23 = vector.broadcast %22 : vector<1x128xf32> to vector<8x128xf32>
    %24 = arith.addf %21, %23 : vector<8x128xf32>
    %cst_17 = arith.constant 2.000000e-01 : f32
    %25 = vector.broadcast %cst_17 : f32 to vector<8x128xf32>
    %26 = arith.mulf %25, %24 : vector<8x128xf32>
    %27 = arith.maximumf %24, %26 : vector<8x128xf32>
    %28 = arith.truncf %27 : vector<8x128xf32> to vector<8x128xbf16>
    %c0_18 = arith.constant 0 : index
    %c0_19 = arith.constant 0 : index
    %29 = vector.load %arg8[%c0_18, %c0_19] : memref<128x64xbf16, #tpu.memory_space<vmem>>, vector<128x64xbf16>
    %cst_20 = arith.constant dense<0.000000e+00> : vector<8x64xf32>
    %30 = tpu.matmul %28, %29, %cst_20 {dimension_numbers = #tpu.dot_dimension_numbers<[1], [0], [0], [1], [0, 0, 1, 1], [], []>} : vector<8x128xbf16>, vector<128x64xbf16>, vector<8x64xf32> -> vector<8x64xf32>
    %c0_21 = arith.constant 0 : index
    %c0_22 = arith.constant 0 : index
    %31 = vector.load %arg9[%c0_21, %c0_22] : memref<1x64xf32, #tpu.memory_space<vmem>>, vector<1x64xf32>
    %32 = vector.broadcast %31 : vector<1x64xf32> to vector<8x64xf32>
    %33 = arith.addf %30, %32 : vector<8x64xf32>
    %cst_23 = arith.constant 2.000000e-01 : f32
    %34 = vector.broadcast %cst_23 : f32 to vector<8x64xf32>
    %35 = arith.mulf %34, %33 : vector<8x64xf32>
    %36 = arith.maximumf %33, %35 : vector<8x64xf32>
    %c0_24 = arith.constant 0 : index
    %c0_25 = arith.constant 0 : index
    %37 = vector.load %arg10[%c0_24, %c0_25] : memref<1x64xbf16, #tpu.memory_space<vmem>>, vector<1x64xbf16>
    %38 = arith.extf %37 : vector<1x64xbf16> to vector<1x64xf32>
    %39 = vector.broadcast %38 : vector<1x64xf32> to vector<8x64xf32>
    %40 = arith.mulf %36, %39 : vector<8x64xf32>
    %cst_26 = arith.constant dense<0.000000e+00> : vector<8xf32>
    %41 = vector.multi_reduction <add>, %40, %cst_26 [1] : vector<8x64xf32> to vector<8xf32>
    %42 = vector.shape_cast %41 : vector<8xf32> to vector<8x1xf32>
    %c0_27 = arith.constant 0 : index
    %c0_28 = arith.constant 0 : index
    %43 = vector.load %arg11[%c0_27, %c0_28] : memref<1x1xf32, #tpu.memory_space<vmem>>, vector<1x1xf32>
    %44 = vector.broadcast %43 : vector<1x1xf32> to vector<8x1xf32>
    %45 = arith.addf %42, %44 : vector<8x1xf32>
    %46 = tpu.transpose %45, [1, 0] : vector<8x1xf32> -> vector<1x8xf32>
    %c0_29 = arith.constant 0 : index
    %c0_30 = arith.constant 0 : index
    %47 = vector.load %arg12[%c0_29, %c0_30] : memref<1x8xf32, #tpu.memory_space<vmem>>, vector<1x8xf32>
    tpu.vector_store %arg12[%c0_29, %c0_30], %46 {strides = array<i32>} : memref<1x8xf32, #tpu.memory_space<vmem>>, vector<1x8xf32>,
    return
  }
  func.func @transform_0(%arg0: i32) -> (i32, i32) {
    %c0_i32 = arith.constant 0 : i32
    %c0_i32_0 = arith.constant 0 : i32
    return %arg0, %c0_i32 : i32, i32
  }
  func.func @transform_1(%arg0: i32) -> (i32, i32) {
    %c0_i32 = arith.constant 0 : i32
    %c0_i32_0 = arith.constant 0 : i32
    %c0_i32_1 = arith.constant 0 : i32
    return %c0_i32, %c0_i32_0 : i32, i32
  }
  func.func @transform_2(%arg0: i32) -> (i32, i32) {
    %c0_i32 = arith.constant 0 : i32
    %c0_i32_0 = arith.constant 0 : i32
    %c0_i32_1 = arith.constant 0 : i32
    return %c0_i32, %c0_i32_0 : i32, i32
  }
  func.func @transform_3(%arg0: i32) -> (i32, i32) {
    %c0_i32 = arith.constant 0 : i32
    %c0_i32_0 = arith.constant 0 : i32
    %c0_i32_1 = arith.constant 0 : i32
    return %c0_i32, %c0_i32_0 : i32, i32
  }
  func.func @transform_4(%arg0: i32) -> (i32, i32) {
    %c0_i32 = arith.constant 0 : i32
    %c0_i32_0 = arith.constant 0 : i32
    %c0_i32_1 = arith.constant 0 : i32
    return %c0_i32, %c0_i32_0 : i32, i32
  }
  func.func @transform_5(%arg0: i32) -> (i32, i32) {
    %c0_i32 = arith.constant 0 : i32
    %c0_i32_0 = arith.constant 0 : i32
    %c0_i32_1 = arith.constant 0 : i32
    return %c0_i32, %c0_i32_0 : i32, i32
  }
  func.func @transform_6(%arg0: i32) -> (i32, i32) {
    %c0_i32 = arith.constant 0 : i32
    %c0_i32_0 = arith.constant 0 : i32
    %c0_i32_1 = arith.constant 0 : i32
    return %c0_i32, %c0_i32_0 : i32, i32
  }
  func.func @transform_7(%arg0: i32) -> (i32, i32) {
    %c0_i32 = arith.constant 0 : i32
    %c0_i32_0 = arith.constant 0 : i32
    %c0_i32_1 = arith.constant 0 : i32
    return %c0_i32, %c0_i32_0 : i32, i32
  }
  func.func @transform_8(%arg0: i32) -> (i32, i32) {
    %c0_i32 = arith.constant 0 : i32
    %c0_i32_0 = arith.constant 0 : i32
    %c0_i32_1 = arith.constant 0 : i32
    return %c0_i32, %c0_i32_0 : i32, i32
  }
  func.func @transform_9(%arg0: i32) -> (i32, i32) {
    %c0_i32 = arith.constant 0 : i32
    %c0_i32_0 = arith.constant 0 : i32
    %c0_i32_1 = arith.constant 0 : i32
    return %c0_i32, %c0_i32_0 : i32, i32
  }
  func.func @transform_10(%arg0: i32) -> (i32, i32) {
    %c0_i32 = arith.constant 0 : i32
    %c0_i32_0 = arith.constant 0 : i32
    %c0_i32_1 = arith.constant 0 : i32
    return %c0_i32, %c0_i32_0 : i32, i32
  }
  func.func @transform_11(%arg0: i32) -> (i32, i32) {
    %c0_i32 = arith.constant 0 : i32
    %c0_i32_0 = arith.constant 0 : i32
    return %c0_i32, %arg0 : i32, i32
  }
}

</mosaic_0001>

<bundles_post_ra>
// kernel: tpu_custom_call.1
= control target key start
LH: loop header
LB: loop body
LE: loop exit
PB: predicated region body
PF: predicated region fallthrough
CT: control target
= control target key end

     0   :  { %s4111_s0 = inlined_call_operand.vmem [shape: f32[8,768], index: 0, kind: input, shape index: {}]   ;;  %s4112_s1 = inlined_call_operand.hbm [shape: bf16[768,512], index: 1, kind: input, shape index: {}]   ;;  %s4113_s2 = inlined_call_operand.vmem [shape: f32[1,512], index: 2, kind: input, shape index: {}]   ;;  %s4114_s3 = inlined_call_operand.hbm [shape: bf16[512,256], index: 3, kind: input, shape index: {}]   ;;  %s4115_s4 = inlined_call_operand.vmem [shape: f32[1,256], index: 4, kind: input, shape index: {}]   ;;  %s4116_s5 = inlined_call_operand.hbm [shape: bf16[256,128], index: 5, kind: input, shape index: {}]   ;;  %s4117_s6 = inlined_call_operand.vmem [shape: f32[1,128], index: 6, kind: input, shape index: {}]   ;;  %s4118_s7 = inlined_call_operand.vmem [shape: bf16[128,64], index: 7, kind: input, shape index: {}]   ;;  %s4119_s8 = inlined_call_operand.vmem [shape: f32[1,64], index: 8, kind: input, shape index: {}]   ;;  %s4120_s9 = inlined_call_operand.vmem [shape: bf16[1,64], index: 9, kind: input, shape index: {}]   ;;  %s4121_s10 = inlined_call_operand.<no memory space> [shape: f32[1,1], index: 10, kind: input, shape index: {}]   ;;  %s4122_s11 = inlined_call_operand.hbm [shape: f32[1,8], index: 11, kind: output, shape index: {}]  }
   0x1   :  { %v16_v0 = vstv %s4121_s10 }
   0x2   :  { %17 = vst [vmem:[#allocation2] sm:$0x1] %v16_v0 }
   0x3   :  { %18 = vsyncpa [#allocation4], 0 }
   0x4   :  { %19 = vsyncpa [#allocation7], 0  ;;  %s42_s21 = sshll.u32 %s4114_s3, 4  ;;  %s43_s21 = int_to_ptr.hbm [resolvable:$true] %s42_s21 }
   0x5   :  { %20 = vsyncpa [#allocation5], 0  ;;  %s3911_s22 = smov [#allocation6]   ;;  %s27_s26 = sshll.u32 %s4112_s1, 4  ;;  %s28_s26 = int_to_ptr.hbm [resolvable:$true] %s27_s26 }
   0x6   :  { %s44_s23 = sshll.u32 %s3911_s22, 4  ;;  %s3912_s27 = smov 128   ;;  %s45_s23 = int_to_ptr.vmem [resolvable:$true] %s44_s23 }
   0x7   :  { %s3913_s28 = smov 8   ;;  %s3914_s10 = smov [#allocation3]  }
   0x8   :  { %50 = dma.hbm_to_vmem [thread:$0]  %s43_s21, 8192, %s45_s23, [#allocation7], %s3912_s27, %s3912_s27, %s3913_s28  }
   0x9   :  { %s29_s29 = sshll.u32 %s3914_s10, 4  ;;  %s3915_s30 = smov 256   ;;  %s30_s29 = int_to_ptr.vmem [resolvable:$true] %s29_s29 }
   0xa   :  { %s3916_s12 = smov 16   ;;  %s57_s14 = sshll.u32 %s4116_s5, 4  ;;  %s58_s14 = int_to_ptr.hbm [resolvable:$true] %s57_s14 }
   0xb   :  { %35 = dma.hbm_to_vmem [thread:$0]  %s28_s26, 24576, %s30_s29, [#allocation4], %s3915_s30, %s3915_s30, %s3916_s12  }
   0xc   :  { %s3917_s15 = smov [#allocation8]   ;;  %s3918_s17 = smov 64  }
   0xd   :  { %s59_s16 = sshll.u32 %s3917_s15, 4  ;;  %s3919_s1 = smov 4   ;;  %s60_s16 = int_to_ptr.vmem [resolvable:$true] %s59_s16 }
   0xe   :  { %65 = dma.hbm_to_vmem [thread:$0]  %s58_s14, 2048, %s60_s16, [#allocation7], %s3918_s17, %s3918_s17, %s3919_s1  }
   0xf   :  { %3905 = dma.done.wait [#allocation4], 24576  }
  0x10   :  { %3906 = vsyncadd [#allocation4], 4294942720 }
  0x11   :  { %3907 = dma.done.wait [#allocation7], 10240  }
  0x12   :  { %3908 = vsyncadd [#allocation7], 4294957056  ;;  %v2509_v1 = vld [vmem:[#allocation3 + $0xe0] sm:$0xf]  ;;  %v3545_v2 = vld [vmem:[#allocation3 + $0xec] sm:$0xf0] }
  0x13   :  { %v2637_v3 = vld [vmem:[#allocation3 + $0x1e0] sm:$0xf]  ;;  %v2510_v4 = vor.u32 %v3545_v2, %v2509_v1  ;;  %v3577_v5 = vld [vmem:[#allocation3 + $0x1ec] sm:$0xf0]  ;;  %vm2334_vm0 = vcmask 523264   ;;  %vm2375_vm1 = vcmask 57344  }
  0x14   :  { %v2765_v6 = vld [vmem:[#allocation3 + $0x2e0] sm:$0xf]  ;;  %v3609_v7 = vld [vmem:[#allocation3 + $0x2ec] sm:$0xf0]  ;;  %v2638_v8 = vor.u32 %v3577_v5, %v2637_v3 }
  0x15   :  { %v2766_v9 = vor.u32 %v3609_v7, %v2765_v6  ;;  %v2893_v10 = vld [vmem:[#allocation3 + $0x3e0] sm:$0xf]  ;;  %v3641_v11 = vld [vmem:[#allocation3 + $0x3ec] sm:$0xf0]  ;;  %1262 = vmatpush.bf16.msra.mxu0 %v2510_v4 }
  0x16   :  { %v2493_v12 = vld [vmem:[#allocation3 + $0xc0] sm:$0xf]  ;;  %v2894_v13 = vor.u32 %v3641_v11, %v2893_v10  ;;  %v3541_v14 = vld [vmem:[#allocation3 + $0xcc] sm:$0xf0]  ;;  %1275 = vmatpush.bf16.msra.mxu1 %v2638_v8 }
  0x17   :  { %v2621_v15 = vld [vmem:[#allocation3 + $0x1c0] sm:$0xf]  ;;  %v3573_v16 = vld [vmem:[#allocation3 + $0x1cc] sm:$0xf0]  ;;  %1288 = vmatpush.bf16.msra.mxu2 %v2766_v9  ;;  %v2494_v17 = vor.u32 %v3541_v14, %v2493_v12 }
  0x18   :  { %v2622_v18 = vor.u32 %v3573_v16, %v2621_v15  ;;  %v2749_v19 = vld [vmem:[#allocation3 + $0x2c0] sm:$0xf]  ;;  %v3605_v20 = vld [vmem:[#allocation3 + $0x2cc] sm:$0xf0]  ;;  %1301 = vmatpush.bf16.msra.mxu3 %v2894_v13 }
  0x19   :  { %v2877_v21 = vld [vmem:[#allocation3 + $0x3c0] sm:$0xf]  ;;  %v2750_v22 = vor.u32 %v3605_v20, %v2749_v19  ;;  %v3637_v23 = vld [vmem:[#allocation3 + $0x3cc] sm:$0xf0]  ;;  %1263 = vmatpush.bf16.msra.mxu0 %v2494_v17 }
  0x1a   :  { %v2477_v24 = vld [vmem:[#allocation3 + $0xa0] sm:$0xf]  ;;  %v3537_v25 = vld [vmem:[#allocation3 + $0xac] sm:$0xf0]  ;;  %v2878_v26 = vor.u32 %v3637_v23, %v2877_v21  ;;  %1276 = vmatpush.bf16.msra.mxu1 %v2622_v18 }
  0x1b   :  { %v2605_v27 = vld [vmem:[#allocation3 + $0x1a0] sm:$0xf]  ;;  %v3569_v28 = vld [vmem:[#allocation3 + $0x1ac] sm:$0xf0]  ;;  %v2478_v30 = vor.u32 %v3537_v25, %v2477_v24  ;;  %1289 = vmatpush.bf16.msra.mxu2 %v2750_v22 }
  0x1c   :  { %v2733_v29 = vld [vmem:[#allocation3 + $0x2a0] sm:$0xf]  ;;  %v3601_v31 = vld [vmem:[#allocation3 + $0x2ac] sm:$0xf0]  ;;  %v2606_v34 = vor.u32 %v3569_v28, %v2605_v27  ;;  %1302 = vmatpush.bf16.msra.mxu3 %v2878_v26 }
  0x1d   :  { %v2861_v32 = vld [vmem:[#allocation3 + $0x3a0] sm:$0xf]  ;;  %v3633_v33 = vld [vmem:[#allocation3 + $0x3ac] sm:$0xf0]  ;;  %v2734_v35 = vor.u32 %v3601_v31, %v2733_v29  ;;  %1264 = vmatpush.bf16.msra.mxu0 %v2478_v30 }
  0x1e   :  { %v2461_v36 = vld [vmem:[#allocation3 + $0x80] sm:$0xf]  ;;  %v3533_v37 = vld [vmem:[#allocation3 + $0x8c] sm:$0xf0]  ;;  %v2862_v39 = vor.u32 %v3633_v33, %v2861_v32  ;;  %1277 = vmatpush.bf16.msra.mxu1 %v2606_v34  ;;  %v3543_v34 = vld [vmem:[#allocation3 + $0xe4] sm:$0xf] }
  0x1f   :  { %v2589_v38 = vld [vmem:[#allocation3 + $0x180] sm:$0xf]  ;;  %v3565_v40 = vld [vmem:[#allocation3 + $0x18c] sm:$0xf0]  ;;  %v2462_v45 = vor.u32 %v3533_v37, %v2461_v36  ;;  %1290 = vmatpush.bf16.msra.mxu2 %v2734_v35  ;;  %v2511_v35 = vld [vmem:[#allocation3 + $0xf0] sm:$0xf0] }
  0x20   :  { %v2717_v41 = vld [vmem:[#allocation3 + $0x280] sm:$0xf]  ;;  %v3597_v42 = vld [vmem:[#allocation3 + $0x28c] sm:$0xf0]  ;;  %v2590_v46 = vor.u32 %v3565_v40, %v2589_v38  ;;  %1303 = vmatpush.bf16.msra.mxu3 %v2862_v39  ;;  %v3575_v38 = vld [vmem:[#allocation3 + $0x1e4] sm:$0xf] }
  0x21   :  { %v2845_v43 = vld [vmem:[#allocation3 + $0x380] sm:$0xf]  ;;  %v3629_v44 = vld [vmem:[#allocation3 + $0x38c] sm:$0xf0]  ;;  %v2718_v47 = vor.u32 %v3597_v42, %v2717_v41  ;;  %1265 = vmatpush.bf16.msra.mxu0 %v2462_v45  ;;  %v2639_v39 = vld [vmem:[#allocation3 + $0x1f0] sm:$0xf0] }
  0x22   :  { %v2445_v48 = vld [vmem:[#allocation3 + $0x60] sm:$0xf]  ;;  %v3529_v49 = vld [vmem:[#allocation3 + $0x6c] sm:$0xf0]  ;;  %v2846_v51 = vor.u32 %v3629_v44, %v2845_v43  ;;  %1278 = vmatpush.bf16.msra.mxu1 %v2590_v46  ;;  %v2514_v43 = vor.u32 %v3543_v34, %v2511_v35 }
  0x23   :  { %v2573_v50 = vld [vmem:[#allocation3 + $0x160] sm:$0xf]  ;;  %v3561_v52 = vld [vmem:[#allocation3 + $0x16c] sm:$0xf0]  ;;  %v2446_v57 = vor.u32 %v3529_v49, %v2445_v48  ;;  %1291 = vmatpush.bf16.msra.mxu2 %v2718_v47  ;;  %v2642_v47 = vor.u32 %v3575_v38, %v2639_v39  ;;  %v3539_v49 = vld [vmem:[#allocation3 + $0xc4] sm:$0xf] }
  0x24   :  { %v2701_v53 = vld [vmem:[#allocation3 + $0x260] sm:$0xf]  ;;  %v3593_v54 = vld [vmem:[#allocation3 + $0x26c] sm:$0xf0]  ;;  %v2574_v58 = vor.u32 %v3561_v52, %v2573_v50  ;;  %1304 = vmatpush.bf16.msra.mxu3 %v2846_v51  ;;  %v2495_v50 = vld [vmem:[#allocation3 + $0xd0] sm:$0xf0] }
  0x25   :  { %v2829_v55 = vld [vmem:[#allocation3 + $0x360] sm:$0xf]  ;;  %v3625_v56 = vld [vmem:[#allocation3 + $0x36c] sm:$0xf0]  ;;  %v2702_v59 = vor.u32 %v3593_v54, %v2701_v53  ;;  %1266 = vmatpush.bf16.msra.mxu0 %v2446_v57  ;;  %v3571_v51 = vld [vmem:[#allocation3 + $0x1c4] sm:$0xf] }
  0x26   :  { %v2429_v60 = vld [vmem:[#allocation3 + $0x40] sm:$0xf]  ;;  %v3525_v61 = vld [vmem:[#allocation3 + $0x4c] sm:$0xf0]  ;;  %v2830_v63 = vor.u32 %v3625_v56, %v2829_v55  ;;  %1279 = vmatpush.bf16.msra.mxu1 %v2574_v58  ;;  %v2623_v52 = vld [vmem:[#allocation3 + $0x1d0] sm:$0xf0]  ;;  %v2498_v56 = vor.u32 %v3539_v49, %v2495_v50 }
  0x27   :  { %v2557_v62 = vld [vmem:[#allocation3 + $0x140] sm:$0xf]  ;;  %v3557_v0 = vld [vmem:[#allocation3 + $0x14c] sm:$0xf0]  ;;  %v2430_v5 = vor.u32 %v3525_v61, %v2429_v60  ;;  %1292 = vmatpush.bf16.msra.mxu2 %v2702_v59  ;;  %v2626_v60 = vor.u32 %v3571_v51, %v2623_v52  ;;  %v3535_v61 = vld [vmem:[#allocation3 + $0xa4] sm:$0xf] }
  0x28   :  { %v2685_v1 = vld [vmem:[#allocation3 + $0x240] sm:$0xf]  ;;  %v3589_v2 = vld [vmem:[#allocation3 + $0x24c] sm:$0xf0]  ;;  %v2558_v6 = vor.u32 %v3557_v0, %v2557_v62  ;;  %1305 = vmatpush.bf16.msra.mxu3 %v2830_v63  ;;  %v2479_v62 = vld [vmem:[#allocation3 + $0xb0] sm:$0xf0] }
  0x29   :  { %v2813_v3 = vld [vmem:[#allocation3 + $0x340] sm:$0xf]  ;;  %v3621_v4 = vld [vmem:[#allocation3 + $0x34c] sm:$0xf0]  ;;  %v2686_v7 = vor.u32 %v3589_v2, %v2685_v1  ;;  %1267 = vmatpush.bf16.msra.mxu0 %v2430_v5  ;;  %v3567_v63 = vld [vmem:[#allocation3 + $0x1a4] sm:$0xf] }
  0x2a   :  { %v2413_v8 = vld [vmem:[#allocation3 + $0x20] sm:$0xf]  ;;  %v3521_v9 = vld [vmem:[#allocation3 + $0x2c] sm:$0xf0]  ;;  %v2814_v11 = vor.u32 %v3621_v4, %v2813_v3  ;;  %1280 = vmatpush.bf16.msra.mxu1 %v2558_v6  ;;  %v2607_v0 = vld [vmem:[#allocation3 + $0x1b0] sm:$0xf0] }
  0x2b   :  { %v2541_v10 = vld [vmem:[#allocation3 + $0x120] sm:$0xf]  ;;  %v3553_v12 = vld [vmem:[#allocation3 + $0x12c] sm:$0xf0]  ;;  %v2414_v17 = vor.u32 %v3521_v9, %v2413_v8  ;;  %1293 = vmatpush.bf16.msra.mxu2 %v2686_v7  ;;  %v2482_v7 = vor.u32 %v3535_v61, %v2479_v62 }
  0x2c   :  { %v2669_v13 = vld [vmem:[#allocation3 + $0x220] sm:$0xf]  ;;  %v3585_v14 = vld [vmem:[#allocation3 + $0x22c] sm:$0xf0]  ;;  %v2542_v20 = vor.u32 %v3553_v12, %v2541_v10  ;;  %1306 = vmatpush.bf16.msra.mxu3 %v2814_v11  ;;  %v89_v11 = vld [vmem:[%s4111_s0 + $0x8] sm:$0xff] }
  0x2d   :  { %v2797_v15 = vld [vmem:[#allocation3 + $0x320] sm:$0xf]  ;;  %v3617_v16 = vld [vmem:[#allocation3 + $0x32c] sm:$0xf0]  ;;  %v2670_v21 = vor.u32 %v3585_v14, %v2669_v13  ;;  %1268 = vmatpush.bf16.msra.mxu0 %v2414_v17  ;;  %v91_v12 = vld [vmem:[%s4111_s0 + $0x18] sm:$0xff]  ;;  %v2610_v13 = vor.u32 %v3567_v63, %v2607_v0  ;;  %v4009_v17 = vpack.c.bf16 %v89_v11, %v89_v11 }
  0x2e   :  { %v2397_v18 = vld [vmem:[#allocation3] sm:$0xf]  ;;  %v3517_v19 = vld [vmem:[#allocation3 + $0xc] sm:$0xf0]  ;;  %v2798_v25 = vor.u32 %v3617_v16, %v2797_v15  ;;  %1281 = vmatpush.bf16.msra.mxu1 %v2542_v20  ;;  %v3531_v15 = vld [vmem:[#allocation3 + $0x84] sm:$0xf]  ;;  %v4013_v20 = vpack.c.bf16 %v91_v12, %v91_v12 }
  0x2f   :  { %v2525_v22 = vld [vmem:[#allocation3 + $0x100] sm:$0xf]  ;;  %v3549_v23 = vld [vmem:[#allocation3 + $0x10c] sm:$0xf0]  ;;  %v2398_v32 = vor.u32 %v3517_v19, %v2397_v18  ;;  %1294 = vmatpush.bf16.msra.mxu2 %v2670_v21  ;;  %v2463_v16 = vld [vmem:[#allocation3 + $0x90] sm:$0xf0] }
  0x30   :  { %v2653_v24 = vld [vmem:[#allocation3 + $0x200] sm:$0xf]  ;;  %v3581_v26 = vld [vmem:[#allocation3 + $0x20c] sm:$0xf0]  ;;  %v2526_v36 = vor.u32 %v3549_v23, %v2525_v22  ;;  %1307 = vmatpush.bf16.msra.mxu3 %v2798_v25  ;;  %v3563_v18 = vld [vmem:[#allocation3 + $0x184] sm:$0xf]  ;;  %v2466_v23 = vor.u32 %v3531_v15, %v2463_v16 }
  0x31   :  { %v2781_v27 = vld [vmem:[#allocation3 + $0x300] sm:$0xf]  ;;  %v3613_v28 = vld [vmem:[#allocation3 + $0x30c] sm:$0xf0]  ;;  %v2654_v37 = vor.u32 %v3581_v26, %v2653_v24  ;;  %1269 = vmatpush.bf16.msra.mxu0 %v2398_v32  ;;  %v2591_v19 = vld [vmem:[#allocation3 + $0x190] sm:$0xf0] }
  0x32   :  { %v3021_v29 = vld [vmem:[#allocation3 + $0x4e0] sm:$0xf]  ;;  %v3673_v30 = vld [vmem:[#allocation3 + $0x4ec] sm:$0xf0]  ;;  %v2782_v40 = vor.u32 %v3613_v28, %v2781_v27  ;;  %1282 = vmatpush.bf16.msra.mxu1 %v2526_v36  ;;  %v2594_v27 = vor.u32 %v3563_v18, %v2591_v19  ;;  %v2575_v32 = vld [vmem:[#allocation3 + $0x170] sm:$0xf0] }
  0x33   :  { %v3149_v31 = vld [vmem:[#allocation3 + $0x5e0] sm:$0xf]  ;;  %v3705_v33 = vld [vmem:[#allocation3 + $0x5ec] sm:$0xf0]  ;;  %v3022_v41 = vor.u32 %v3673_v30, %v3021_v29  ;;  %1295 = vmatpush.bf16.msra.mxu2 %v2654_v37  ;;  %v3527_v29 = vld [vmem:[#allocation3 + $0x64] sm:$0xf] }
  0x34   :  { %v3150_v42 = vor.u32 %v3705_v33, %v3149_v31  ;;  %v3005_v44 = vld [vmem:[#allocation3 + $0x4c0] sm:$0xf]  ;;  %v3669_v45 = vld [vmem:[#allocation3 + $0x4cc] sm:$0xf0]  ;;  %1308 = vmatpush.bf16.msra.mxu3 %v2782_v40  ;;  %v2447_v30 = vld [vmem:[#allocation3 + $0x70] sm:$0xf0] }
  0x35   :  { %v3133_v46 = vld [vmem:[#allocation3 + $0x5c0] sm:$0xf]  ;;  %v3701_v48 = vld [vmem:[#allocation3 + $0x5cc] sm:$0xf0]  ;;  %1314 = vmatpush.bf16.msrb.mxu0 %v3022_v41  ;;  %v3006_v53 = vor.u32 %v3669_v45, %v3005_v44  ;;  %1283 = vmatmul.bf16.vlgmr.msra.gmra.mxu1 %v4009_v17  ;;  %v3559_v31 = vld [vmem:[#allocation3 + $0x164] sm:$0xf]  ;;  %v2450_v35 = vor.u32 %v3527_v29, %v2447_v30 }
  0x36   :  { %v2989_v54 = vld [vmem:[#allocation3 + $0x4a0] sm:$0xf]  ;;  %1327 = vmatpush.bf16.msrb.mxu1 %v3150_v42  ;;  %v3134_v55 = vor.u32 %v3701_v48, %v3133_v46  ;;  %v3665_v57 = vld [vmem:[#allocation3 + $0x4ac] sm:$0xf0]  ;;  %v2578_v39 = vor.u32 %v3559_v31, %v2575_v32  ;;  %v3523_v41 = vld [vmem:[#allocation3 + $0x44] sm:$0xf] }
  0x37   :  { %1340 = vmatpush.bf16.msrb.mxu2 %v2514_v43  ;;  %v3117_v58 = vld [vmem:[#allocation3 + $0x5a0] sm:$0xf]  ;;  %v3697_v59 = vld [vmem:[#allocation3 + $0x5ac] sm:$0xf0]  ;;  %v2990_v2 = vor.u32 %v3665_v57, %v2989_v54  ;;  %1309 = vmatmul.bf16.vlgmr.msra.gmra.mxu3 %v4013_v20  ;;  %v2431_v42 = vld [vmem:[#allocation3 + $0x50] sm:$0xf0] }
  0x38   :  { %1353 = vmatpush.bf16.msrb.mxu3 %v2642_v47  ;;  %v2973_v1 = vld [vmem:[#allocation3 + $0x480] sm:$0xf]  ;;  %v3118_v3 = vor.u32 %v3697_v59, %v3117_v58  ;;  %v3661_v4 = vld [vmem:[#allocation3 + $0x48c] sm:$0xf0]  ;;  %v3555_v43 = vld [vmem:[#allocation3 + $0x144] sm:$0xf]  ;;  %v2434_v47 = vor.u32 %v3523_v41, %v2431_v42 }
  0x39   :  { %1315 = vmatpush.bf16.msrb.mxu0 %v3006_v53  ;;  %v88_v5 = vld [vmem:[%s4111_s0] sm:$0xff]  ;;  %v90_v6 = vld [vmem:[%s4111_s0 + $0x10] sm:$0xff]  ;;  %v2974_v21 = vor.u32 %v3661_v4, %v2973_v1 }
  0x3a   :  { %1328 = vmatpush.bf16.msrb.mxu1 %v3134_v55  ;;  %v3101_v8 = vld [vmem:[#allocation3 + $0x580] sm:$0xf]  ;;  %v3999_v9 = vpack.c.bf16 %v88_v5, %v88_v5  ;;  %v4001_v10 = vpack.c.bf16 %v90_v6, %v90_v6  ;;  %v3693_v14 = vld [vmem:[#allocation3 + $0x58c] sm:$0xf0]  ;;  %v2559_v44 = vld [vmem:[#allocation3 + $0x150] sm:$0xf0] }
  0x3b   :  { %1341 = vmatpush.bf16.msrb.mxu2 %v2498_v56  ;;  %v3102_v22 = vor.u32 %v3693_v14, %v3101_v8  ;;  %v2957_v24 = vld [vmem:[#allocation3 + $0x460] sm:$0xf]  ;;  %v3657_v25 = vld [vmem:[#allocation3 + $0x46c] sm:$0xf0]  ;;  %v2562_v51 = vor.u32 %v3555_v43, %v2559_v44  ;;  %v3519_v53 = vld [vmem:[#allocation3 + $0x24] sm:$0xf] }
  0x3c   :  { %1354 = vmatpush.bf16.msrb.mxu3 %v2626_v60  ;;  %1270 = vmatmul.bf16.vlgmr.msra.gmra.mxu0 %v3999_v9  ;;  %v3085_v26 = vld [vmem:[#allocation3 + $0x560] sm:$0xf]  ;;  %v3689_v28 = vld [vmem:[#allocation3 + $0x56c] sm:$0xf0]  ;;  %v2958_v33 = vor.u32 %v3657_v25, %v2957_v24  ;;  %v2415_v54 = vld [vmem:[#allocation3 + $0x30] sm:$0xf0] }
  0x3d   :  { %1296 = vmatmul.bf16.vlgmr.msra.gmra.mxu2 %v4001_v10  ;;  %1316 = vmatpush.bf16.msrb.mxu0 %v2990_v2  ;;  %v3086_v34 = vor.u32 %v3689_v28, %v3085_v26  ;;  %v2941_v36 = vld [vmem:[#allocation3 + $0x440] sm:$0xf]  ;;  %v3653_v37 = vld [vmem:[#allocation3 + $0x44c] sm:$0xf0]  ;;  %v3551_v55 = vld [vmem:[#allocation3 + $0x124] sm:$0xf]  ;;  %v2418_v61 = vor.u32 %v3519_v53, %v2415_v54 }
  0x3e   :  { %1329 = vmatpush.bf16.msrb.mxu1 %v3118_v3  ;;  %v3069_v38 = vld [vmem:[#allocation3 + $0x540] sm:$0xf]  ;;  %v3685_v40 = vld [vmem:[#allocation3 + $0x54c] sm:$0xf0]  ;;  %v2942_v45 = vor.u32 %v3653_v37, %v2941_v36  ;;  %v2543_v56 = vld [vmem:[#allocation3 + $0x130] sm:$0xf0] }
  0x3f   :  { %1342 = vmatpush.bf16.msrb.mxu2 %v2482_v7  ;;  %v3070_v46 = vor.u32 %v3685_v40, %v3069_v38  ;;  %v2925_v48 = vld [vmem:[#allocation3 + $0x420] sm:$0xf]  ;;  %v3649_v49 = vld [vmem:[#allocation3 + $0x42c] sm:$0xf0]  ;;  %v3515_v0 = vld [vmem:[#allocation3 + $0x4] sm:$0xf]  ;;  %v2546_v1 = vor.u32 %v3551_v55, %v2543_v56 }
  0x40   :  { %1355 = vmatpush.bf16.msrb.mxu3 %v2610_v13  ;;  %v3053_v50 = vld [vmem:[#allocation3 + $0x520] sm:$0xf]  ;;  %v3681_v52 = vld [vmem:[#allocation3 + $0x52c] sm:$0xf0]  ;;  %v2926_v57 = vor.u32 %v3649_v49, %v2925_v48  ;;  %v2399_v2 = vld [vmem:[#allocation3 + $0x10] sm:$0xf0] }
  0x41   :  { %1317 = vmatpush.bf16.msrb.mxu0 %v2974_v21  ;;  %v2909_v58 = vld [vmem:[#allocation3 + $0x400] sm:$0xf]  ;;  %v3645_v59 = vld [vmem:[#allocation3 + $0x40c] sm:$0xf0]  ;;  %v3054_v60 = vor.u32 %v3681_v52, %v3053_v50  ;;  %v3547_v3 = vld [vmem:[#allocation3 + $0x104] sm:$0xf]  ;;  %v2402_v15 = vor.u32 %v3515_v0, %v2399_v2 }
  0x42   :  { %1330 = vmatpush.bf16.msrb.mxu1 %v3102_v22  ;;  %v3037_v62 = vld [vmem:[#allocation3 + $0x500] sm:$0xf]  ;;  %v3677_v63 = vld [vmem:[#allocation3 + $0x50c] sm:$0xf0]  ;;  %v2527_v4 = vld [vmem:[#allocation3 + $0x110] sm:$0xf0]  ;;  %v2910_v8 = vor.u32 %v3645_v59, %v2909_v58 }
  0x43   :  { %1343 = vmatpush.bf16.msrb.mxu2 %v2466_v23  ;;  %v3607_v5 = vld [vmem:[#allocation3 + $0x2e4] sm:$0xf]  ;;  %v2767_v6 = vld [vmem:[#allocation3 + $0x2f0] sm:$0xf0]  ;;  %v3038_v14 = vor.u32 %v3677_v63, %v3037_v62  ;;  %v2530_v21 = vor.u32 %v3547_v3, %v2527_v4 }
  0x44   :  { %1356 = vmatpush.bf16.msrb.mxu3 %v2594_v27  ;;  %v3639_v7 = vld [vmem:[#allocation3 + $0x3e4] sm:$0xf]  ;;  %v2895_v11 = vld [vmem:[#allocation3 + $0x3f0] sm:$0xf0]  ;;  %v2770_v22 = vor.u32 %v3607_v5, %v2767_v6 }
  0x45   :  { %1318 = vmatpush.bf16.msrb.mxu0 %v2958_v33  ;;  %v3671_v12 = vld [vmem:[#allocation3 + $0x4e4] sm:$0xf]  ;;  %v3023_v13 = vld [vmem:[#allocation3 + $0x4f0] sm:$0xf0]  ;;  %v2898_v24 = vor.u32 %v3639_v7, %v2895_v11 }
  0x46   :  { %1331 = vmatpush.bf16.msrb.mxu1 %v3086_v34  ;;  %v3703_v16 = vld [vmem:[#allocation3 + $0x5e4] sm:$0xf]  ;;  %v3151_v18 = vld [vmem:[#allocation3 + $0x5f0] sm:$0xf0]  ;;  %v3026_v25 = vor.u32 %v3671_v12, %v3023_v13 }
  0x47   :  { %1344 = vmatpush.bf16.msrb.mxu2 %v2450_v35  ;;  %v92_v19 = vld [vmem:[%s4111_s0 + $0x20] sm:$0xff]  ;;  %v93_v23 = vld [vmem:[%s4111_s0 + $0x28] sm:$0xff]  ;;  %v2751_v27 = vld [vmem:[#allocation3 + $0x2d0] sm:$0xf0]  ;;  %v3154_v29 = vor.u32 %v3703_v16, %v3151_v18 }
  0x48   :  { %1357 = vmatpush.bf16.msrb.mxu3 %v2578_v39  ;;  %v3603_v26 = vld [vmem:[#allocation3 + $0x2c4] sm:$0xf]  ;;  %v2879_v30 = vld [vmem:[#allocation3 + $0x3d0] sm:$0xf0]  ;;  %v4023_v33 = vpack.c.bf16 %v92_v19, %v92_v19  ;;  %v4025_v36 = vpack.c.bf16 %v93_v23, %v93_v23 }
  0x49   :  { %1319 = vmatpush.bf16.msrb.mxu0 %v2942_v45  ;;  %v3635_v28 = vld [vmem:[#allocation3 + $0x3c4] sm:$0xf]  ;;  %v3007_v32 = vld [vmem:[#allocation3 + $0x4d0] sm:$0xf0]  ;;  %v2754_v37 = vor.u32 %v3603_v26, %v2751_v27 }
  0x4a   :  { %1332 = vmatpush.bf16.msrb.mxu1 %v3070_v46  ;;  %v3667_v31 = vld [vmem:[#allocation3 + $0x4c4] sm:$0xf]  ;;  %v3135_v35 = vld [vmem:[#allocation3 + $0x5d0] sm:$0xf0]  ;;  %v2882_v38 = vor.u32 %v3635_v28, %v2879_v30 }
  0x4b   :  { %1345 = vmatpush.bf16.msrb.mxu2 %v2434_v47  ;;  %v3699_v34 = vld [vmem:[#allocation3 + $0x5c4] sm:$0xf]  ;;  %v3010_v39 = vor.u32 %v3667_v31, %v3007_v32  ;;  %v2735_v41 = vld [vmem:[#allocation3 + $0x2b0] sm:$0xf0] }
  0x4c   :  { %1358 = vmatpush.bf16.msrb.mxu3 %v2562_v51  ;;  %v3599_v40 = vld [vmem:[#allocation3 + $0x2a4] sm:$0xf]  ;;  %v3138_v43 = vor.u32 %v3699_v34, %v3135_v35  ;;  %v2863_v44 = vld [vmem:[#allocation3 + $0x3b0] sm:$0xf0] }
  0x4d   :  { %1320 = vmatpush.bf16.msrb.mxu0 %v2926_v57  ;;  %v3631_v42 = vld [vmem:[#allocation3 + $0x3a4] sm:$0xf]  ;;  %v2991_v46 = vld [vmem:[#allocation3 + $0x4b0] sm:$0xf0]  ;;  %v2738_v49 = vor.u32 %v3599_v40, %v2735_v41 }
  0x4e   :  { %1333 = vmatpush.bf16.msrb.mxu1 %v3054_v60  ;;  %v3663_v45 = vld [vmem:[#allocation3 + $0x4a4] sm:$0xf]  ;;  %v3119_v48 = vld [vmem:[#allocation3 + $0x5b0] sm:$0xf0]  ;;  %v2866_v50 = vor.u32 %v3631_v42, %v2863_v44 }
  0x4f   :  { %1346 = vmatpush.bf16.msrb.mxu2 %v2418_v61  ;;  %v3695_v47 = vld [vmem:[#allocation3 + $0x5a4] sm:$0xf]  ;;  %v2994_v51 = vor.u32 %v3663_v45, %v2991_v46  ;;  %v2719_v53 = vld [vmem:[#allocation3 + $0x290] sm:$0xf0] }
  0x50   :  { %1359 = vmatpush.bf16.msrb.mxu3 %v2546_v1  ;;  %v3595_v52 = vld [vmem:[#allocation3 + $0x284] sm:$0xf]  ;;  %v3122_v55 = vor.u32 %v3695_v47, %v3119_v48  ;;  %v2847_v56 = vld [vmem:[#allocation3 + $0x390] sm:$0xf0] }
  0x51   :  { %1321 = vmatpush.bf16.msrb.mxu0 %v2910_v8  ;;  %v3627_v54 = vld [vmem:[#allocation3 + $0x384] sm:$0xf]  ;;  %v2975_v58 = vld [vmem:[#allocation3 + $0x490] sm:$0xf0]  ;;  %v2722_v61 = vor.u32 %v3595_v52, %v2719_v53  ;;  %v3546_v52 = vld [vmem:[#allocation3 + $0xf4] sm:$0xf0] }
  0x52   :  { %1334 = vmatpush.bf16.msrb.mxu1 %v3038_v14  ;;  %v3659_v57 = vld [vmem:[#allocation3 + $0x484] sm:$0xf]  ;;  %v3103_v60 = vld [vmem:[#allocation3 + $0x590] sm:$0xf0]  ;;  %v2850_v62 = vor.u32 %v3627_v54, %v2847_v56  ;;  %v2645_v53 = vld [vmem:[#allocation3 + $0x1e8] sm:$0xf] }
  0x53   :  { %1347 = vmatpush.bf16.msrb.mxu2 %v2402_v15  ;;  %v3691_v59 = vld [vmem:[#allocation3 + $0x584] sm:$0xf]  ;;  %v2978_v63 = vor.u32 %v3659_v57, %v2975_v58  ;;  %v2703_v1 = vld [vmem:[#allocation3 + $0x270] sm:$0xf0]  ;;  %v2773_v56 = vld [vmem:[#allocation3 + $0x2e8] sm:$0xf] }
  0x54   :  { %1360 = vmatpush.bf16.msrb.mxu3 %v2530_v21  ;;  %1322 = vmatmul.bf16.vlgmr.msrb.gmra.mxu0 %v4023_v33  ;;  %v3591_v0 = vld [vmem:[#allocation3 + $0x264] sm:$0xf]  ;;  %v3106_v3 = vor.u32 %v3691_v59, %v3103_v60  ;;  %v2831_v4 = vld [vmem:[#allocation3 + $0x370] sm:$0xf0]  ;;  %v3610_v57 = vld [vmem:[#allocation3 + $0x2f4] sm:$0xf0] }
  0x55   :  { %1366 = vmatpush.bf16.msra.mxu0 %v2770_v22  ;;  %1335 = vmatmul.bf16.vlgmr.msrb.gmra.mxu1 %v4025_v36  ;;  %v3623_v2 = vld [vmem:[#allocation3 + $0x364] sm:$0xf]  ;;  %v2959_v6 = vld [vmem:[#allocation3 + $0x470] sm:$0xf0]  ;;  %v2706_v11 = vor.u32 %v3591_v0, %v2703_v1  ;;  %v2901_v60 = vld [vmem:[#allocation3 + $0x3e8] sm:$0xf]  ;;  %v2774_v1 = vor.u32 %v3610_v57, %v2773_v56 }
  0x56   :  { %1379 = vmatpush.bf16.msra.mxu1 %v2898_v24  ;;  %1348 = vmatmul.bf16.vlgmr.msrb.gmra.mxu2 %v3999_v9  ;;  %v3655_v5 = vld [vmem:[#allocation3 + $0x464] sm:$0xf]  ;;  %v3087_v8 = vld [vmem:[#allocation3 + $0x570] sm:$0xf0]  ;;  %v2834_v12 = vor.u32 %v3623_v2, %v2831_v4  ;;  %v2501_v2 = vld [vmem:[#allocation3 + $0xc8] sm:$0xf] }
  0x57   :  { %1392 = vmatpush.bf16.msra.mxu2 %v3026_v25  ;;  %1361 = vmatmul.bf16.vlgmr.msrb.gmra.mxu3 %v4009_v17  ;;  %v3687_v7 = vld [vmem:[#allocation3 + $0x564] sm:$0xf]  ;;  %v2962_v13 = vor.u32 %v3655_v5, %v2959_v6  ;;  %v2687_v15 = vld [vmem:[#allocation3 + $0x250] sm:$0xf0]  ;;  %v2629_v4 = vld [vmem:[#allocation3 + $0x1c8] sm:$0xf] }
  0x58   :  { %1405 = vmatpush.bf16.msra.mxu3 %v3154_v29  ;;  %v3587_v14 = vld [vmem:[#allocation3 + $0x244] sm:$0xf]  ;;  %v3090_v18 = vor.u32 %v3687_v7, %v3087_v8  ;;  %v2815_v19 = vld [vmem:[#allocation3 + $0x350] sm:$0xf0]  ;;  %v3574_v6 = vld [vmem:[#allocation3 + $0x1d4] sm:$0xf0] }
  0x59   :  { %1367 = vmatpush.bf16.msra.mxu0 %v2754_v37  ;;  %v3619_v16 = vld [vmem:[#allocation3 + $0x344] sm:$0xf]  ;;  %v2943_v22 = vld [vmem:[#allocation3 + $0x450] sm:$0xf0]  ;;  %v2690_v25 = vor.u32 %v3587_v14, %v2687_v15  ;;  %v2757_v7 = vld [vmem:[#allocation3 + $0x2c8] sm:$0xf]  ;;  %v2630_v14 = vor.u32 %v3574_v6, %v2629_v4 }
  0x5a   :  { %1380 = vmatpush.bf16.msra.mxu1 %v2882_v38  ;;  %v3651_v21 = vld [vmem:[#allocation3 + $0x444] sm:$0xf]  ;;  %v3071_v24 = vld [vmem:[#allocation3 + $0x550] sm:$0xf0]  ;;  %v2818_v28 = vor.u32 %v3619_v16, %v2815_v19  ;;  %v3606_v8 = vld [vmem:[#allocation3 + $0x2d4] sm:$0xf0] }
  0x5b   :  { %1393 = vmatpush.bf16.msra.mxu2 %v3010_v39  ;;  %v3683_v23 = vld [vmem:[#allocation3 + $0x544] sm:$0xf]  ;;  %v2671_v27 = vld [vmem:[#allocation3 + $0x230] sm:$0xf0]  ;;  %v2946_v29 = vor.u32 %v3651_v21, %v2943_v22  ;;  %v2758_v15 = vor.u32 %v3606_v8, %v2757_v7  ;;  %v2485_v16 = vld [vmem:[#allocation3 + $0xa8] sm:$0xf] }
  0x5c   :  { %1406 = vmatpush.bf16.msra.mxu3 %v3138_v43  ;;  %v3583_v26 = vld [vmem:[#allocation3 + $0x224] sm:$0xf]  ;;  %v2799_v31 = vld [vmem:[#allocation3 + $0x330] sm:$0xf0]  ;;  %v3074_v34 = vor.u32 %v3683_v23, %v3071_v24  ;;  %v2613_v19 = vld [vmem:[#allocation3 + $0x1a8] sm:$0xf] }
  0x5d   :  { %1368 = vmatpush.bf16.msra.mxu0 %v2738_v49  ;;  %v3615_v30 = vld [vmem:[#allocation3 + $0x324] sm:$0xf]  ;;  %v2927_v35 = vld [vmem:[#allocation3 + $0x430] sm:$0xf0]  ;;  %v2674_v39 = vor.u32 %v3583_v26, %v2671_v27  ;;  %v3570_v22 = vld [vmem:[#allocation3 + $0x1b4] sm:$0xf0] }
  0x5e   :  { %1381 = vmatpush.bf16.msra.mxu1 %v2866_v50  ;;  %v3647_v32 = vld [vmem:[#allocation3 + $0x424] sm:$0xf]  ;;  %v3055_v38 = vld [vmem:[#allocation3 + $0x530] sm:$0xf0]  ;;  %v2802_v42 = vor.u32 %v3615_v30, %v2799_v31  ;;  %v2741_v23 = vld [vmem:[#allocation3 + $0x2a8] sm:$0xf] }
  0x5f   :  { %1394 = vmatpush.bf16.msra.mxu2 %v2994_v51  ;;  %v3679_v37 = vld [vmem:[#allocation3 + $0x524] sm:$0xf]  ;;  %v2655_v41 = vld [vmem:[#allocation3 + $0x210] sm:$0xf0]  ;;  %v2930_v43 = vor.u32 %v3647_v32, %v2927_v35  ;;  %v2517_v51 = vld [vmem:[#allocation3 + $0xe8] sm:$0xf] }
  0x60   :  { %1407 = vmatpush.bf16.msra.mxu3 %v3122_v55  ;;  %v3579_v40 = vld [vmem:[#allocation3 + $0x204] sm:$0xf]  ;;  %v2783_v45 = vld [vmem:[#allocation3 + $0x310] sm:$0xf0]  ;;  %v3058_v47 = vor.u32 %v3679_v37, %v3055_v38  ;;  %v3578_v55 = vld [vmem:[#allocation3 + $0x1f4] sm:$0xf0] }
  0x61   :  { %1369 = vmatpush.bf16.msra.mxu0 %v2722_v61  ;;  %v3611_v44 = vld [vmem:[#allocation3 + $0x304] sm:$0xf]  ;;  %v2911_v48 = vld [vmem:[#allocation3 + $0x410] sm:$0xf0]  ;;  %v2658_v54 = vor.u32 %v3579_v40, %v2655_v41  ;;  %v3642_v61 = vld [vmem:[#allocation3 + $0x3f4] sm:$0xf0]  ;;  %v2646_v0 = vor.u32 %v3578_v55, %v2645_v53 }
  0x62   :  { %1382 = vmatpush.bf16.msra.mxu1 %v2850_v62  ;;  %v3643_v46 = vld [vmem:[#allocation3 + $0x404] sm:$0xf]  ;;  %v3039_v50 = vld [vmem:[#allocation3 + $0x510] sm:$0xf0]  ;;  %v2786_v58 = vor.u32 %v3611_v44, %v2783_v45  ;;  %v2902_v5 = vor.u32 %v3642_v61, %v2901_v60  ;;  %v3602_v24 = vld [vmem:[#allocation3 + $0x2b4] sm:$0xf0] }
  0x63   :  { %1395 = vmatpush.bf16.msra.mxu2 %v2978_v63  ;;  %v3675_v49 = vld [vmem:[#allocation3 + $0x504] sm:$0xf]  ;;  %v2914_v59 = vor.u32 %v3643_v46, %v2911_v48  ;;  %v2518_v63 = vor.u32 %v3546_v52, %v2517_v51  ;;  %v3634_v26 = vld [vmem:[#allocation3 + $0x3b4] sm:$0xf0]  ;;  %v2469_v30 = vld [vmem:[#allocation3 + $0x88] sm:$0xf] }
  0x64   :  { %1408 = vmatpush.bf16.msra.mxu3 %v3106_v3  ;;  %v3042_v62 = vor.u32 %v3675_v49, %v3039_v50  ;;  %v3542_v3 = vld [vmem:[#allocation3 + $0xd4] sm:$0xf0]  ;;  %v2597_v32 = vld [vmem:[#allocation3 + $0x188] sm:$0xf] }
  0x65   :  { %1370 = vmatpush.bf16.msra.mxu0 %v2706_v11  ;;  %v2885_v11 = vld [vmem:[#allocation3 + $0x3c8] sm:$0xf]  ;;  %v3534_v31 = vld [vmem:[#allocation3 + $0x94] sm:$0xf0] }
  0x66   :  { %1383 = vmatpush.bf16.msra.mxu1 %v2834_v12  ;;  %v3638_v12 = vld [vmem:[#allocation3 + $0x3d4] sm:$0xf0]  ;;  %v2725_v37 = vld [vmem:[#allocation3 + $0x288] sm:$0xf]  ;;  %v2470_v41 = vor.u32 %v3534_v31, %v2469_v30 }
  0x67   :  { %1396 = vmatpush.bf16.msra.mxu2 %v2962_v13  ;;  %v2502_v13 = vor.u32 %v3542_v3, %v2501_v2  ;;  %v2886_v21 = vor.u32 %v3638_v12, %v2885_v11  ;;  %v3566_v35 = vld [vmem:[#allocation3 + $0x194] sm:$0xf0]  ;;  %v2453_v44 = vld [vmem:[#allocation3 + $0x68] sm:$0xf] }
  0x68   :  { %1409 = vmatpush.bf16.msra.mxu3 %v3090_v18  ;;  %v3538_v18 = vld [vmem:[#allocation3 + $0xb4] sm:$0xf0]  ;;  %v2581_v46 = vld [vmem:[#allocation3 + $0x168] sm:$0xf] }
  0x69   :  { %1371 = vmatpush.bf16.msra.mxu0 %v2690_v25  ;;  %v2869_v25 = vld [vmem:[#allocation3 + $0x3a8] sm:$0xf]  ;;  %v2486_v27 = vor.u32 %v3538_v18, %v2485_v16  ;;  %v3598_v38 = vld [vmem:[#allocation3 + $0x294] sm:$0xf0] }
  0x6a   :  { %1384 = vmatpush.bf16.msra.mxu1 %v2818_v28  ;;  %v2614_v28 = vor.u32 %v3570_v22, %v2613_v19  ;;  %v3630_v40 = vld [vmem:[#allocation3 + $0x394] sm:$0xf0]  ;;  %v2709_v49 = vld [vmem:[#allocation3 + $0x268] sm:$0xf] }
  0x6b   :  { %1397 = vmatpush.bf16.msra.mxu2 %v2946_v29  ;;  %v2742_v29 = vor.u32 %v3602_v24, %v2741_v23  ;;  %v3530_v45 = vld [vmem:[#allocation3 + $0x74] sm:$0xf0]  ;;  %v2837_v51 = vld [vmem:[#allocation3 + $0x368] sm:$0xf] }
  0x6c   :  { %1410 = vmatpush.bf16.msra.mxu3 %v3074_v34  ;;  %v2870_v34 = vor.u32 %v3634_v26, %v2869_v25  ;;  %v3562_v48 = vld [vmem:[#allocation3 + $0x174] sm:$0xf0]  ;;  %v2454_v53 = vor.u32 %v3530_v45, %v2453_v44  ;;  %v2437_v56 = vld [vmem:[#allocation3 + $0x48] sm:$0xf] }
  0x6d   :  { %1372 = vmatpush.bf16.msra.mxu0 %v2674_v39  ;;  %v2853_v39 = vld [vmem:[#allocation3 + $0x388] sm:$0xf]  ;;  %v3594_v50 = vld [vmem:[#allocation3 + $0x274] sm:$0xf0] }
  0x6e   :  { %1385 = vmatpush.bf16.msra.mxu1 %v2802_v42  ;;  %v2598_v42 = vor.u32 %v3566_v35, %v2597_v32  ;;  %v3626_v52 = vld [vmem:[#allocation3 + $0x374] sm:$0xf0]  ;;  %v2710_v55 = vor.u32 %v3594_v50, %v2709_v49  ;;  %v2693_v61 = vld [vmem:[#allocation3 + $0x248] sm:$0xf]  ;;  %v3544_v35 = vld [vmem:[#allocation3 + $0xec] sm:$0xf] }
  0x6f   :  { %1398 = vmatpush.bf16.msra.mxu2 %v2930_v43  ;;  %v2726_v43 = vor.u32 %v3598_v38, %v2725_v37  ;;  %v3526_v57 = vld [vmem:[#allocation3 + $0x54] sm:$0xf0]  ;;  %v2421_v4 = vld [vmem:[#allocation3 + $0x28] sm:$0xf]  ;;  %v2519_v37 = vld [vmem:[#allocation3 + $0xf8] sm:$0xf0] }
  0x70   :  { %1411 = vmatpush.bf16.msra.mxu3 %v3058_v47  ;;  %v2854_v47 = vor.u32 %v3630_v40, %v2853_v39  ;;  %v3558_v60 = vld [vmem:[#allocation3 + $0x154] sm:$0xf0]  ;;  %v2549_v6 = vld [vmem:[#allocation3 + $0x128] sm:$0xf]  ;;  %v3576_v40 = vld [vmem:[#allocation3 + $0x1ec] sm:$0xf]  ;;  %v2522_v45 = vor.u32 %v3544_v35, %v2519_v37 }
  0x71   :  { %1373 = vmatpush.bf16.msra.mxu0 %v2658_v54  ;;  %v2582_v54 = vor.u32 %v3562_v48, %v2581_v46  ;;  %v3554_v8 = vld [vmem:[#allocation3 + $0x134] sm:$0xf0]  ;;  %v2677_v11 = vld [vmem:[#allocation3 + $0x228] sm:$0xf] }
  0x72   :  { %1386 = vmatpush.bf16.msra.mxu1 %v2786_v58  ;;  %v2565_v58 = vld [vmem:[#allocation3 + $0x148] sm:$0xf]  ;;  %v3586_v12 = vld [vmem:[#allocation3 + $0x234] sm:$0xf0]  ;;  %v2550_v19 = vor.u32 %v3554_v8, %v2549_v6 }
  0x73   :  { %1399 = vmatpush.bf16.msra.mxu2 %v2914_v59  ;;  %v2838_v59 = vor.u32 %v3626_v52, %v2837_v51  ;;  %v2566_v2 = vor.u32 %v3558_v60, %v2565_v58  ;;  %v2405_v16 = vld [vmem:[#allocation3 + $0x8] sm:$0xf]  ;;  %v3518_v18 = vld [vmem:[#allocation3 + $0x14] sm:$0xf0]  ;;  %v3540_v51 = vld [vmem:[#allocation3 + $0xcc] sm:$0xf] }
  0x74   :  { %1412 = vmatpush.bf16.msra.mxu3 %v3042_v62  ;;  %1374 = vmatmul.bf16.vlgmr.msra.gmra.mxu0 %v4001_v10  ;;  %v3590_v62 = vld [vmem:[#allocation3 + $0x254] sm:$0xf0]  ;;  %v2533_v22 = vld [vmem:[#allocation3 + $0x108] sm:$0xf]  ;;  %v2406_v32 = vor.u32 %v3518_v18, %v2405_v16  ;;  %v2503_v52 = vld [vmem:[#allocation3 + $0xd8] sm:$0xf0] }
  0x75   :  { %1418 = vmatpush.bf16.msrb.mxu0 %v2518_v63  ;;  %1387 = vmatmul.bf16.vlgmr.msra.gmra.mxu1 %v4013_v20  ;;  %v2821_v63 = vld [vmem:[#allocation3 + $0x348] sm:$0xf]  ;;  %v2694_v3 = vor.u32 %v3590_v62, %v2693_v61  ;;  %v3550_v23 = vld [vmem:[#allocation3 + $0x114] sm:$0xf0]  ;;  %v2599_v16 = vld [vmem:[#allocation3 + $0x198] sm:$0xf0] }
  0x76   :  { %1431 = vmatpush.bf16.msrb.mxu1 %v2646_v0  ;;  %1400 = vmatmul.bf16.vlgmr.msra.gmra.mxu2 %v4023_v33  ;;  %v3622_v0 = vld [vmem:[#allocation3 + $0x354] sm:$0xf0]  ;;  %v2661_v24 = vld [vmem:[#allocation3 + $0x208] sm:$0xf]  ;;  %v2534_v38 = vor.u32 %v3550_v23, %v2533_v22 }
  0x77   :  { %1444 = vmatpush.bf16.msrb.mxu2 %v2774_v1  ;;  %1413 = vmatmul.bf16.vlgmr.msra.gmra.mxu3 %v4025_v36  ;;  %v2438_v1 = vor.u32 %v3526_v57, %v2437_v56  ;;  %v2822_v7 = vor.u32 %v3622_v0, %v2821_v63  ;;  %v3582_v26 = vld [vmem:[#allocation3 + $0x214] sm:$0xf0]  ;;  %v3157_v31 = vld [vmem:[#allocation3 + $0x5e8] sm:$0xf]  ;;  %v2506_v57 = vor.u32 %v3540_v51, %v2503_v52  ;;  %v3536_v63 = vld [vmem:[#allocation3 + $0xac] sm:$0xf] }
  0x78   :  { %1457 = vmatpush.bf16.msrb.mxu3 %v2902_v5  ;;  %v3522_v5 = vld [vmem:[#allocation3 + $0x34] sm:$0xf0]  ;;  %v2662_v39 = vor.u32 %v3582_v26, %v2661_v24  ;;  %v3013_v46 = vld [vmem:[#allocation3 + $0x4c8] sm:$0xf]  ;;  %v2487_v0 = vld [vmem:[#allocation3 + $0xb8] sm:$0xf0] }
  0x79   :  { %1419 = vmatpush.bf16.msrb.mxu0 %v2502_v13  ;;  %v2805_v13 = vld [vmem:[#allocation3 + $0x328] sm:$0xf]  ;;  %v3674_v30 = vld [vmem:[#allocation3 + $0x4f4] sm:$0xf0] }
  0x7a   :  { %1432 = vmatpush.bf16.msrb.mxu1 %v2630_v14  ;;  %v3618_v14 = vld [vmem:[#allocation3 + $0x334] sm:$0xf0]  ;;  %v3141_v48 = vld [vmem:[#allocation3 + $0x5c8] sm:$0xf] }
  0x7b   :  { %1445 = vmatpush.bf16.msrb.mxu2 %v2758_v15  ;;  %v2422_v15 = vor.u32 %v3522_v5, %v2421_v4  ;;  %v2806_v25 = vor.u32 %v3618_v14, %v2805_v13  ;;  %v3702_v50 = vld [vmem:[#allocation3 + $0x5d4] sm:$0xf0]  ;;  %v2997_v58 = vld [vmem:[#allocation3 + $0x4a8] sm:$0xf]  ;;  %v2490_v5 = vor.u32 %v3536_v63, %v2487_v0  ;;  %v3532_v13 = vld [vmem:[#allocation3 + $0x8c] sm:$0xf] }
  0x7c   :  { %1458 = vmatpush.bf16.msrb.mxu3 %v2886_v21  ;;  %v2678_v21 = vor.u32 %v3586_v12, %v2677_v11  ;;  %v3142_v56 = vor.u32 %v3702_v50, %v3141_v48  ;;  %v3125_v60 = vld [vmem:[#allocation3 + $0x5a8] sm:$0xf]  ;;  %v3698_v62 = vld [vmem:[#allocation3 + $0x5b4] sm:$0xf0]  ;;  %v2471_v14 = vld [vmem:[#allocation3 + $0x98] sm:$0xf0] }
  0x7d   :  { %1420 = vmatpush.bf16.msrb.mxu0 %v2486_v27  ;;  %v2789_v27 = vld [vmem:[#allocation3 + $0x308] sm:$0xf]  ;;  %v3126_v4 = vor.u32 %v3698_v62, %v3125_v60  ;;  %v3694_v12 = vld [vmem:[#allocation3 + $0x594] sm:$0xf0]  ;;  %v3516_v0 = vld [vmem:[#allocation3 + $0xc] sm:$0xf] }
  0x7e   :  { %1433 = vmatpush.bf16.msrb.mxu1 %v2614_v28  ;;  %v3614_v28 = vld [vmem:[#allocation3 + $0x314] sm:$0xf0]  ;;  %v2981_v6 = vld [vmem:[#allocation3 + $0x488] sm:$0xf] }
  0x7f   :  { %1446 = vmatpush.bf16.msrb.mxu2 %v2742_v29  ;;  %v3029_v29 = vld [vmem:[#allocation3 + $0x4e8] sm:$0xf]  ;;  %v3658_v23 = vld [vmem:[#allocation3 + $0x474] sm:$0xf0] }
  0x80   :  { %1459 = vmatpush.bf16.msrb.mxu3 %v2870_v34  ;;  %v3706_v34 = vld [vmem:[#allocation3 + $0x5f4] sm:$0xf0]  ;;  %v3109_v8 = vld [vmem:[#allocation3 + $0x588] sm:$0xf] }
  0x81   :  { %1421 = vmatpush.bf16.msrb.mxu0 %v2470_v41  ;;  %v2647_v41 = vld [vmem:[#allocation3 + $0x1f8] sm:$0xf0]  ;;  %v3158_v44 = vor.u32 %v3706_v34, %v3157_v31  ;;  %v2965_v22 = vld [vmem:[#allocation3 + $0x468] sm:$0xf]  ;;  %v3690_v26 = vld [vmem:[#allocation3 + $0x574] sm:$0xf0] }
  0x82   :  { %1434 = vmatpush.bf16.msrb.mxu1 %v2598_v42  ;;  %v2790_v42 = vor.u32 %v3614_v28, %v2789_v27  ;;  %v2650_v49 = vor.u32 %v3576_v40, %v2647_v41  ;;  %v3093_v24 = vld [vmem:[#allocation3 + $0x568] sm:$0xf]  ;;  %v3528_v27 = vld [vmem:[#allocation3 + $0x6c] sm:$0xf]  ;;  %v2455_v28 = vld [vmem:[#allocation3 + $0x78] sm:$0xf0]  ;;  %v2966_v31 = vor.u32 %v3658_v23, %v2965_v22 }
  0x83   :  { %1447 = vmatpush.bf16.msrb.mxu2 %v2726_v43  ;;  %v3030_v43 = vor.u32 %v3674_v30, %v3029_v29  ;;  %v3560_v29 = vld [vmem:[#allocation3 + $0x16c] sm:$0xf]  ;;  %v2583_v30 = vld [vmem:[#allocation3 + $0x178] sm:$0xf0]  ;;  %v2458_v34 = vor.u32 %v3528_v27, %v2455_v28  ;;  %v2949_v35 = vld [vmem:[#allocation3 + $0x448] sm:$0xf] }
  0x84   :  { %1460 = vmatpush.bf16.msrb.mxu3 %v2854_v47  ;;  %v3670_v47 = vld [vmem:[#allocation3 + $0x4d4] sm:$0xf0]  ;;  %v3524_v41 = vld [vmem:[#allocation3 + $0x4c] sm:$0xf]  ;;  %v2933_v48 = vld [vmem:[#allocation3 + $0x428] sm:$0xf] }
  0x85   :  { %1422 = vmatpush.bf16.msrb.mxu0 %v2454_v53  ;;  %v3572_v53 = vld [vmem:[#allocation3 + $0x1cc] sm:$0xf]  ;;  %v3654_v37 = vld [vmem:[#allocation3 + $0x454] sm:$0xf0]  ;;  %v3061_v50 = vld [vmem:[#allocation3 + $0x528] sm:$0xf] }
  0x86   :  { %1435 = vmatpush.bf16.msrb.mxu1 %v2582_v54  ;;  %v2631_v54 = vld [vmem:[#allocation3 + $0x1d8] sm:$0xf0]  ;;  %v3686_v40 = vld [vmem:[#allocation3 + $0x554] sm:$0xf0]  ;;  %v3045_v62 = vld [vmem:[#allocation3 + $0x508] sm:$0xf] }
  0x87   :  { %1448 = vmatpush.bf16.msrb.mxu2 %v2710_v55  ;;  %v3014_v55 = vor.u32 %v3670_v47, %v3013_v46  ;;  %v2634_v61 = vor.u32 %v3572_v53, %v2631_v54  ;;  %v3682_v52 = vld [vmem:[#allocation3 + $0x534] sm:$0xf0]  ;;  %v3520_v53 = vld [vmem:[#allocation3 + $0x2c] sm:$0xf]  ;;  %v2423_v54 = vld [vmem:[#allocation3 + $0x38] sm:$0xf0] }
  0x88   :  { %1461 = vmatpush.bf16.msrb.mxu3 %v2838_v59  ;;  %v3666_v59 = vld [vmem:[#allocation3 + $0x4b4] sm:$0xf0]  ;;  %v3062_v60 = vor.u32 %v3682_v52, %v3061_v50  ;;  %v2887_v28 = vld [vmem:[#allocation3 + $0x3d8] sm:$0xf0]  ;;  %v3596_v50 = vld [vmem:[#allocation3 + $0x28c] sm:$0xf] }
  0x89   :  { %1423 = vmatpush.bf16.msrb.mxu0 %v2438_v1  ;;  %v3568_v1 = vld [vmem:[#allocation3 + $0x1ac] sm:$0xf]  ;;  %v3678_v63 = vld [vmem:[#allocation3 + $0x514] sm:$0xf0] }
  0x8a   :  { %1436 = vmatpush.bf16.msrb.mxu1 %v2566_v2  ;;  %v2615_v2 = vld [vmem:[#allocation3 + $0x1b8] sm:$0xf0]  ;;  %v3628_v52 = vld [vmem:[#allocation3 + $0x38c] sm:$0xf] }
  0x8b   :  { %1449 = vmatpush.bf16.msrb.mxu2 %v2694_v3  ;;  %v2998_v3 = vor.u32 %v3666_v59, %v2997_v58  ;;  %v2618_v11 = vor.u32 %v3568_v1, %v2615_v2  ;;  %v2917_v58 = vld [vmem:[#allocation3 + $0x408] sm:$0xf]  ;;  %v3646_v59 = vld [vmem:[#allocation3 + $0x414] sm:$0xf0]  ;;  %v2407_v2 = vld [vmem:[#allocation3 + $0x18] sm:$0xf0] }
  0x8c   :  { %1462 = vmatpush.bf16.msrb.mxu3 %v2822_v7  ;;  %v3662_v7 = vld [vmem:[#allocation3 + $0x494] sm:$0xf0] }
  0x8d   :  { %1424 = vmatpush.bf16.msrb.mxu0 %v2422_v15  ;;  %v3564_v15 = vld [vmem:[#allocation3 + $0x18c] sm:$0xf]  ;;  %v2982_v18 = vor.u32 %v3662_v7, %v2981_v6  ;;  %v2775_v6 = vld [vmem:[#allocation3 + $0x2f8] sm:$0xf0] }
  0x8e   :  { %1437 = vmatpush.bf16.msrb.mxu1 %v2550_v19  ;;  %v3110_v19 = vor.u32 %v3694_v12, %v3109_v8  ;;  %v3640_v7 = vld [vmem:[#allocation3 + $0x3ec] sm:$0xf]  ;;  %v2918_v8 = vor.u32 %v3646_v59, %v2917_v58 }
  0x8f   :  { %1450 = vmatpush.bf16.msrb.mxu2 %v2678_v21  ;;  %v2474_v21 = vor.u32 %v3532_v13, %v2471_v14  ;;  %v3672_v12 = vld [vmem:[#allocation3 + $0x4ec] sm:$0xf]  ;;  %v3031_v13 = vld [vmem:[#allocation3 + $0x4f8] sm:$0xf0]  ;;  %v3046_v14 = vor.u32 %v3678_v63, %v3045_v62 }
  0x90   :  { %1463 = vmatpush.bf16.msrb.mxu3 %v2806_v25  ;;  %v2602_v25 = vor.u32 %v3564_v15, %v2599_v16  ;;  %v2410_v15 = vor.u32 %v3516_v0, %v2407_v2  ;;  %v3704_v16 = vld [vmem:[#allocation3 + $0x5ec] sm:$0xf]  ;;  %v3034_v23 = vor.u32 %v3672_v12, %v3031_v13  ;;  %v2839_v0 = vld [vmem:[#allocation3 + $0x378] sm:$0xf0] }
  0x91   :  { %1425 = vmatpush.bf16.msrb.mxu0 %v2406_v32  ;;  %v3094_v32 = vor.u32 %v3690_v26, %v3093_v24  ;;  %v3604_v24 = vld [vmem:[#allocation3 + $0x2cc] sm:$0xf]  ;;  %v2967_v2 = vld [vmem:[#allocation3 + $0x478] sm:$0xf0] }
  0x92   :  { %1438 = vmatpush.bf16.msrb.mxu1 %v2534_v38  ;;  %v3077_v38 = vld [vmem:[#allocation3 + $0x548] sm:$0xf]  ;;  %v3636_v26 = vld [vmem:[#allocation3 + $0x3cc] sm:$0xf]  ;;  %v2695_v12 = vld [vmem:[#allocation3 + $0x258] sm:$0xf0] }
  0x93   :  { %1451 = vmatpush.bf16.msrb.mxu2 %v2662_v39  ;;  %v2586_v39 = vor.u32 %v3560_v29, %v2583_v30  ;;  %v3078_v46 = vor.u32 %v3686_v40, %v3077_v38  ;;  %v3668_v29 = vld [vmem:[#allocation3 + $0x4cc] sm:$0xf]  ;;  %v3015_v30 = vld [vmem:[#allocation3 + $0x4d8] sm:$0xf0] }
  0x94   :  { %1464 = vmatpush.bf16.msrb.mxu3 %v2790_v42  ;;  %1426 = vmatmul.bf16.vlgmr.msrb.gmra.mxu0 %v3999_v9  ;;  %v2439_v42 = vld [vmem:[#allocation3 + $0x58] sm:$0xf0]  ;;  %v3600_v38 = vld [vmem:[#allocation3 + $0x2ac] sm:$0xf] }
  0x95   :  { %1470 = vmatpush.bf16.msra.mxu0 %v3030_v43  ;;  %1439 = vmatmul.bf16.vlgmr.msrb.gmra.mxu1 %v4009_v17  ;;  %v3556_v43 = vld [vmem:[#allocation3 + $0x14c] sm:$0xf]  ;;  %v2442_v47 = vor.u32 %v3524_v41, %v2439_v42  ;;  %v2871_v42 = vld [vmem:[#allocation3 + $0x3b8] sm:$0xf0] }
  0x96   :  { %1483 = vmatpush.bf16.msra.mxu1 %v3158_v44  ;;  %1452 = vmatmul.bf16.vlgmr.msrb.gmra.mxu2 %v4001_v10  ;;  %v2567_v44 = vld [vmem:[#allocation3 + $0x158] sm:$0xf0]  ;;  %v3632_v40 = vld [vmem:[#allocation3 + $0x3ac] sm:$0xf] }
  0x97   :  { %1496 = vmatpush.bf16.msra.mxu2 %v2522_v45  ;;  %1465 = vmatmul.bf16.vlgmr.msrb.gmra.mxu3 %v4013_v20  ;;  %v2950_v45 = vor.u32 %v3654_v37, %v2949_v35  ;;  %v2570_v51 = vor.u32 %v3556_v43, %v2567_v44  ;;  %v2890_v35 = vor.u32 %v3636_v26, %v2887_v28  ;;  %v3664_v43 = vld [vmem:[#allocation3 + $0x4ac] sm:$0xf]  ;;  %v2999_v44 = vld [vmem:[#allocation3 + $0x4b8] sm:$0xf0] }
  0x98   :  { %1509 = vmatpush.bf16.msra.mxu3 %v2650_v49  ;;  %v3650_v49 = vld [vmem:[#allocation3 + $0x434] sm:$0xf0]  ;;  %v3018_v37 = vor.u32 %v3668_v29, %v3015_v30  ;;  %v3624_v62 = vld [vmem:[#allocation3 + $0x36c] sm:$0xf]  ;;  %v2807_v30 = vld [vmem:[#allocation3 + $0x338] sm:$0xf0] }
  0x99   :  { %1471 = vmatpush.bf16.msra.mxu0 %v3014_v55  ;;  %v3552_v55 = vld [vmem:[#allocation3 + $0x12c] sm:$0xf] }
  0x9a   :  { %1484 = vmatpush.bf16.msra.mxu1 %v3142_v56  ;;  %v2551_v56 = vld [vmem:[#allocation3 + $0x138] sm:$0xf0]  ;;  %v3620_v13 = vld [vmem:[#allocation3 + $0x34c] sm:$0xf] }
  0x9b   :  { %1497 = vmatpush.bf16.msra.mxu2 %v2506_v57  ;;  %v2934_v57 = vor.u32 %v3650_v49, %v2933_v48  ;;  %v2554_v1 = vor.u32 %v3552_v55, %v2551_v56  ;;  %v2874_v48 = vor.u32 %v3632_v40, %v2871_v42  ;;  %v3002_v49 = vor.u32 %v3664_v43, %v2999_v44  ;;  %v3660_v55 = vld [vmem:[#allocation3 + $0x48c] sm:$0xf]  ;;  %v2983_v56 = vld [vmem:[#allocation3 + $0x498] sm:$0xf0] }
  0x9c   :  { %1510 = vmatpush.bf16.msra.mxu3 %v2634_v61  ;;  %v2426_v61 = vor.u32 %v3520_v53, %v2423_v54  ;;  %v2855_v54 = vld [vmem:[#allocation3 + $0x398] sm:$0xf0]  ;;  %v3584_v26 = vld [vmem:[#allocation3 + $0x22c] sm:$0xf] }
  0x9d   :  { %1472 = vmatpush.bf16.msra.mxu0 %v2998_v3  ;;  %v3548_v3 = vld [vmem:[#allocation3 + $0x10c] sm:$0xf]  ;;  %v2858_v59 = vor.u32 %v3628_v52, %v2855_v54  ;;  %v2663_v40 = vld [vmem:[#allocation3 + $0x218] sm:$0xf0]  ;;  %v3221_v54 = vld [vmem:[#allocation6 + $0x70] sm:$0xf] }
  0x9e   :  { %1485 = vmatpush.bf16.msra.mxu1 %v3126_v4  ;;  %v2535_v4 = vld [vmem:[#allocation3 + $0x118] sm:$0xf0]  ;;  %v3616_v28 = vld [vmem:[#allocation3 + $0x32c] sm:$0xf] }
  0x9f   :  { %1498 = vmatpush.bf16.msra.mxu2 %v2490_v5  ;;  %v3608_v5 = vld [vmem:[#allocation3 + $0x2ec] sm:$0xf]  ;;  %v2810_v43 = vor.u32 %v3616_v28, %v2807_v30  ;;  %v3047_v52 = vld [vmem:[#allocation3 + $0x518] sm:$0xf0]  ;;  %v3730_v28 = vld [vmem:[#allocation6 + $0xb4] sm:$0xf0] }
  0xa0   :  { %1511 = vmatpush.bf16.msra.mxu3 %v2618_v11  ;;  %v2903_v11 = vld [vmem:[#allocation3 + $0x3f8] sm:$0xf0] }
  0xa1   :  { %1473 = vmatpush.bf16.msra.mxu0 %v2982_v18  ;;  %v3159_v18 = vld [vmem:[#allocation3 + $0x5f8] sm:$0xf0]  ;;  %v2906_v22 = vor.u32 %v3640_v7, %v2903_v11  ;;  %v2842_v7 = vor.u32 %v3624_v62, %v2839_v0  ;;  %v3588_v11 = vld [vmem:[#allocation3 + $0x24c] sm:$0xf]  ;;  %v3213_v0 = vld [vmem:[#allocation6 + $0x60] sm:$0xf] }
  0xa2   :  { %1486 = vmatpush.bf16.msra.mxu1 %v3110_v19  ;;  %v2538_v19 = vor.u32 %v3548_v3, %v2535_v4  ;;  %v3162_v27 = vor.u32 %v3704_v16, %v3159_v18  ;;  %v3688_v3 = vld [vmem:[#allocation3 + $0x56c] sm:$0xf]  ;;  %v3095_v4 = vld [vmem:[#allocation3 + $0x578] sm:$0xf0] }
  0xa3   :  { %1499 = vmatpush.bf16.msra.mxu2 %v2474_v21  ;;  %v2778_v21 = vor.u32 %v3608_v5, %v2775_v6  ;;  %v2823_v16 = vld [vmem:[#allocation3 + $0x358] sm:$0xf0]  ;;  %v3652_v18 = vld [vmem:[#allocation3 + $0x44c] sm:$0xf] }
  0xa4   :  { %1512 = vmatpush.bf16.msra.mxu3 %v2602_v25  ;;  %v2759_v25 = vld [vmem:[#allocation3 + $0x2d8] sm:$0xf0] }
  0xa5   :  { %1474 = vmatpush.bf16.msra.mxu0 %v2966_v31  ;;  %v3700_v31 = vld [vmem:[#allocation3 + $0x5cc] sm:$0xf] }
  0xa6   :  { %1487 = vmatpush.bf16.msra.mxu1 %v3094_v32  ;;  %v3143_v32 = vld [vmem:[#allocation3 + $0x5d8] sm:$0xf0] }
  0xa7   :  { %1500 = vmatpush.bf16.msra.mxu2 %v2458_v34  ;;  %v2762_v34 = vor.u32 %v3604_v24, %v2759_v25  ;;  %v3146_v41 = vor.u32 %v3700_v31, %v3143_v32  ;;  %v2826_v24 = vor.u32 %v3620_v13, %v2823_v16  ;;  %v3648_v31 = vld [vmem:[#allocation3 + $0x42c] sm:$0xf]  ;;  %v2935_v32 = vld [vmem:[#allocation3 + $0x438] sm:$0xf0]  ;;  %v3269_v13 = vld [vmem:[#allocation6 + $0xd0] sm:$0xf] }
  0xa8   :  { %1513 = vmatpush.bf16.msra.mxu3 %v2586_v39  ;;  %v2743_v39 = vld [vmem:[#allocation3 + $0x2b8] sm:$0xf0]  ;;  %v2938_v44 = vor.u32 %v3648_v31, %v2935_v32  ;;  %v3181_v31 = vld [vmem:[#allocation6 + $0x20] sm:$0xf]  ;;  %v3712_v32 = vld [vmem:[#allocation6 + $0x24] sm:$0xf0] }
  0xa9   :  { %1475 = vmatpush.bf16.msra.mxu0 %v2950_v45  ;;  %v3696_v45 = vld [vmem:[#allocation3 + $0x5ac] sm:$0xf] }
  0xaa   :  { %1488 = vmatpush.bf16.msra.mxu1 %v3078_v46  ;;  %v3127_v46 = vld [vmem:[#allocation3 + $0x5b8] sm:$0xf0] }
  0xab   :  { %1501 = vmatpush.bf16.msra.mxu2 %v2442_v47  ;;  %v2746_v47 = vor.u32 %v3600_v38, %v2743_v39  ;;  %v3130_v53 = vor.u32 %v3696_v45, %v3127_v46  ;;  %v3580_v39 = vld [vmem:[#allocation3 + $0x20c] sm:$0xf]  ;;  %v2791_v46 = vld [vmem:[#allocation3 + $0x318] sm:$0xf0] }
  0xac   :  { %1514 = vmatpush.bf16.msra.mxu3 %v2570_v51  ;;  %v2727_v51 = vld [vmem:[#allocation3 + $0x298] sm:$0xf0]  ;;  %v3612_v45 = vld [vmem:[#allocation3 + $0x30c] sm:$0xf] }
  0xad   :  { %1476 = vmatpush.bf16.msra.mxu0 %v2934_v57  ;;  %v3692_v57 = vld [vmem:[#allocation3 + $0x58c] sm:$0xf]  ;;  %v2730_v58 = vor.u32 %v3596_v50, %v2727_v51  ;;  %v2919_v50 = vld [vmem:[#allocation3 + $0x418] sm:$0xf0] }
  0xae   :  { %1489 = vmatpush.bf16.msra.mxu1 %v3062_v60  ;;  %v3592_v60 = vld [vmem:[#allocation3 + $0x26c] sm:$0xf] }
  0xaf   :  { %1502 = vmatpush.bf16.msra.mxu2 %v2426_v61  ;;  %v2711_v61 = vld [vmem:[#allocation3 + $0x278] sm:$0xf0]  ;;  %v3676_v51 = vld [vmem:[#allocation3 + $0x50c] sm:$0xf] }
  0xb0   :  { %1515 = vmatpush.bf16.msra.mxu3 %v2554_v1  ;;  %v3656_v1 = vld [vmem:[#allocation3 + $0x46c] sm:$0xf]  ;;  %v2714_v5 = vor.u32 %v3592_v60, %v2711_v61  ;;  %v3050_v60 = vor.u32 %v3676_v51, %v3047_v52  ;;  %v3165_v51 = vld [vmem:[#allocation6] sm:$0xf] }
  0xb1   :  { %1477 = vmatpush.bf16.msra.mxu0 %v2918_v8  ;;  %v2970_v8 = vor.u32 %v3656_v1, %v2967_v2  ;;  %v3720_v1 = vld [vmem:[#allocation6 + $0x64] sm:$0xf0] }
  0xb2   :  { %1490 = vmatpush.bf16.msra.mxu1 %v3046_v14  ;;  %v4045_v14 = vpop.f32.mrf.mxu1 }
  0xb3   :  { %1503 = vmatpush.bf16.msra.mxu2 %v2410_v15  ;;  %v3098_v15 = vor.u32 %v3688_v3, %v3095_v4  ;;  %v3277_v3 = vld [vmem:[#allocation6 + $0xe0] sm:$0xf]  ;;  %v3736_v4 = vld [vmem:[#allocation6 + $0xe4] sm:$0xf0] }
  0xb4   :  { %1516 = vmatpush.bf16.msra.mxu3 %v2538_v19  ;;  %1478 = vmatmul.bf16.vlgmr.msra.gmra.mxu0 %v4023_v33  ;;  %v2951_v19 = vld [vmem:[#allocation3 + $0x458] sm:$0xf0] }
  0xb5   :  { %1522 = vmatpush.bf16.msrb.mxu0 %v2778_v21  ;;  %1491 = vmatmul.bf16.vlgmr.msra.gmra.mxu1 %v4025_v36  ;;  %v3684_v21 = vld [vmem:[#allocation3 + $0x54c] sm:$0xf]  ;;  %v2954_v25 = vor.u32 %v3652_v18, %v2951_v19  ;;  %v3197_v19 = vld [vmem:[#allocation6 + $0x40] sm:$0xf] }
  0xb6   :  { %1535 = vmatpush.bf16.msrb.mxu1 %v2906_v22  ;;  %1504 = vmatmul.bf16.vlgmr.msra.gmra.mxu2 %v3999_v9  ;;  %v3111_v9 = vld [vmem:[#allocation3 + $0x598] sm:$0xf0] }
  0xb7   :  { %1548 = vmatpush.bf16.msrb.mxu2 %v3034_v23  ;;  %1517 = vmatmul.bf16.vlgmr.msra.gmra.mxu3 %v4009_v17  ;;  %v2986_v17 = vor.u32 %v3660_v55, %v2983_v56  ;;  %v3114_v63 = vor.u32 %v3692_v57, %v3111_v9  ;;  %v3079_v22 = vld [vmem:[#allocation3 + $0x558] sm:$0xf0]  ;;  %v2698_v23 = vor.u32 %v3588_v11, %v2695_v12  ;;  %v3722_v55 = vld [vmem:[#allocation6 + $0x74] sm:$0xf0]  ;;  %v3285_v9 = vld [vmem:[#allocation6 + $0xf0] sm:$0xf] }
  0xb8   :  { %1561 = vmatpush.bf16.msrb.mxu3 %v3162_v27  ;;  %v2679_v27 = vld [vmem:[#allocation3 + $0x238] sm:$0xf0]  ;;  %v3082_v29 = vor.u32 %v3684_v21, %v3079_v22  ;;  %v2666_v57 = vor.u32 %v3580_v39, %v2663_v40  ;;  %v3222_v61 = vor.u32 %v3722_v55, %v3221_v54  ;;  %v3205_v11 = vld [vmem:[#allocation6 + $0x50] sm:$0xf]  ;;  %v3718_v12 = vld [vmem:[#allocation6 + $0x54] sm:$0xf0] }
  0xb9   :  { %1523 = vmatpush.bf16.msrb.mxu0 %v2762_v34  ;;  %v4043_v6 = vpop.f32.mrf.mxu0  ;;  %v2682_v38 = vor.u32 %v3584_v26, %v2679_v27  ;;  %v3206_v16 = vor.u32 %v3718_v12, %v3205_v11  ;;  %v3261_v21 = vld [vmem:[#allocation6 + $0xc0] sm:$0xf]  ;;  %v3732_v22 = vld [vmem:[#allocation6 + $0xc4] sm:$0xf0]  ;;  %v3714_v26 = vld [vmem:[#allocation6 + $0x34] sm:$0xf0] }
  0xba   :  { %1536 = vmatpush.bf16.msrb.mxu1 %v2890_v35  ;;  %v3680_v35 = vld [vmem:[#allocation3 + $0x52c] sm:$0xf]  ;;  %v3262_v27 = vor.u32 %v3732_v22, %v3261_v21  ;;  %v3721_v54 = vld [vmem:[#allocation6 + $0x74] sm:$0xf]  ;;  %v3271_v22 = vld [vmem:[#allocation6 + $0xd8] sm:$0xf0] }
  0xbb   :  { %1549 = vmatpush.bf16.msrb.mxu2 %v3018_v37  ;;  %v3063_v37 = vld [vmem:[#allocation3 + $0x538] sm:$0xf0]  ;;  %v3733_v21 = vld [vmem:[#allocation6 + $0xd4] sm:$0xf] }
  0xbc   :  { %1562 = vmatpush.bf16.msrb.mxu3 %v3146_v41  ;;  %v4052_v41 = vld [vmem:[%s4113_s2] sm:$0xf] }
  0xbd   :  { %1524 = vmatpush.bf16.msrb.mxu0 %v2746_v47  ;;  %v3644_v47 = vld [vmem:[#allocation3 + $0x40c] sm:$0xf]  ;;  %v294_v56 = vperm.slane %v4052_v41, 0 }
  0xbe   :  { %1537 = vmatpush.bf16.msrb.mxu1 %v2874_v48  ;;  %v1286_v48 = vpop.f32.mrf.mxu1 }
  0xbf   :  { %1550 = vmatpush.bf16.msrb.mxu2 %v3002_v49  ;;  %v3066_v49 = vor.u32 %v3680_v35, %v3063_v37  ;;  %v3245_v37 = vld [vmem:[#allocation6 + $0xa0] sm:$0xf]  ;;  %v3237_v48 = vld [vmem:[#allocation6 + $0x90] sm:$0xf] }
  0xc0   :  { %1563 = vmatpush.bf16.msrb.mxu3 %v3130_v53  ;;  %v4047_v34 = vpop.f32.mrf.mxu2  ;;  %v1310_v53 = vpop.f32.mrf.mxu3 }
  0xc1   :  { %1525 = vmatpush.bf16.msrb.mxu0 %v2730_v58  ;;  %v1273_v42 = vpop.f32.mrf.mxu0  ;;  %v3738_v58 = vld [vmem:[#allocation6 + $0xf4] sm:$0xf0] }
  0xc2   :  { %1538 = vmatpush.bf16.msrb.mxu1 %v2858_v59  ;;  %v2794_v59 = vor.u32 %v3612_v45, %v2791_v46  ;;  %v3286_v2 = vor.u32 %v3738_v58, %v3285_v9  ;;  %v3182_v42 = vor.u32 %v3712_v32, %v3181_v31  ;;  %v3173_v45 = vld [vmem:[#allocation6 + $0x10] sm:$0xf]  ;;  %v3710_v46 = vld [vmem:[#allocation6 + $0x14] sm:$0xf0]  ;;  %v3229_v9 = vld [vmem:[#allocation6 + $0x80] sm:$0xf] }
  0xc3   :  { %1551 = vmatpush.bf16.msrb.mxu2 %v2986_v17  ;;  %v2922_v17 = vor.u32 %v3644_v47, %v2919_v50  ;;  %v3174_v50 = vor.u32 %v3710_v46, %v3173_v45  ;;  %v3724_v58 = vld [vmem:[#allocation6 + $0x84] sm:$0xf0]  ;;  %v3713_v32 = vld [vmem:[#allocation6 + $0x34] sm:$0xf]  ;;  %v3255_v45 = vld [vmem:[#allocation6 + $0xb8] sm:$0xf0] }
  0xc4   :  { %1564 = vmatpush.bf16.msrb.mxu3 %v3114_v63  ;;  %v1272_v63 = vadd.f32 %v4043_v6, %v294_v56  ;;  %v3278_v6 = vor.u32 %v3736_v4, %v3277_v3  ;;  %v3223_v56 = vld [vmem:[#allocation6 + $0x78] sm:$0xf0]  ;;  %v295_v4 = vperm.slane %v4052_v41, 1 }
  0xc5   :  { %1526 = vmatpush.bf16.msrb.mxu0 %v2714_v5  ;;  %v3214_v5 = vor.u32 %v3720_v1, %v3213_v0  ;;  %v3230_v0 = vor.u32 %v3724_v58, %v3229_v9  ;;  %v3719_v1 = vld [vmem:[#allocation6 + $0x64] sm:$0xf] }
  0xc6   :  { %1539 = vmatpush.bf16.msrb.mxu1 %v2842_v7 }
  0xc7   :  { %1552 = vmatpush.bf16.msrb.mxu2 %v2970_v8  ;;  %v1285_v8 = vadd.f32 %v4045_v14, %v1272_v63  ;;  %v3226_v63 = vor.u32 %v3721_v54, %v3223_v56  ;;  %v3727_v54 = vld [vmem:[#allocation6 + $0xa4] sm:$0xf] }
  0xc8   :  { %1565 = vmatpush.bf16.msrb.mxu3 %v3098_v15  ;;  %v1299_v62 = vpop.f32.mrf.mxu2  ;;  %v1312_v7 = vpop.f32.mrf.mxu3  ;;  %v3734_v15 = vld [vmem:[#allocation6 + $0xd4] sm:$0xf0] }
  0xc9   :  { %1527 = vmatpush.bf16.msrb.mxu0 %v2698_v23  ;;  %v1298_v18 = vadd.f32 %v4047_v34, %v1285_v8  ;;  %v3270_v14 = vor.u32 %v3734_v15, %v3269_v13  ;;  %v3279_v7 = vld [vmem:[#allocation6 + $0xe8] sm:$0xf0]  ;;  %v3349_v8 = vld [vmem:[#allocation6 + $0x170] sm:$0xf]  ;;  %v3754_v13 = vld [vmem:[#allocation6 + $0x174] sm:$0xf0] }
  0xca   :  { %1540 = vmatpush.bf16.msrb.mxu1 %v2826_v24  ;;  %v3207_v15 = vld [vmem:[#allocation6 + $0x58] sm:$0xf0] }
  0xcb   :  { %1553 = vmatpush.bf16.msrb.mxu2 %v2954_v25  ;;  %v1311_v25 = vadd.f32 %v1310_v53, %v1298_v18  ;;  %v3708_v53 = vld [vmem:[#allocation6 + $0x4] sm:$0xf0]  ;;  %v3350_v18 = vor.u32 %v3754_v13, %v3349_v8  ;;  %v3301_v8 = vld [vmem:[#allocation6 + $0x110] sm:$0xf]  ;;  %v3707_v13 = vld [vmem:[#allocation6 + $0x4] sm:$0xf] }
  0xcc   :  { %1566 = vmatpush.bf16.msrb.mxu3 %v3082_v29 }
  0xcd   :  { %1528 = vmatpush.bf16.msrb.mxu0 %v2682_v38  ;;  %v3728_v38 = vld [vmem:[#allocation6 + $0xa4] sm:$0xf0] }
  0xce   :  { %1541 = vmatpush.bf16.msrb.mxu1 %v2810_v43  ;;  %v3246_v47 = vor.u32 %v3728_v38, %v3245_v37  ;;  %v3325_v38 = vld [vmem:[#allocation6 + $0x140] sm:$0xf] }
  0xcf   :  { %1554 = vmatpush.bf16.msrb.mxu2 %v2938_v44 }
  0xd0   :  { %1567 = vmatpush.bf16.msrb.mxu3 %v3066_v49  ;;  %v3726_v49 = vld [vmem:[#allocation6 + $0x94] sm:$0xf0] }
  0xd1   :  { %1529 = vmatpush.bf16.msrb.mxu0 %v2666_v57  ;;  %v1323_v23 = vpop.f32.mrf.mxu0  ;;  %v3238_v55 = vor.u32 %v3726_v49, %v3237_v48  ;;  %v3317_v48 = vld [vmem:[#allocation6 + $0x130] sm:$0xf]  ;;  %v3746_v49 = vld [vmem:[#allocation6 + $0x134] sm:$0xf0] }
  0xd2   :  { %1542 = vmatpush.bf16.msrb.mxu1 %v2794_v59  ;;  %v1324_v30 = vadd.f32 %v1323_v23, %v1311_v25  ;;  %v3750_v25 = vld [vmem:[#allocation6 + $0x154] sm:$0xf0]  ;;  %v3318_v9 = vor.u32 %v3746_v49, %v3317_v48  ;;  %v3397_v48 = vld [vmem:[#allocation6 + $0x1d0] sm:$0xf] }
  0xd3   :  { %1555 = vmatpush.bf16.msrb.mxu2 %v2922_v17  ;;  %v3737_v17 = vld [vmem:[#allocation6 + $0xf4] sm:$0xf]  ;;  %v3766_v49 = vld [vmem:[#allocation6 + $0x1d4] sm:$0xf0] }
  0xd4   :  { %1568 = vmatpush.bf16.msrb.mxu3 %v3050_v60  ;;  %1530 = vmatmul.bf16.vlgmr.msrb.gmra.mxu0 %v4001_v10  ;;  %v3716_v10 = vld [vmem:[#allocation6 + $0x44] sm:$0xf0]  ;;  %v3287_v60 = vld [vmem:[#allocation6 + $0xf8] sm:$0xf0] }
  0xd5   :  { %1976 = vmatpush.bf16.msra.mxu0 %v3222_v61  ;;  %1543 = vmatmul.bf16.vlgmr.msrb.gmra.mxu1 %v4013_v20  ;;  %v3198_v24 = vor.u32 %v3716_v10, %v3197_v19  ;;  %v1336_v20 = vpop.f32.mrf.mxu1  ;;  %v3166_v61 = vor.u32 %v3708_v53, %v3165_v51  ;;  %v3290_v3 = vor.u32 %v3737_v17, %v3287_v60  ;;  %v3341_v19 = vld [vmem:[#allocation6 + $0x160] sm:$0xf]  ;;  %v3752_v10 = vld [vmem:[#allocation6 + $0x164] sm:$0xf0]  ;;  %v3183_v51 = vld [vmem:[#allocation6 + $0x28] sm:$0xf0] }
  0xd6   :  { %1989 = vmatpush.bf16.msra.mxu1 %v3286_v2  ;;  %1556 = vmatmul.bf16.vlgmr.msrb.gmra.mxu2 %v4023_v33  ;;  %v3189_v33 = vld [vmem:[#allocation6 + $0x30] sm:$0xf]  ;;  %v1337_v44 = vadd.f32 %v1336_v20, %v1324_v30  ;;  %v3215_v2 = vld [vmem:[#allocation6 + $0x68] sm:$0xf0]  ;;  %v3342_v23 = vor.u32 %v3752_v10, %v3341_v19  ;;  %v3744_v17 = vld [vmem:[#allocation6 + $0x124] sm:$0xf0] }
  0xd7   :  { %1569 = vmatmul.bf16.vlgmr.msrb.gmra.mxu3 %v4025_v36  ;;  %v3253_v36 = vld [vmem:[#allocation6 + $0xb0] sm:$0xf]  ;;  %v3190_v29 = vor.u32 %v3714_v26, %v3189_v33  ;;  %v3218_v12 = vor.u32 %v3719_v1, %v3215_v2  ;;  %2002 = vmatpush.bf16.msra.mxu2 %v3350_v18  ;;  %v3715_v33 = vld [vmem:[#allocation6 + $0x44] sm:$0xf]  ;;  %v3199_v26 = vld [vmem:[#allocation6 + $0x48] sm:$0xf0] }
  0xd8   :  { %v3254_v34 = vor.u32 %v3730_v28, %v3253_v36  ;;  %v1574_v52 = vmul.f32 0.2, %v1337_v44  ;;  %v3333_v20 = vld [vmem:[#allocation6 + $0x150] sm:$0xf]  ;;  %v3731_v28 = vld [vmem:[#allocation6 + $0xc4] sm:$0xf]  ;;  %v3202_v31 = vor.u32 %v3715_v33, %v3199_v26 }
  0xd9   :  { %1977 = vmatpush.bf16.msra.mxu0 %v3214_v5  ;;  %v1349_v35 = vpop.f32.mrf.mxu2  ;;  %v1325_v40 = vpop.f32.mrf.mxu0  ;;  %v3735_v5 = vld [vmem:[#allocation6 + $0xe4] sm:$0xf]  ;;  %v3334_v30 = vor.u32 %v3750_v25, %v3333_v20  ;;  %v3740_v20 = vld [vmem:[#allocation6 + $0x104] sm:$0xf0]  ;;  %v3753_v25 = vld [vmem:[#allocation6 + $0x174] sm:$0xf] }
  0xda   :  { %1990 = vmatpush.bf16.msra.mxu1 %v3278_v6  ;;  %v4062_v39 = vpop.f32.mrf.mxu3  ;;  %v1578_v62 = vmax.f32 %v1337_v44, %v1574_v52  ;;  %v3717_v6 = vld [vmem:[#allocation6 + $0x54] sm:$0xf]  ;;  %v3748_v40 = vld [vmem:[#allocation6 + $0x144] sm:$0xf0]  ;;  %v3723_v10 = vld [vmem:[#allocation6 + $0x84] sm:$0xf] }
  0xdb   :  { %2003 = vmatpush.bf16.msra.mxu2 %v3342_v23  ;;  %v3729_v44 = vld [vmem:[#allocation6 + $0xb4] sm:$0xf]  ;;  %v3326_v46 = vor.u32 %v3748_v40, %v3325_v38  ;;  %v3351_v33 = vld [vmem:[#allocation6 + $0x178] sm:$0xf0] }
  0xdc   :  { %v4065_v11 = vpack.c.bf16 %v1578_v62, %v1578_v62  ;;  %v3258_v52 = vor.u32 %v3729_v44, %v3255_v45  ;;  %v3175_v62 = vld [vmem:[#allocation6 + $0x18] sm:$0xf0]  ;;  %v3749_v38 = vld [vmem:[#allocation6 + $0x154] sm:$0xf]  ;;  %v3768_v44 = vld [vmem:[#allocation6 + $0x1e4] sm:$0xf0] }
  0xdd   :  { %1978 = vmatpush.bf16.msra.mxu0 %v3206_v16  ;;  %v1338_v43 = vpop.f32.mrf.mxu1  ;;  %v3282_v16 = vor.u32 %v3735_v5, %v3279_v7  ;;  %v3335_v40 = vld [vmem:[#allocation6 + $0x158] sm:$0xf0]  ;;  %v3747_v45 = vld [vmem:[#allocation6 + $0x144] sm:$0xf] }
  0xde   :  { %1991 = vmatpush.bf16.msra.mxu1 %v3270_v14  ;;  %v1350_v14 = vadd.f32 %v1349_v35, %v295_v4  ;;  %v3191_v35 = vld [vmem:[#allocation6 + $0x38] sm:$0xf0] }
  0xdf   :  { %2004 = vmatpush.bf16.msra.mxu2 %v3334_v30  ;;  %v3239_v4 = vld [vmem:[#allocation6 + $0x98] sm:$0xf0] }
  0xe0   :  { %v1363_v36 = vadd.f32 %v4062_v39, %v1350_v14  ;;  %v3231_v14 = vld [vmem:[#allocation6 + $0x88] sm:$0xf0] }
  0xe1   :  { %1979 = vmatpush.bf16.msra.mxu0 %v3198_v24  ;;  %v1351_v57 = vpop.f32.mrf.mxu2  ;;  %v3210_v24 = vor.u32 %v3717_v6, %v3207_v15  ;;  %v3167_v15 = vld [vmem:[#allocation6 + $0x8] sm:$0xf0]  ;;  %v3234_v26 = vor.u32 %v3723_v10, %v3231_v14 }
  0xe2   :  { %1992 = vmatpush.bf16.msra.mxu1 %v3262_v27  ;;  %v1364_v59 = vpop.f32.mrf.mxu3  ;;  %v3274_v27 = vor.u32 %v3733_v21, %v3271_v22  ;;  %v3170_v23 = vor.u32 %v3707_v13, %v3167_v15  ;;  %v3295_v13 = vld [vmem:[#allocation6 + $0x108] sm:$0xf0] }
  0xe3   :  { %2005 = vmatpush.bf16.msra.mxu2 %v3326_v46  ;;  %v3309_v59 = vld [vmem:[#allocation6 + $0x120] sm:$0xf]  ;;  %v3327_v46 = vld [vmem:[#allocation6 + $0x148] sm:$0xf0] }
  0xe4   :  { %v3310_v5 = vor.u32 %v3744_v17, %v3309_v59  ;;  %v3311_v59 = vld [vmem:[#allocation6 + $0x128] sm:$0xf0]  ;;  %v296_v17 = vperm.slane %v4052_v41, 2 }
  0xe5   :  { %1980 = vmatpush.bf16.msra.mxu0 %v3190_v29  ;;  %v3263_v29 = vld [vmem:[#allocation6 + $0xc8] sm:$0xf0] }
  0xe6   :  { %1993 = vmatpush.bf16.msra.mxu1 %v3254_v34  ;;  %v3266_v37 = vor.u32 %v3731_v28, %v3263_v29  ;;  %v3751_v28 = vld [vmem:[#allocation6 + $0x164] sm:$0xf]  ;;  %v3343_v29 = vld [vmem:[#allocation6 + $0x168] sm:$0xf0] }
  0xe7   :  { %2006 = vmatpush.bf16.msra.mxu2 %v3318_v9  ;;  %v3346_v30 = vor.u32 %v3751_v28, %v3343_v29  ;;  %v3764_v9 = vld [vmem:[#allocation6 + $0x1c4] sm:$0xf0]  ;;  %v3767_v29 = vld [vmem:[#allocation6 + $0x1e4] sm:$0xf] }
  0xe9   :  { %1981 = vmatpush.bf16.msra.mxu0 %v3182_v42 }
  0xea   :  { %1994 = vmatpush.bf16.msra.mxu1 %v3246_v47  ;;  %v3194_v47 = vor.u32 %v3713_v32, %v3191_v35  ;;  %v3770_v32 = vld [vmem:[#allocation6 + $0x1f4] sm:$0xf0] }
  0xeb   :  { %2007 = vmatpush.bf16.msra.mxu2 %v3310_v5  ;;  %v3373_v5 = vld [vmem:[#allocation6 + $0x1a0] sm:$0xf] }
  0xed   :  { %1982 = vmatpush.bf16.msra.mxu0 %v3174_v50  ;;  %v3711_v50 = vld [vmem:[#allocation6 + $0x24] sm:$0xf] }
  0xee   :  { %1995 = vmatpush.bf16.msra.mxu1 %v3238_v55  ;;  %v3247_v55 = vld [vmem:[#allocation6 + $0xa8] sm:$0xf0]  ;;  %v3186_v58 = vor.u32 %v3711_v50, %v3183_v51 }
  0xf1   :  { %1983 = vmatpush.bf16.msra.mxu0 %v3166_v61  ;;  %v1375_v34 = vpop.f32.mrf.mxu0  ;;  %v3709_v61 = vld [vmem:[#allocation6 + $0x14] sm:$0xf] }
  0xf2   :  { %1996 = vmatpush.bf16.msra.mxu1 %v3230_v0  ;;  %v1376_v42 = vadd.f32 %v1375_v34, %v1363_v36  ;;  %v1388_v43 = vpop.f32.mrf.mxu1  ;;  %v3178_v7 = vor.u32 %v3709_v61, %v3175_v62  ;;  %v3354_v36 = vor.u32 %v3753_v25, %v3351_v33  ;;  %v3381_v61 = vld [vmem:[#allocation6 + $0x1b0] sm:$0xf]  ;;  %v3762_v62 = vld [vmem:[#allocation6 + $0x1b4] sm:$0xf0]  ;;  %v3769_v25 = vld [vmem:[#allocation6 + $0x1f4] sm:$0xf] }
  0xf3   :  { %v3415_v33 = vld [vmem:[#allocation6 + $0x1f8] sm:$0xf0] }
  0xf4   :  { %1984 = vmatmul.bf16.vlgmr.msra.gmra.mxu0 %v4065_v11  ;;  %v1389_v39 = vadd.f32 %v1388_v43, %v1376_v42  ;;  %v3338_v42 = vor.u32 %v3749_v38, %v3335_v40  ;;  %v3405_v43 = vld [vmem:[#allocation6 + $0x1e0] sm:$0xf] }
  0xf5   :  { %2028 = vmatpush.bf16.msrb.mxu0 %v3226_v63  ;;  %v3250_v63 = vor.u32 %v3727_v54, %v3247_v55  ;;  %v3745_v54 = vld [vmem:[#allocation6 + $0x134] sm:$0xf]  ;;  %v3319_v55 = vld [vmem:[#allocation6 + $0x138] sm:$0xf0] }
  0xf6   :  { %2041 = vmatpush.bf16.msrb.mxu1 %v3290_v3  ;;  %v3725_v3 = vld [vmem:[#allocation6 + $0x94] sm:$0xf] }
  0xf9   :  { %2029 = vmatpush.bf16.msrb.mxu0 %v3218_v12  ;;  %v1401_v53 = vpop.f32.mrf.mxu2  ;;  %v1377_v0 = vpop.f32.mrf.mxu0  ;;  %v3742_v12 = vld [vmem:[#allocation6 + $0x114] sm:$0xf0] }
  0xfa   :  { %2042 = vmatpush.bf16.msrb.mxu1 %v3282_v16  ;;  %v1402_v56 = vadd.f32 %v1401_v53, %v1389_v39  ;;  %v1414_v57 = vpop.f32.mrf.mxu3  ;;  %v1390_v1 = vpop.f32.mrf.mxu1  ;;  %v3242_v16 = vor.u32 %v3725_v3, %v3239_v4  ;;  %v3302_v22 = vor.u32 %v3742_v12, %v3301_v8  ;;  %v3330_v39 = vor.u32 %v3747_v45, %v3327_v46  ;;  %v3741_v0 = vld [vmem:[#allocation6 + $0x114] sm:$0xf]  ;;  %v3763_v46 = vld [vmem:[#allocation6 + $0x1c4] sm:$0xf] }
  0xfb   :  { %v3303_v1 = vld [vmem:[#allocation6 + $0x118] sm:$0xf0] }
  0xfc   :  { %v1415_v60 = vadd.f32 %v1414_v57, %v1402_v56  ;;  %2008 = vmatpush.bf16.msra.mxu2 %v3302_v22  ;;  %v3389_v56 = vld [vmem:[#allocation6 + $0x1c0] sm:$0xf]  ;;  %v3322_v57 = vor.u32 %v3745_v54, %v3319_v55  ;;  %v3306_v12 = vor.u32 %v3741_v0, %v3303_v1 }
  0xfd   :  { %2030 = vmatpush.bf16.msrb.mxu0 %v3210_v24  ;;  %v3293_v24 = vld [vmem:[#allocation6 + $0x100] sm:$0xf] }
  0xfe   :  { %2043 = vmatpush.bf16.msrb.mxu1 %v3274_v27  ;;  %v1575_v2 = vmul.f32 0.2, %v1415_v60  ;;  %v3294_v27 = vor.u32 %v3740_v20, %v3293_v24  ;;  %v3756_v24 = vld [vmem:[#allocation6 + $0x184] sm:$0xf0] }
 0x100   :  { %v1579_v6 = vmax.f32 %v1415_v60, %v1575_v2  ;;  %2009 = vmatpush.bf16.msra.mxu2 %v3294_v27  ;;  %v3390_v60 = vor.u32 %v3764_v9, %v3389_v56  ;;  %v3382_v2 = vor.u32 %v3762_v62, %v3381_v61  ;;  %v3757_v56 = vld [vmem:[#allocation6 + $0x194] sm:$0xf]  ;;  %v297_v9 = vperm.slane %v4052_v41, 3 }
 0x101   :  { %2031 = vmatpush.bf16.msrb.mxu0 %v3202_v31  ;;  %v1403_v18 = vpop.f32.mrf.mxu2  ;;  %v3413_v31 = vld [vmem:[#allocation6 + $0x1f0] sm:$0xf] }
 0x102   :  { %2044 = vmatpush.bf16.msrb.mxu1 %v3266_v37  ;;  %v1583_v19 = vpack.c.bf16 %v1579_v6, %v1579_v6  ;;  %v1416_v21 = vpop.f32.mrf.mxu3  ;;  %v3414_v35 = vor.u32 %v3770_v32, %v3413_v31  ;;  %v3739_v6 = vld [vmem:[#allocation6 + $0x104] sm:$0xf]  ;;  %v3365_v18 = vld [vmem:[#allocation6 + $0x190] sm:$0xf] }
 0x103   :  { %v3298_v10 = vor.u32 %v3739_v6, %v3295_v13 }
 0x104   :  { %1997 = vmatmul.bf16.vlgmr.msra.gmra.mxu1 %v1583_v19  ;;  %2054 = vmatpush.bf16.msrb.mxu2 %v3354_v36 }
 0x105   :  { %2032 = vmatpush.bf16.msrb.mxu0 %v3194_v47  ;;  %2015 = vmatpush.bf16.msra.mxu3 %v3414_v35  ;;  %v3765_v35 = vld [vmem:[#allocation6 + $0x1d4] sm:$0xf] }
 0x106   :  { %2045 = vmatpush.bf16.msrb.mxu1 %v3258_v52  ;;  %v3398_v52 = vor.u32 %v3766_v49, %v3397_v48  ;;  %v3761_v48 = vld [vmem:[#allocation6 + $0x1b4] sm:$0xf]  ;;  %v3383_v49 = vld [vmem:[#allocation6 + $0x1b8] sm:$0xf0] }
 0x108   :  { %2055 = vmatpush.bf16.msrb.mxu2 %v3346_v30  ;;  %v3407_v30 = vld [vmem:[#allocation6 + $0x1e8] sm:$0xf0] }
 0x109   :  { %2033 = vmatpush.bf16.msrb.mxu0 %v3186_v58  ;;  %v3743_v58 = vld [vmem:[#allocation6 + $0x124] sm:$0xf]  ;;  %v3410_v32 = vor.u32 %v3767_v29, %v3407_v30  ;;  %v3778_v29 = vld [vmem:[#allocation8 + $0x38] sm:$0xff]  ;;  %v3777_v30 = vld [vmem:[#allocation8 + $0x30] sm:$0xff] }
 0x10a   :  { %2046 = vmatpush.bf16.msrb.mxu1 %v3250_v63  ;;  %v3314_v63 = vor.u32 %v3743_v58, %v3311_v59 }
 0x10c   :  { %2056 = vmatpush.bf16.msrb.mxu2 %v3338_v42 }
 0x10d   :  { %2034 = vmatpush.bf16.msrb.mxu0 %v3178_v7  ;;  %v3760_v7 = vld [vmem:[#allocation6 + $0x1a4] sm:$0xf0] }
 0x10e   :  { %2047 = vmatpush.bf16.msrb.mxu1 %v3242_v16  ;;  %v3374_v15 = vor.u32 %v3760_v7, %v3373_v5 }
 0x110   :  { %2057 = vmatpush.bf16.msrb.mxu2 %v3330_v39  ;;  %v3391_v39 = vld [vmem:[#allocation6 + $0x1c8] sm:$0xf0] }
 0x111   :  { %2035 = vmatpush.bf16.msrb.mxu0 %v3170_v23  ;;  %v1427_v34 = vpop.f32.mrf.mxu0  ;;  %v3357_v23 = vld [vmem:[#allocation6 + $0x180] sm:$0xf] }
 0x112   :  { %2048 = vmatpush.bf16.msrb.mxu1 %v3234_v26  ;;  %v1440_v37 = vpop.f32.mrf.mxu1  ;;  %v1428_v3 = vadd.f32 %v1427_v34, %v296_v17  ;;  %v3358_v20 = vor.u32 %v3756_v24, %v3357_v23  ;;  %v3418_v26 = vor.u32 %v3769_v25, %v3415_v33  ;;  %v3755_v17 = vld [vmem:[#allocation6 + $0x184] sm:$0xf] }
 0x114   :  { %2036 = vmatmul.bf16.vlgmr.msrb.gmra.mxu0 %v4065_v11  ;;  %v3406_v11 = vor.u32 %v3768_v44, %v3405_v43  ;;  %2058 = vmatpush.bf16.msrb.mxu2 %v3322_v57  ;;  %v1441_v16 = vadd.f32 %v1440_v37, %v1428_v3  ;;  %v3399_v37 = vld [vmem:[#allocation6 + $0x1d8] sm:$0xf0] }
 0x115   :  { %2049 = vmatmul.bf16.vlgmr.msrb.gmra.mxu1 %v1583_v19  ;;  %v3758_v19 = vld [vmem:[#allocation6 + $0x194] sm:$0xf0]  ;;  %v3402_v42 = vor.u32 %v3765_v35, %v3399_v37  ;;  %v3367_v57 = vld [vmem:[#allocation6 + $0x198] sm:$0xf0]  ;;  %2218 = vmatpush.bf16.msra.mxu0 %v3778_v29  ;;  %v3785_v35 = vld [vmem:[#allocation8 + $0x70] sm:$0xff] }
 0x116   :  { %2016 = vmatpush.bf16.msra.mxu3 %v3406_v11  ;;  %v3366_v14 = vor.u32 %v3758_v19, %v3365_v18  ;;  %v3370_v58 = vor.u32 %v3757_v56, %v3367_v57  ;;  %v3774_v37 = vld [vmem:[#allocation8 + $0x18] sm:$0xff] }
 0x118   :  { %2059 = vmatpush.bf16.msrb.mxu2 %v3314_v63 }
 0x119   :  { %v1453_v47 = vpop.f32.mrf.mxu2  ;;  %v1429_v50 = vpop.f32.mrf.mxu0  ;;  %2219 = vmatpush.bf16.msra.mxu0 %v3777_v30 }
 0x11a   :  { %v1466_v51 = vpop.f32.mrf.mxu3  ;;  %v1442_v53 = vpop.f32.mrf.mxu1  ;;  %2017 = vmatpush.bf16.msra.mxu3 %v3398_v52  ;;  %v1454_v21 = vadd.f32 %v1453_v47, %v1441_v16  ;;  %v3394_v47 = vor.u32 %v3763_v46, %v3391_v39  ;;  %v3759_v52 = vld [vmem:[#allocation6 + $0x1a4] sm:$0xf]  ;;  %v3782_v46 = vld [vmem:[#allocation8 + $0x58] sm:$0xff]  ;;  %v3781_v39 = vld [vmem:[#allocation8 + $0x50] sm:$0xff] }
 0x11b   :  { %v3375_v53 = vld [vmem:[#allocation6 + $0x1a8] sm:$0xf0] }
 0x11c   :  { %2060 = vmatpush.bf16.msrb.mxu2 %v3306_v12  ;;  %v1467_v22 = vadd.f32 %v1466_v51, %v1454_v21  ;;  %v3386_v51 = vor.u32 %v3761_v48, %v3383_v49  ;;  %v3378_v55 = vor.u32 %v3759_v52, %v3375_v53  ;;  %v3780_v48 = vld [vmem:[#allocation8 + $0x48] sm:$0xff] }
 0x11d   :  { %v3793_v52 = vld [vmem:[%s4118_s7 + $0x30] sm:$0xff] }
 0x11e   :  { %2018 = vmatpush.bf16.msra.mxu3 %v3390_v60  ;;  %v3359_v60 = vld [vmem:[#allocation6 + $0x188] sm:$0xf0] }
 0x11f   :  { %v3362_v61 = vor.u32 %v3755_v17, %v3359_v60 }
 0x120   :  { %2061 = vmatpush.bf16.msrb.mxu2 %v3298_v10  ;;  %v1650_v10 = vld [vmem:[%s4115_s4] sm:$0x3] }
 0x121   :  { %v1455_v4 = vpop.f32.mrf.mxu2  ;;  %v1653_v25 = vperm.slane %v1650_v10, 1 }
 0x122   :  { %v1468_v8 = vpop.f32.mrf.mxu3  ;;  %2019 = vmatpush.bf16.msra.mxu3 %v3382_v2 }
 0x126   :  { %2020 = vmatpush.bf16.msra.mxu3 %v3374_v15 }
 0x12a   :  { %2021 = vmatpush.bf16.msra.mxu3 %v3366_v14  ;;  %v1652_v14 = vperm.slane %v1650_v10, 0 }
 0x12e   :  { %2022 = vmatpush.bf16.msra.mxu3 %v3358_v20 }
 0x131   :  { %v1479_v27 = vpop.f32.mrf.mxu0 }
 0x132   :  { %v1480_v36 = vadd.f32 %v1479_v27, %v1467_v22  ;;  %v1492_v28 = vpop.f32.mrf.mxu1  ;;  %2067 = vmatpush.bf16.msrb.mxu3 %v3418_v26 }
 0x134   :  { %v1493_v31 = vadd.f32 %v1492_v28, %v1480_v36 }
 0x136   :  { %v1576_v34 = vmul.f32 0.2, %v1493_v31  ;;  %2068 = vmatpush.bf16.msrb.mxu3 %v3410_v32  ;;  %v3775_v32 = vld [vmem:[#allocation8 + $0x20] sm:$0xff] }
 0x138   :  { %v1580_v38 = vmax.f32 %v1493_v31, %v1576_v34  ;;  %v3776_v31 = vld [vmem:[#allocation8 + $0x28] sm:$0xff]  ;;  %v3786_v34 = vld [vmem:[#allocation8 + $0x78] sm:$0xff] }
 0x139   :  { %v1505_v40 = vpop.f32.mrf.mxu2  ;;  %v1481_v44 = vpop.f32.mrf.mxu0  ;;  %2220 = vmatpush.bf16.msra.mxu0 %v3776_v31  ;;  %2231 = vmatpush.bf16.msra.mxu1 %v3786_v34 }
 0x13a   :  { %v1518_v43 = vpop.f32.mrf.mxu3  ;;  %v1584_v11 = vpack.c.bf16 %v1580_v38, %v1580_v38  ;;  %v1494_v45 = vpop.f32.mrf.mxu1  ;;  %2069 = vmatpush.bf16.msrb.mxu3 %v3402_v42  ;;  %v1506_v59 = vadd.f32 %v1505_v40, %v297_v9  ;;  %v3773_v38 = vld [vmem:[#allocation8 + $0x10] sm:$0xff]  ;;  %v3772_v42 = vld [vmem:[#allocation8 + $0x8] sm:$0xff] }
 0x13b   :  { %v3783_v45 = vld [vmem:[#allocation8 + $0x60] sm:$0xff] }
 0x13c   :  { %2010 = vmatmul.bf16.vlgmr.msra.gmra.mxu2 %v1584_v11  ;;  %v1519_v62 = vadd.f32 %v1518_v43, %v1506_v59  ;;  %v3784_v43 = vld [vmem:[#allocation8 + $0x68] sm:$0xff] }
 0x13d   :  { %2221 = vmatpush.bf16.msra.mxu0 %v3775_v32  ;;  %2232 = vmatpush.bf16.msra.mxu1 %v3785_v35 }
 0x13e   :  { %2070 = vmatpush.bf16.msrb.mxu3 %v3394_v47 }
 0x141   :  { %v1507_v50 = vpop.f32.mrf.mxu2  ;;  %2222 = vmatpush.bf16.msra.mxu0 %v3774_v37  ;;  %2233 = vmatpush.bf16.msra.mxu1 %v3784_v43 }
 0x142   :  { %v1520_v54 = vpop.f32.mrf.mxu3  ;;  %2071 = vmatpush.bf16.msrb.mxu3 %v3386_v51  ;;  %v3779_v50 = vld [vmem:[#allocation8 + $0x40] sm:$0xff]  ;;  %v3794_v51 = vld [vmem:[%s4118_s7 + $0x38] sm:$0xff] }
 0x143   :  { %2315 = vmatpush.bf16.msra.mxu2 %v3794_v51 }
 0x145   :  { %2223 = vmatpush.bf16.msra.mxu0 %v3773_v38  ;;  %2234 = vmatpush.bf16.msra.mxu1 %v3783_v45 }
 0x146   :  { %2072 = vmatpush.bf16.msrb.mxu3 %v3378_v55 }
 0x147   :  { %2316 = vmatpush.bf16.msra.mxu2 %v3793_v52 }
 0x149   :  { %2224 = vmatpush.bf16.msra.mxu0 %v3772_v42  ;;  %2235 = vmatpush.bf16.msra.mxu1 %v3782_v46 }
 0x14a   :  { %2073 = vmatpush.bf16.msrb.mxu3 %v3370_v58 }
 0x14c   :  { %2062 = vmatmul.bf16.vlgmr.msrb.gmra.mxu2 %v1584_v11  ;;  %v3771_v11 = vld [vmem:[#allocation8] sm:$0xff] }
 0x14d   :  { %2225 = vmatpush.bf16.msra.mxu0 %v3771_v11  ;;  %2236 = vmatpush.bf16.msra.mxu1 %v3781_v39 }
 0x14e   :  { %2074 = vmatpush.bf16.msrb.mxu3 %v3362_v61 }
 0x151   :  { %v1531_v63 = vpop.f32.mrf.mxu0  ;;  %2237 = vmatpush.bf16.msra.mxu1 %v3780_v48 }
 0x152   :  { %v1544_v0 = vpop.f32.mrf.mxu1  ;;  %v1532_v1 = vadd.f32 %v1531_v63, %v1519_v62 }
 0x154   :  { %v1545_v2 = vadd.f32 %v1544_v0, %v1532_v1  ;;  %v3792_v1 = vld [vmem:[%s4118_s7 + $0x28] sm:$0xff] }
 0x155   :  { %2238 = vmatpush.bf16.msra.mxu1 %v3779_v50  ;;  %2317 = vmatpush.bf16.msra.mxu2 %v3792_v1 }
 0x159   :  { %v1557_v3 = vpop.f32.mrf.mxu2  ;;  %v1533_v7 = vpop.f32.mrf.mxu0 }
 0x15a   :  { %v1558_v4 = vadd.f32 %v1557_v3, %v1545_v2  ;;  %v1570_v5 = vpop.f32.mrf.mxu3  ;;  %v1546_v8 = vpop.f32.mrf.mxu1  ;;  %v3791_v2 = vld [vmem:[%s4118_s7 + $0x20] sm:$0xff]  ;;  %v3790_v3 = vld [vmem:[%s4118_s7 + $0x18] sm:$0xff] }
 0x15b   :  { %2318 = vmatpush.bf16.msra.mxu2 %v3791_v2  ;;  %v3787_v7 = vld [vmem:[%s4118_s7] sm:$0xff] }
 0x15c   :  { %v1571_v41 = vadd.f32 %v1570_v5, %v1558_v4  ;;  %v3789_v4 = vld [vmem:[%s4118_s7 + $0x10] sm:$0xff]  ;;  %v3788_v5 = vld [vmem:[%s4118_s7 + $0x8] sm:$0xff] }
 0x15e   :  { %v1577_v12 = vmul.f32 0.2, %v1571_v41 }
 0x15f   :  { %2319 = vmatpush.bf16.msra.mxu2 %v3790_v3 }
 0x160   :  { %v1581_v6 = vmax.f32 %v1571_v41, %v1577_v12  ;;  %v3806_v12 = vld [vmem:[%s4117_s6] ss:$0 sm:$0xff]  ;;  %s3920_s6 = smov [#allocation9]  }
 0x161   :  { %v1559_v13 = vpop.f32.mrf.mxu2 }
 0x162   :  { %v1585_v15 = vpack.c.bf16 %v1581_v6, %v1581_v6  ;;  %v1572_v16 = vpop.f32.mrf.mxu3 }
 0x163   :  { %2320 = vmatpush.bf16.msra.mxu2 %v3789_v4 }
 0x164   :  { %2023 = vmatmul.bf16.vlgmr.msra.gmra.mxu3 %v1585_v15 }
 0x167   :  { %2321 = vmatpush.bf16.msra.mxu2 %v3788_v5 }
 0x16b   :  { %2322 = vmatpush.bf16.msra.mxu2 %v3787_v7 }
 0x171   :  { %v1985_v18 = vpop.f32.mrf.mxu0 }
 0x172   :  { %v1986_v21 = vadd.f32 %v1985_v18, %v1652_v14  ;;  %v2330_v14 = vld [vmem:[%s4120_s9] sm:$0x1]  ;;  %s2382_s9 = sshll.u32 %s3920_s6, 4  ;;  %s2383_s9 = int_to_ptr.vmem [resolvable:$true] %s2382_s9 }
 0x174   :  { %2075 = vmatmul.bf16.vlgmr.msrb.gmra.mxu3 %v1585_v15 }
 0x179   :  { %v1987_v19 = vpop.f32.mrf.mxu0 }
 0x181   :  { %v1998_v22 = vpop.f32.mrf.mxu1 }
 0x182   :  { %v1999_v23 = vadd.f32 %v1998_v22, %v1986_v21  ;;  %v3807_v21 = vld [vmem:[%s4119_s8] ss:$0 sm:$0xff]  ;;  %v2331_v22 = vunpack.c.l.bf16 %v2330_v14  ;;  %s2384_s8 = sshll.u32 %s4122_s11, 4  ;;  %s2385_s8 = int_to_ptr.hbm [resolvable:$true] %s2384_s8 }
 0x189   :  { %v2000_v20 = vpop.f32.mrf.mxu1 }
 0x191   :  { %v2037_v24 = vpop.f32.mrf.mxu0 }
 0x192   :  { %v2038_v26 = vadd.f32 %v2037_v24, %v1653_v25  ;;  %v2050_v27 = vpop.f32.mrf.mxu1  ;;  %v2332_v25 = vperm.slane %v2331_v22, 0 }
 0x194   :  { %v2051_v36 = vadd.f32 %v2050_v27, %v2038_v26 }
 0x199   :  { %v2039_v33 = vpop.f32.mrf.mxu0 }
 0x19a   :  { %v2052_v28 = vpop.f32.mrf.mxu1 }
 0x19b   :  { %v3808_v28 = vld [vmem:[#allocation2] ss:$0 sm:$0xff] }
 0x1bf   :  { %v2011_v40 = vpop.f32.mrf.mxu2 }
 0x1c0   :  { %v2012_v53 = vadd.f32 %v2011_v40, %v1999_v23 }
 0x1c7   :  { %v2013_v44 = vpop.f32.mrf.mxu2 }
 0x1cf   :  { %v2063_v47 = vpop.f32.mrf.mxu2 }
 0x1d0   :  { %v2064_v59 = vadd.f32 %v2063_v47, %v2051_v36 }
 0x1d7   :  { %v2065_v49 = vpop.f32.mrf.mxu2 }
 0x1e7   :  { %v2024_v54 = vpop.f32.mrf.mxu3 }
 0x1e8   :  { %v2025_v55 = vadd.f32 %v2024_v54, %v2012_v53 }
 0x1ea   :  { %v2080_v56 = vmul.f32 0.2, %v2025_v55 }
 0x1ec   :  { %v2082_v57 = vmax.f32 %v2025_v55, %v2080_v56 }
 0x1ee   :  { %v2084_v9 = vpack.c.bf16 %v2082_v57, %v2082_v57 }
 0x1ef   :  { %v2026_v58 = vpop.f32.mrf.mxu3 }
 0x1f0   :  { %2226 = vmatmul.bf16.vlgmr.msra.gmra.mxu0 %v2084_v9 }
 0x1f7   :  { %v2076_v17 = vpop.f32.mrf.mxu3 }
 0x1f8   :  { %v2077_v60 = vadd.f32 %v2076_v17, %v2064_v59 }
 0x1fa   :  { %v2081_v61 = vmul.f32 0.2, %v2077_v60 }
 0x1fc   :  { %v2083_v62 = vmax.f32 %v2077_v60, %v2081_v61 }
 0x1fe   :  { %v2085_v63 = vpack.c.bf16 %v2083_v62, %v2083_v62 }
 0x1ff   :  { %v2078_v0 = vpop.f32.mrf.mxu3 }
 0x200   :  { %2239 = vmatmul.bf16.vlgmr.msra.gmra.mxu1 %v2085_v63 }
 0x26d   :  { %v2227_v8 = vpop.f32.mrf.mxu0 }
 0x26e   :  { %v2228_v6 = vadd.f32 %v3806_v12, %v2227_v8 }
 0x275   :  { %v2229_v41 = vpop.f32.mrf.mxu0 }
 0x27d   :  { %v2240_v13 = vpop.f32.mrf.mxu1 }
 0x27e   :  { %v2241_v15 = vadd.f32 %v2240_v13, %v2228_v6 }
 0x280   :  { %v2244_v16 = vmul.f32 0.2, %v2241_v15 }
 0x282   :  { %v2245_v18 = vmax.f32 %v2241_v15, %v2244_v16 }
 0x284   :  { %v2246_v19 = vpack.c.bf16 %v2245_v18, %v2245_v18 }
 0x285   :  { %v2242_v10 = vpop.f32.mrf.mxu1 }
 0x286   :  { %2323 = vmatmul.bf16.vlgmr.msra.gmra.mxu2 %v2246_v19 }
 0x309   :  { %v2324_v23 = vpop.f32.mrf.mxu2 }
 0x30a   :  { %v2325_v24 = vadd.f32 %v3807_v21, %v2324_v23 }
 0x30c   :  { %v2328_v20 = vmul.f32 0.2, %v2325_v24 }
 0x30e   :  { %v2329_v33 = vmax.f32 %v2325_v24, %v2328_v20 }
 0x310   :  { %v2333_v26 = vmul.f32 %v2332_v25, %v2329_v33 }
 0x311   :  { %v2326_v27 = vpop.f32.mrf.mxu2 }
 0x312   :  { %v2335_v36 = vsel %vm2334_vm0, %v2333_v26, 0.0 }
 0x313   :  { %2336 = vadd.xlane.f32.xlu0 %v2335_v36 }
 0x386   :  { %v2337_v29 = vpop.xlane.xlu0 %2336 }
 0x387   :  { %v2342_v30 = vadd.f32 %v3808_v28, %v2337_v29 }
 0x389   :  { %2343 = vxpose.xlu0.b32.start.end [1/1] (short) (narrow) %v2342_v30, 8 }
 0x42d   :  { %v2359_v31 = vpop.trf.xlu0 }
 0x42e   :  { %2376 = vst.msk [vmem:[#allocation9] sm:$0x1] %vm2375_vm1, %v2359_v31 }
 0x42f   :  { %2387 = dma.vmem_to_hbm [thread:$0]  %s2383_s9, 16, %s2385_s8, [#allocation5]  }
 0x430   :  { %3909 = dma.done.wait [#allocation5], 16  }
 0x431   :  { %3910 = vsyncadd [#allocation5], 4294967280 }
 0x432   :  { %2392 = vsyncpa [#allocation4], 1 }
 0x433   :  { %2393 = vsyncpa [#allocation7], 1 }
 0x434   :  { %2394 = vsyncpa [#allocation5], 1 }

// kernel: tpu_custom_call.1
= control target key start
LH: loop header
LB: loop body
LE: loop exit
PB: predicated region body
PF: predicated region fallthrough
CT: control target
= control target key end

     0   :  { %s4111_s0 = inlined_call_operand.vmem [shape: f32[8,768], index: 0, kind: input, shape index: {}]   ;;  %s4112_s1 = inlined_call_operand.hbm [shape: bf16[768,512], index: 1, kind: input, shape index: {}]   ;;  %s4113_s2 = inlined_call_operand.vmem [shape: f32[1,512], index: 2, kind: input, shape index: {}]   ;;  %s4114_s3 = inlined_call_operand.hbm [shape: bf16[512,256], index: 3, kind: input, shape index: {}]   ;;  %s4115_s4 = inlined_call_operand.vmem [shape: f32[1,256], index: 4, kind: input, shape index: {}]   ;;  %s4116_s5 = inlined_call_operand.hbm [shape: bf16[256,128], index: 5, kind: input, shape index: {}]   ;;  %s4117_s6 = inlined_call_operand.vmem [shape: f32[1,128], index: 6, kind: input, shape index: {}]   ;;  %s4118_s7 = inlined_call_operand.vmem [shape: bf16[128,64], index: 7, kind: input, shape index: {}]   ;;  %s4119_s8 = inlined_call_operand.vmem [shape: f32[1,64], index: 8, kind: input, shape index: {}]   ;;  %s4120_s9 = inlined_call_operand.vmem [shape: bf16[1,64], index: 9, kind: input, shape index: {}]   ;;  %s4121_s10 = inlined_call_operand.<no memory space> [shape: f32[1,1], index: 10, kind: input, shape index: {}]   ;;  %s4122_s11 = inlined_call_operand.hbm [shape: f32[1,8], index: 11, kind: output, shape index: {}]  }
   0x1   :  { %v16_v0 = vstv %s4121_s10 }
   0x2   :  { %17 = vst [vmem:[#allocation2] sm:$0x1] %v16_v0 }
   0x3   :  { %18 = vsyncpa [#allocation4], 0 }
   0x4   :  { %19 = vsyncpa [#allocation7], 0  ;;  %s42_s21 = sshll.u32 %s4114_s3, 4  ;;  %s43_s21 = int_to_ptr.hbm [resolvable:$true] %s42_s21 }
   0x5   :  { %20 = vsyncpa [#allocation5], 0  ;;  %s3911_s22 = smov [#allocation6]   ;;  %s27_s26 = sshll.u32 %s4112_s1, 4  ;;  %s28_s26 = int_to_ptr.hbm [resolvable:$true] %s27_s26 }
   0x6   :  { %s44_s23 = sshll.u32 %s3911_s22, 4  ;;  %s3912_s27 = smov 128   ;;  %s45_s23 = int_to_ptr.vmem [resolvable:$true] %s44_s23 }
   0x7   :  { %s3913_s28 = smov 8   ;;  %s3914_s10 = smov [#allocation3]  }
   0x8   :  { %50 = dma.hbm_to_vmem [thread:$0]  %s43_s21, 8192, %s45_s23, [#allocation7], %s3912_s27, %s3912_s27, %s3913_s28  }
   0x9   :  { %s29_s29 = sshll.u32 %s3914_s10, 4  ;;  %s3915_s30 = smov 256   ;;  %s30_s29 = int_to_ptr.vmem [resolvable:$true] %s29_s29 }
   0xa   :  { %s3916_s12 = smov 16   ;;  %s57_s14 = sshll.u32 %s4116_s5, 4  ;;  %s58_s14 = int_to_ptr.hbm [resolvable:$true] %s57_s14 }
   0xb   :  { %35 = dma.hbm_to_vmem [thread:$0]  %s28_s26, 24576, %s30_s29, [#allocation4], %s3915_s30, %s3915_s30, %s3916_s12  }
   0xc   :  { %s3917_s15 = smov [#allocation8]   ;;  %s3918_s17 = smov 64  }
   0xd   :  { %s59_s16 = sshll.u32 %s3917_s15, 4  ;;  %s3919_s1 = smov 4   ;;  %s60_s16 = int_to_ptr.vmem [resolvable:$true] %s59_s16 }
   0xe   :  { %65 = dma.hbm_to_vmem [thread:$0]  %s58_s14, 2048, %s60_s16, [#allocation7], %s3918_s17, %s3918_s17, %s3919_s1  }
   0xf   :  { %3905 = dma.done.wait [#allocation4], 24576  }
  0x10   :  { %3906 = vsyncadd [#allocation4], 4294942720 }
  0x11   :  { %3907 = dma.done.wait [#allocation7], 10240  }
  0x12   :  { %3908 = vsyncadd [#allocation7], 4294957056  ;;  %v2509_v1 = vld [vmem:[#allocation3 + $0xe0] sm:$0xf]  ;;  %v3545_v2 = vld [vmem:[#allocation3 + $0xec] sm:$0xf0] }
  0x13   :  { %v2637_v3 = vld [vmem:[#allocation3 + $0x1e0] sm:$0xf]  ;;  %v2510_v4 = vor.u32 %v3545_v2, %v2509_v1  ;;  %v3577_v5 = vld [vmem:[#allocation3 + $0x1ec] sm:$0xf0]  ;;  %vm2334_vm0 = vcmask 523264   ;;  %vm2375_vm1 = vcmask 57344  }
  0x14   :  { %v2765_v6 = vld [vmem:[#allocation3 + $0x2e0] sm:$0xf]  ;;  %v3609_v7 = vld [vmem:[#allocation3 + $0x2ec] sm:$0xf0]  ;;  %v2638_v8 = vor.u32 %v3577_v5, %v2637_v3 }
  0x15   :  { %v2766_v9 = vor.u32 %v3609_v7, %v2765_v6  ;;  %v2893_v10 = vld [vmem:[#allocation3 + $0x3e0] sm:$0xf]  ;;  %v3641_v11 = vld [vmem:[#allocation3 + $0x3ec] sm:$0xf0]  ;;  %1262 = vmatpush.bf16.msra.mxu0 %v2510_v4 }
  0x16   :  { %v2493_v12 = vld [vmem:[#allocation3 + $0xc0] sm:$0xf]  ;;  %v2894_v13 = vor.u32 %v3641_v11, %v2893_v10  ;;  %v3541_v14 = vld [vmem:[#allocation3 + $0xcc] sm:$0xf0]  ;;  %1275 = vmatpush.bf16.msra.mxu1 %v2638_v8 }
  0x17   :  { %v2621_v15 = vld [vmem:[#allocation3 + $0x1c0] sm:$0xf]  ;;  %v3573_v16 = vld [vmem:[#allocation3 + $0x1cc] sm:$0xf0]  ;;  %1288 = vmatpush.bf16.msra.mxu2 %v2766_v9  ;;  %v2494_v17 = vor.u32 %v3541_v14, %v2493_v12 }
  0x18   :  { %v2622_v18 = vor.u32 %v3573_v16, %v2621_v15  ;;  %v2749_v19 = vld [vmem:[#allocation3 + $0x2c0] sm:$0xf]  ;;  %v3605_v20 = vld [vmem:[#allocation3 + $0x2cc] sm:$0xf0]  ;;  %1301 = vmatpush.bf16.msra.mxu3 %v2894_v13 }
  0x19   :  { %v2877_v21 = vld [vmem:[#allocation3 + $0x3c0] sm:$0xf]  ;;  %v2750_v22 = vor.u32 %v3605_v20, %v2749_v19  ;;  %v3637_v23 = vld [vmem:[#allocation3 + $0x3cc] sm:$0xf0]  ;;  %1263 = vmatpush.bf16.msra.mxu0 %v2494_v17 }
  0x1a   :  { %v2477_v24 = vld [vmem:[#allocation3 + $0xa0] sm:$0xf]  ;;  %v3537_v25 = vld [vmem:[#allocation3 + $0xac] sm:$0xf0]  ;;  %v2878_v26 = vor.u32 %v3637_v23, %v2877_v21  ;;  %1276 = vmatpush.bf16.msra.mxu1 %v2622_v18 }
  0x1b   :  { %v2605_v27 = vld [vmem:[#allocation3 + $0x1a0] sm:$0xf]  ;;  %v3569_v28 = vld [vmem:[#allocation3 + $0x1ac] sm:$0xf0]  ;;  %v2478_v30 = vor.u32 %v3537_v25, %v2477_v24  ;;  %1289 = vmatpush.bf16.msra.mxu2 %v2750_v22 }
  0x1c   :  { %v2733_v29 = vld [vmem:[#allocation3 + $0x2a0] sm:$0xf]  ;;  %v3601_v31 = vld [vmem:[#allocation3 + $0x2ac] sm:$0xf0]  ;;  %v2606_v34 = vor.u32 %v3569_v28, %v2605_v27  ;;  %1302 = vmatpush.bf16.msra.mxu3 %v2878_v26 }
  0x1d   :  { %v2861_v32 = vld [vmem:[#allocation3 + $0x3a0] sm:$0xf]  ;;  %v3633_v33 = vld [vmem:[#allocation3 + $0x3ac] sm:$0xf0]  ;;  %v2734_v35 = vor.u32 %v3601_v31, %v2733_v29  ;;  %1264 = vmatpush.bf16.msra.mxu0 %v2478_v30 }
  0x1e   :  { %v2461_v36 = vld [vmem:[#allocation3 + $0x80] sm:$0xf]  ;;  %v3533_v37 = vld [vmem:[#allocation3 + $0x8c] sm:$0xf0]  ;;  %v2862_v39 = vor.u32 %v3633_v33, %v2861_v32  ;;  %1277 = vmatpush.bf16.msra.mxu1 %v2606_v34  ;;  %v3543_v34 = vld [vmem:[#allocation3 + $0xe4] sm:$0xf] }
  0x1f   :  { %v2589_v38 = vld [vmem:[#allocation3 + $0x180] sm:$0xf]  ;;  %v3565_v40 = vld [vmem:[#allocation3 + $0x18c] sm:$0xf0]  ;;  %v2462_v45 = vor.u32 %v3533_v37, %v2461_v36  ;;  %1290 = vmatpush.bf16.msra.mxu2 %v2734_v35  ;;  %v2511_v35 = vld [vmem:[#allocation3 + $0xf0] sm:$0xf0] }
  0x20   :  { %v2717_v41 = vld [vmem:[#allocation3 + $0x280] sm:$0xf]  ;;  %v3597_v42 = vld [vmem:[#allocation3 + $0x28c] sm:$0xf0]  ;;  %v2590_v46 = vor.u32 %v3565_v40, %v2589_v38  ;;  %1303 = vmatpush.bf16.msra.mxu3 %v2862_v39  ;;  %v3575_v38 = vld [vmem:[#allocation3 + $0x1e4] sm:$0xf] }
  0x21   :  { %v2845_v43 = vld [vmem:[#allocation3 + $0x380] sm:$0xf]  ;;  %v3629_v44 = vld [vmem:[#allocation3 + $0x38c] sm:$0xf0]  ;;  %v2718_v47 = vor.u32 %v3597_v42, %v2717_v41  ;;  %1265 = vmatpush.bf16.msra.mxu0 %v2462_v45  ;;  %v2639_v39 = vld [vmem:[#allocation3 + $0x1f0] sm:$0xf0] }
  0x22   :  { %v2445_v48 = vld [vmem:[#allocation3 + $0x60] sm:$0xf]  ;;  %v3529_v49 = vld [vmem:[#allocation3 + $0x6c] sm:$0xf0]  ;;  %v2846_v51 = vor.u32 %v3629_v44, %v2845_v43  ;;  %1278 = vmatpush.bf16.msra.mxu1 %v2590_v46  ;;  %v2514_v43 = vor.u32 %v3543_v34, %v2511_v35 }
  0x23   :  { %v2573_v50 = vld [vmem:[#allocation3 + $0x160] sm:$0xf]  ;;  %v3561_v52 = vld [vmem:[#allocation3 + $0x16c] sm:$0xf0]  ;;  %v2446_v57 = vor.u32 %v3529_v49, %v2445_v48  ;;  %1291 = vmatpush.bf16.msra.mxu2 %v2718_v47  ;;  %v2642_v47 = vor.u32 %v3575_v38, %v2639_v39  ;;  %v3539_v49 = vld [vmem:[#allocation3 + $0xc4] sm:$0xf] }
  0x24   :  { %v2701_v53 = vld [vmem:[#allocation3 + $0x260] sm:$0xf]  ;;  %v3593_v54 = vld [vmem:[#allocation3 + $0x26c] sm:$0xf0]  ;;  %v2574_v58 = vor.u32 %v3561_v52, %v2573_v50  ;;  %1304 = vmatpush.bf16.msra.mxu3 %v2846_v51  ;;  %v2495_v50 = vld [vmem:[#allocation3 + $0xd0] sm:$0xf0] }
  0x25   :  { %v2829_v55 = vld [vmem:[#allocation3 + $0x360] sm:$0xf]  ;;  %v3625_v56 = vld [vmem:[#allocation3 + $0x36c] sm:$0xf0]  ;;  %v2702_v59 = vor.u32 %v3593_v54, %v2701_v53  ;;  %1266 = vmatpush.bf16.msra.mxu0 %v2446_v57  ;;  %v3571_v51 = vld [vmem:[#allocation3 + $0x1c4] sm:$0xf] }
  0x26   :  { %v2429_v60 = vld [vmem:[#allocation3 + $0x40] sm:$0xf]  ;;  %v3525_v61 = vld [vmem:[#allocation3 + $0x4c] sm:$0xf0]  ;;  %v2830_v63 = vor.u32 %v3625_v56, %v2829_v55  ;;  %1279 = vmatpush.bf16.msra.mxu1 %v2574_v58  ;;  %v2623_v52 = vld [vmem:[#allocation3 + $0x1d0] sm:$0xf0]  ;;  %v2498_v56 = vor.u32 %v3539_v49, %v2495_v50 }
  0x27   :  { %v2557_v62 = vld [vmem:[#allocation3 + $0x140] sm:$0xf]  ;;  %v3557_v0 = vld [vmem:[#allocation3 + $0x14c] sm:$0xf0]  ;;  %v2430_v5 = vor.u32 %v3525_v61, %v2429_v60  ;;  %1292 = vmatpush.bf16.msra.mxu2 %v2702_v59  ;;  %v2626_v60 = vor.u32 %v3571_v51, %v2623_v52  ;;  %v3535_v61 = vld [vmem:[#allocation3 + $0xa4] sm:$0xf] }
  0x28   :  { %v2685_v1 = vld [vmem:[#allocation3 + $0x240] sm:$0xf]  ;;  %v3589_v2 = vld [vmem:[#allocation3 + $0x24c] sm:$0xf0]  ;;  %v2558_v6 = vor.u32 %v3557_v0, %v2557_v62  ;;  %1305 = vmatpush.bf16.msra.mxu3 %v2830_v63  ;;  %v2479_v62 = vld [vmem:[#allocation3 + $0xb0] sm:$0xf0] }
  0x29   :  { %v2813_v3 = vld [vmem:[#allocation3 + $0x340] sm:$0xf]  ;;  %v3621_v4 = vld [vmem:[#allocation3 + $0x34c] sm:$0xf0]  ;;  %v2686_v7 = vor.u32 %v3589_v2, %v2685_v1  ;;  %1267 = vmatpush.bf16.msra.mxu0 %v2430_v5  ;;  %v3567_v63 = vld [vmem:[#allocation3 + $0x1a4] sm:$0xf] }
  0x2a   :  { %v2413_v8 = vld [vmem:[#allocation3 + $0x20] sm:$0xf]  ;;  %v3521_v9 = vld [vmem:[#allocation3 + $0x2c] sm:$0xf0]  ;;  %v2814_v11 = vor.u32 %v3621_v4, %v2813_v3  ;;  %1280 = vmatpush.bf16.msra.mxu1 %v2558_v6  ;;  %v2607_v0 = vld [vmem:[#allocation3 + $0x1b0] sm:$0xf0] }
  0x2b   :  { %v2541_v10 = vld [vmem:[#allocation3 + $0x120] sm:$0xf]  ;;  %v3553_v12 = vld [vmem:[#allocation3 + $0x12c] sm:$0xf0]  ;;  %v2414_v17 = vor.u32 %v3521_v9, %v2413_v8  ;;  %1293 = vmatpush.bf16.msra.mxu2 %v2686_v7  ;;  %v2482_v7 = vor.u32 %v3535_v61, %v2479_v62 }
  0x2c   :  { %v2669_v13 = vld [vmem:[#allocation3 + $0x220] sm:$0xf]  ;;  %v3585_v14 = vld [vmem:[#allocation3 + $0x22c] sm:$0xf0]  ;;  %v2542_v20 = vor.u32 %v3553_v12, %v2541_v10  ;;  %1306 = vmatpush.bf16.msra.mxu3 %v2814_v11  ;;  %v89_v11 = vld [vmem:[%s4111_s0 + $0x8] sm:$0xff] }
  0x2d   :  { %v2797_v15 = vld [vmem:[#allocation3 + $0x320] sm:$0xf]  ;;  %v3617_v16 = vld [vmem:[#allocation3 + $0x32c] sm:$0xf0]  ;;  %v2670_v21 = vor.u32 %v3585_v14, %v2669_v13  ;;  %1268 = vmatpush.bf16.msra.mxu0 %v2414_v17  ;;  %v91_v12 = vld [vmem:[%s4111_s0 + $0x18] sm:$0xff]  ;;  %v2610_v13 = vor.u32 %v3567_v63, %v2607_v0  ;;  %v4009_v17 = vpack.c.bf16 %v89_v11, %v89_v11 }
  0x2e   :  { %v2397_v18 = vld [vmem:[#allocation3] sm:$0xf]  ;;  %v3517_v19 = vld [vmem:[#allocation3 + $0xc] sm:$0xf0]  ;;  %v2798_v25 = vor.u32 %v3617_v16, %v2797_v15  ;;  %1281 = vmatpush.bf16.msra.mxu1 %v2542_v20  ;;  %v3531_v15 = vld [vmem:[#allocation3 + $0x84] sm:$0xf]  ;;  %v4013_v20 = vpack.c.bf16 %v91_v12, %v91_v12 }
  0x2f   :  { %v2525_v22 = vld [vmem:[#allocation3 + $0x100] sm:$0xf]  ;;  %v3549_v23 = vld [vmem:[#allocation3 + $0x10c] sm:$0xf0]  ;;  %v2398_v32 = vor.u32 %v3517_v19, %v2397_v18  ;;  %1294 = vmatpush.bf16.msra.mxu2 %v2670_v21  ;;  %v2463_v16 = vld [vmem:[#allocation3 + $0x90] sm:$0xf0] }
  0x30   :  { %v2653_v24 = vld [vmem:[#allocation3 + $0x200] sm:$0xf]  ;;  %v3581_v26 = vld [vmem:[#allocation3 + $0x20c] sm:$0xf0]  ;;  %v2526_v36 = vor.u32 %v3549_v23, %v2525_v22  ;;  %1307 = vmatpush.bf16.msra.mxu3 %v2798_v25  ;;  %v3563_v18 = vld [vmem:[#allocation3 + $0x184] sm:$0xf]  ;;  %v2466_v23 = vor.u32 %v3531_v15, %v2463_v16 }
  0x31   :  { %v2781_v27 = vld [vmem:[#allocation3 + $0x300] sm:$0xf]  ;;  %v3613_v28 = vld [vmem:[#allocation3 + $0x30c] sm:$0xf0]  ;;  %v2654_v37 = vor.u32 %v3581_v26, %v2653_v24  ;;  %1269 = vmatpush.bf16.msra.mxu0 %v2398_v32  ;;  %v2591_v19 = vld [vmem:[#allocation3 + $0x190] sm:$0xf0] }
  0x32   :  { %v3021_v29 = vld [vmem:[#allocation3 + $0x4e0] sm:$0xf]  ;;  %v3673_v30 = vld [vmem:[#allocation3 + $0x4ec] sm:$0xf0]  ;;  %v2782_v40 = vor.u32 %v3613_v28, %v2781_v27  ;;  %1282 = vmatpush.bf16.msra.mxu1 %v2526_v36  ;;  %v2594_v27 = vor.u32 %v3563_v18, %v2591_v19  ;;  %v2575_v32 = vld [vmem:[#allocation3 + $0x170] sm:$0xf0] }
  0x33   :  { %v3149_v31 = vld [vmem:[#allocation3 + $0x5e0] sm:$0xf]  ;;  %v3705_v33 = vld [vmem:[#allocation3 + $0x5ec] sm:$0xf0]  ;;  %v3022_v41 = vor.u32 %v3673_v30, %v3021_v29  ;;  %1295 = vmatpush.bf16.msra.mxu2 %v2654_v37  ;;  %v3527_v29 = vld [vmem:[#allocation3 + $0x64] sm:$0xf] }
  0x34   :  { %v3150_v42 = vor.u32 %v3705_v33, %v3149_v31  ;;  %v3005_v44 = vld [vmem:[#allocation3 + $0x4c0] sm:$0xf]  ;;  %v3669_v45 = vld [vmem:[#allocation3 + $0x4cc] sm:$0xf0]  ;;  %1308 = vmatpush.bf16.msra.mxu3 %v2782_v40  ;;  %v2447_v30 = vld [vmem:[#allocation3 + $0x70] sm:$0xf0] }
  0x35   :  { %v3133_v46 = vld [vmem:[#allocation3 + $0x5c0] sm:$0xf]  ;;  %v3701_v48 = vld [vmem:[#allocation3 + $0x5cc] sm:$0xf0]  ;;  %1314 = vmatpush.bf16.msrb.mxu0 %v3022_v41  ;;  %v3006_v53 = vor.u32 %v3669_v45, %v3005_v44  ;;  %1283 = vmatmul.bf16.vlgmr.msra.gmra.mxu1 %v4009_v17  ;;  %v3559_v31 = vld [vmem:[#allocation3 + $0x164] sm:$0xf]  ;;  %v2450_v35 = vor.u32 %v3527_v29, %v2447_v30 }
  0x36   :  { %v2989_v54 = vld [vmem:[#allocation3 + $0x4a0] sm:$0xf]  ;;  %1327 = vmatpush.bf16.msrb.mxu1 %v3150_v42  ;;  %v3134_v55 = vor.u32 %v3701_v48, %v3133_v46  ;;  %v3665_v57 = vld [vmem:[#allocation3 + $0x4ac] sm:$0xf0]  ;;  %v2578_v39 = vor.u32 %v3559_v31, %v2575_v32  ;;  %v3523_v41 = vld [vmem:[#allocation3 + $0x44] sm:$0xf] }
  0x37   :  { %1340 = vmatpush.bf16.msrb.mxu2 %v2514_v43  ;;  %v3117_v58 = vld [vmem:[#allocation3 + $0x5a0] sm:$0xf]  ;;  %v3697_v59 = vld [vmem:[#allocation3 + $0x5ac] sm:$0xf0]  ;;  %v2990_v2 = vor.u32 %v3665_v57, %v2989_v54  ;;  %1309 = vmatmul.bf16.vlgmr.msra.gmra.mxu3 %v4013_v20  ;;  %v2431_v42 = vld [vmem:[#allocation3 + $0x50] sm:$0xf0] }
  0x38   :  { %1353 = vmatpush.bf16.msrb.mxu3 %v2642_v47  ;;  %v2973_v1 = vld [vmem:[#allocation3 + $0x480] sm:$0xf]  ;;  %v3118_v3 = vor.u32 %v3697_v59, %v3117_v58  ;;  %v3661_v4 = vld [vmem:[#allocation3 + $0x48c] sm:$0xf0]  ;;  %v3555_v43 = vld [vmem:[#allocation3 + $0x144] sm:$0xf]  ;;  %v2434_v47 = vor.u32 %v3523_v41, %v2431_v42 }
  0x39   :  { %1315 = vmatpush.bf16.msrb.mxu0 %v3006_v53  ;;  %v88_v5 = vld [vmem:[%s4111_s0] sm:$0xff]  ;;  %v90_v6 = vld [vmem:[%s4111_s0 + $0x10] sm:$0xff]  ;;  %v2974_v21 = vor.u32 %v3661_v4, %v2973_v1 }
  0x3a   :  { %1328 = vmatpush.bf16.msrb.mxu1 %v3134_v55  ;;  %v3101_v8 = vld [vmem:[#allocation3 + $0x580] sm:$0xf]  ;;  %v3999_v9 = vpack.c.bf16 %v88_v5, %v88_v5  ;;  %v4001_v10 = vpack.c.bf16 %v90_v6, %v90_v6  ;;  %v3693_v14 = vld [vmem:[#allocation3 + $0x58c] sm:$0xf0]  ;;  %v2559_v44 = vld [vmem:[#allocation3 + $0x150] sm:$0xf0] }
  0x3b   :  { %1341 = vmatpush.bf16.msrb.mxu2 %v2498_v56  ;;  %v3102_v22 = vor.u32 %v3693_v14, %v3101_v8  ;;  %v2957_v24 = vld [vmem:[#allocation3 + $0x460] sm:$0xf]  ;;  %v3657_v25 = vld [vmem:[#allocation3 + $0x46c] sm:$0xf0]  ;;  %v2562_v51 = vor.u32 %v3555_v43, %v2559_v44  ;;  %v3519_v53 = vld [vmem:[#allocation3 + $0x24] sm:$0xf] }
  0x3c   :  { %1354 = vmatpush.bf16.msrb.mxu3 %v2626_v60  ;;  %1270 = vmatmul.bf16.vlgmr.msra.gmra.mxu0 %v3999_v9  ;;  %v3085_v26 = vld [vmem:[#allocation3 + $0x560] sm:$0xf]  ;;  %v3689_v28 = vld [vmem:[#allocation3 + $0x56c] sm:$0xf0]  ;;  %v2958_v33 = vor.u32 %v3657_v25, %v2957_v24  ;;  %v2415_v54 = vld [vmem:[#allocation3 + $0x30] sm:$0xf0] }
  0x3d   :  { %1296 = vmatmul.bf16.vlgmr.msra.gmra.mxu2 %v4001_v10  ;;  %1316 = vmatpush.bf16.msrb.mxu0 %v2990_v2  ;;  %v3086_v34 = vor.u32 %v3689_v28, %v3085_v26  ;;  %v2941_v36 = vld [vmem:[#allocation3 + $0x440] sm:$0xf]  ;;  %v3653_v37 = vld [vmem:[#allocation3 + $0x44c] sm:$0xf0]  ;;  %v3551_v55 = vld [vmem:[#allocation3 + $0x124] sm:$0xf]  ;;  %v2418_v61 = vor.u32 %v3519_v53, %v2415_v54 }
  0x3e   :  { %1329 = vmatpush.bf16.msrb.mxu1 %v3118_v3  ;;  %v3069_v38 = vld [vmem:[#allocation3 + $0x540] sm:$0xf]  ;;  %v3685_v40 = vld [vmem:[#allocation3 + $0x54c] sm:$0xf0]  ;;  %v2942_v45 = vor.u32 %v3653_v37, %v2941_v36  ;;  %v2543_v56 = vld [vmem:[#allocation3 + $0x130] sm:$0xf0] }
  0x3f   :  { %1342 = vmatpush.bf16.msrb.mxu2 %v2482_v7  ;;  %v3070_v46 = vor.u32 %v3685_v40, %v3069_v38  ;;  %v2925_v48 = vld [vmem:[#allocation3 + $0x420] sm:$0xf]  ;;  %v3649_v49 = vld [vmem:[#allocation3 + $0x42c] sm:$0xf0]  ;;  %v3515_v0 = vld [vmem:[#allocation3 + $0x4] sm:$0xf]  ;;  %v2546_v1 = vor.u32 %v3551_v55, %v2543_v56 }
  0x40   :  { %1355 = vmatpush.bf16.msrb.mxu3 %v2610_v13  ;;  %v3053_v50 = vld [vmem:[#allocation3 + $0x520] sm:$0xf]  ;;  %v3681_v52 = vld [vmem:[#allocation3 + $0x52c] sm:$0xf0]  ;;  %v2926_v57 = vor.u32 %v3649_v49, %v2925_v48  ;;  %v2399_v2 = vld [vmem:[#allocation3 + $0x10] sm:$0xf0] }
  0x41   :  { %1317 = vmatpush.bf16.msrb.mxu0 %v2974_v21  ;;  %v2909_v58 = vld [vmem:[#allocation3 + $0x400] sm:$0xf]  ;;  %v3645_v59 = vld [vmem:[#allocation3 + $0x40c] sm:$0xf0]  ;;  %v3054_v60 = vor.u32 %v3681_v52, %v3053_v50  ;;  %v3547_v3 = vld [vmem:[#allocation3 + $0x104] sm:$0xf]  ;;  %v2402_v15 = vor.u32 %v3515_v0, %v2399_v2 }
  0x42   :  { %1330 = vmatpush.bf16.msrb.mxu1 %v3102_v22  ;;  %v3037_v62 = vld [vmem:[#allocation3 + $0x500] sm:$0xf]  ;;  %v3677_v63 = vld [vmem:[#allocation3 + $0x50c] sm:$0xf0]  ;;  %v2527_v4 = vld [vmem:[#allocation3 + $0x110] sm:$0xf0]  ;;  %v2910_v8 = vor.u32 %v3645_v59, %v2909_v58 }
  0x43   :  { %1343 = vmatpush.bf16.msrb.mxu2 %v2466_v23  ;;  %v3607_v5 = vld [vmem:[#allocation3 + $0x2e4] sm:$0xf]  ;;  %v2767_v6 = vld [vmem:[#allocation3 + $0x2f0] sm:$0xf0]  ;;  %v3038_v14 = vor.u32 %v3677_v63, %v3037_v62  ;;  %v2530_v21 = vor.u32 %v3547_v3, %v2527_v4 }
  0x44   :  { %1356 = vmatpush.bf16.msrb.mxu3 %v2594_v27  ;;  %v3639_v7 = vld [vmem:[#allocation3 + $0x3e4] sm:$0xf]  ;;  %v2895_v11 = vld [vmem:[#allocation3 + $0x3f0] sm:$0xf0]  ;;  %v2770_v22 = vor.u32 %v3607_v5, %v2767_v6 }
  0x45   :  { %1318 = vmatpush.bf16.msrb.mxu0 %v2958_v33  ;;  %v3671_v12 = vld [vmem:[#allocation3 + $0x4e4] sm:$0xf]  ;;  %v3023_v13 = vld [vmem:[#allocation3 + $0x4f0] sm:$0xf0]  ;;  %v2898_v24 = vor.u32 %v3639_v7, %v2895_v11 }
  0x46   :  { %1331 = vmatpush.bf16.msrb.mxu1 %v3086_v34  ;;  %v3703_v16 = vld [vmem:[#allocation3 + $0x5e4] sm:$0xf]  ;;  %v3151_v18 = vld [vmem:[#allocation3 + $0x5f0] sm:$0xf0]  ;;  %v3026_v25 = vor.u32 %v3671_v12, %v3023_v13 }
  0x47   :  { %1344 = vmatpush.bf16.msrb.mxu2 %v2450_v35  ;;  %v92_v19 = vld [vmem:[%s4111_s0 + $0x20] sm:$0xff]  ;;  %v93_v23 = vld [vmem:[%s4111_s0 + $0x28] sm:$0xff]  ;;  %v2751_v27 = vld [vmem:[#allocation3 + $0x2d0] sm:$0xf0]  ;;  %v3154_v29 = vor.u32 %v3703_v16, %v3151_v18 }
  0x48   :  { %1357 = vmatpush.bf16.msrb.mxu3 %v2578_v39  ;;  %v3603_v26 = vld [vmem:[#allocation3 + $0x2c4] sm:$0xf]  ;;  %v2879_v30 = vld [vmem:[#allocation3 + $0x3d0] sm:$0xf0]  ;;  %v4023_v33 = vpack.c.bf16 %v92_v19, %v92_v19  ;;  %v4025_v36 = vpack.c.bf16 %v93_v23, %v93_v23 }
  0x49   :  { %1319 = vmatpush.bf16.msrb.mxu0 %v2942_v45  ;;  %v3635_v28 = vld [vmem:[#allocation3 + $0x3c4] sm:$0xf]  ;;  %v3007_v32 = vld [vmem:[#allocation3 + $0x4d0] sm:$0xf0]  ;;  %v2754_v37 = vor.u32 %v3603_v26, %v2751_v27 }
  0x4a   :  { %1332 = vmatpush.bf16.msrb.mxu1 %v3070_v46  ;;  %v3667_v31 = vld [vmem:[#allocation3 + $0x4c4] sm:$0xf]  ;;  %v3135_v35 = vld [vmem:[#allocation3 + $0x5d0] sm:$0xf0]  ;;  %v2882_v38 = vor.u32 %v3635_v28, %v2879_v30 }
  0x4b   :  { %1345 = vmatpush.bf16.msrb.mxu2 %v2434_v47  ;;  %v3699_v34 = vld [vmem:[#allocation3 + $0x5c4] sm:$0xf]  ;;  %v3010_v39 = vor.u32 %v3667_v31, %v3007_v32  ;;  %v2735_v41 = vld [vmem:[#allocation3 + $0x2b0] sm:$0xf0] }
  0x4c   :  { %1358 = vmatpush.bf16.msrb.mxu3 %v2562_v51  ;;  %v3599_v40 = vld [vmem:[#allocation3 + $0x2a4] sm:$0xf]  ;;  %v3138_v43 = vor.u32 %v3699_v34, %v3135_v35  ;;  %v2863_v44 = vld [vmem:[#allocation3 + $0x3b0] sm:$0xf0] }
  0x4d   :  { %1320 = vmatpush.bf16.msrb.mxu0 %v2926_v57  ;;  %v3631_v42 = vld [vmem:[#allocation3 + $0x3a4] sm:$0xf]  ;;  %v2991_v46 = vld [vmem:[#allocation3 + $0x4b0] sm:$0xf0]  ;;  %v2738_v49 = vor.u32 %v3599_v40, %v2735_v41 }
  0x4e   :  { %1333 = vmatpush.bf16.msrb.mxu1 %v3054_v60  ;;  %v3663_v45 = vld [vmem:[#allocation3 + $0x4a4] sm:$0xf]  ;;  %v3119_v48 = vld [vmem:[#allocation3 + $0x5b0] sm:$0xf0]  ;;  %v2866_v50 = vor.u32 %v3631_v42, %v2863_v44 }
  0x4f   :  { %1346 = vmatpush.bf16.msrb.mxu2 %v2418_v61  ;;  %v3695_v47 = vld [vmem:[#allocation3 + $0x5a4] sm:$0xf]  ;;  %v2994_v51 = vor.u32 %v3663_v45, %v2991_v46  ;;  %v2719_v53 = vld [vmem:[#allocation3 + $0x290] sm:$0xf0] }
  0x50   :  { %1359 = vmatpush.bf16.msrb.mxu3 %v2546_v1  ;;  %v3595_v52 = vld [vmem:[#allocation3 + $0x284] sm:$0xf]  ;;  %v3122_v55 = vor.u32 %v3695_v47, %v3119_v48  ;;  %v2847_v56 = vld [vmem:[#allocation3 + $0x390] sm:$0xf0] }
  0x51   :  { %1321 = vmatpush.bf16.msrb.mxu0 %v2910_v8  ;;  %v3627_v54 = vld [vmem:[#allocation3 + $0x384] sm:$0xf]  ;;  %v2975_v58 = vld [vmem:[#allocation3 + $0x490] sm:$0xf0]  ;;  %v2722_v61 = vor.u32 %v3595_v52, %v2719_v53  ;;  %v3546_v52 = vld [vmem:[#allocation3 + $0xf4] sm:$0xf0] }
  0x52   :  { %1334 = vmatpush.bf16.msrb.mxu1 %v3038_v14  ;;  %v3659_v57 = vld [vmem:[#allocation3 + $0x484] sm:$0xf]  ;;  %v3103_v60 = vld [vmem:[#allocation3 + $0x590] sm:$0xf0]  ;;  %v2850_v62 = vor.u32 %v3627_v54, %v2847_v56  ;;  %v2645_v53 = vld [vmem:[#allocation3 + $0x1e8] sm:$0xf] }
  0x53   :  { %1347 = vmatpush.bf16.msrb.mxu2 %v2402_v15  ;;  %v3691_v59 = vld [vmem:[#allocation3 + $0x584] sm:$0xf]  ;;  %v2978_v63 = vor.u32 %v3659_v57, %v2975_v58  ;;  %v2703_v1 = vld [vmem:[#allocation3 + $0x270] sm:$0xf0]  ;;  %v2773_v56 = vld [vmem:[#allocation3 + $0x2e8] sm:$0xf] }
  0x54   :  { %1360 = vmatpush.bf16.msrb.mxu3 %v2530_v21  ;;  %1322 = vmatmul.bf16.vlgmr.msrb.gmra.mxu0 %v4023_v33  ;;  %v3591_v0 = vld [vmem:[#allocation3 + $0x264] sm:$0xf]  ;;  %v3106_v3 = vor.u32 %v3691_v59, %v3103_v60  ;;  %v2831_v4 = vld [vmem:[#allocation3 + $0x370] sm:$0xf0]  ;;  %v3610_v57 = vld [vmem:[#allocation3 + $0x2f4] sm:$0xf0] }
  0x55   :  { %1366 = vmatpush.bf16.msra.mxu0 %v2770_v22  ;;  %1335 = vmatmul.bf16.vlgmr.msrb.gmra.mxu1 %v4025_v36  ;;  %v3623_v2 = vld [vmem:[#allocation3 + $0x364] sm:$0xf]  ;;  %v2959_v6 = vld [vmem:[#allocation3 + $0x470] sm:$0xf0]  ;;  %v2706_v11 = vor.u32 %v3591_v0, %v2703_v1  ;;  %v2901_v60 = vld [vmem:[#allocation3 + $0x3e8] sm:$0xf]  ;;  %v2774_v1 = vor.u32 %v3610_v57, %v2773_v56 }
  0x56   :  { %1379 = vmatpush.bf16.msra.mxu1 %v2898_v24  ;;  %1348 = vmatmul.bf16.vlgmr.msrb.gmra.mxu2 %v3999_v9  ;;  %v3655_v5 = vld [vmem:[#allocation3 + $0x464] sm:$0xf]  ;;  %v3087_v8 = vld [vmem:[#allocation3 + $0x570] sm:$0xf0]  ;;  %v2834_v12 = vor.u32 %v3623_v2, %v2831_v4  ;;  %v2501_v2 = vld [vmem:[#allocation3 + $0xc8] sm:$0xf] }
  0x57   :  { %1392 = vmatpush.bf16.msra.mxu2 %v3026_v25  ;;  %1361 = vmatmul.bf16.vlgmr.msrb.gmra.mxu3 %v4009_v17  ;;  %v3687_v7 = vld [vmem:[#allocation3 + $0x564] sm:$0xf]  ;;  %v2962_v13 = vor.u32 %v3655_v5, %v2959_v6  ;;  %v2687_v15 = vld [vmem:[#allocation3 + $0x250] sm:$0xf0]  ;;  %v2629_v4 = vld [vmem:[#allocation3 + $0x1c8] sm:$0xf] }
  0x58   :  { %1405 = vmatpush.bf16.msra.mxu3 %v3154_v29  ;;  %v3587_v14 = vld [vmem:[#allocation3 + $0x244] sm:$0xf]  ;;  %v3090_v18 = vor.u32 %v3687_v7, %v3087_v8  ;;  %v2815_v19 = vld [vmem:[#allocation3 + $0x350] sm:$0xf0]  ;;  %v3574_v6 = vld [vmem:[#allocation3 + $0x1d4] sm:$0xf0] }
  0x59   :  { %1367 = vmatpush.bf16.msra.mxu0 %v2754_v37  ;;  %v3619_v16 = vld [vmem:[#allocation3 + $0x344] sm:$0xf]  ;;  %v2943_v22 = vld [vmem:[#allocation3 + $0x450] sm:$0xf0]  ;;  %v2690_v25 = vor.u32 %v3587_v14, %v2687_v15  ;;  %v2757_v7 = vld [vmem:[#allocation3 + $0x2c8] sm:$0xf]  ;;  %v2630_v14 = vor.u32 %v3574_v6, %v2629_v4 }
  0x5a   :  { %1380 = vmatpush.bf16.msra.mxu1 %v2882_v38  ;;  %v3651_v21 = vld [vmem:[#allocation3 + $0x444] sm:$0xf]  ;;  %v3071_v24 = vld [vmem:[#allocation3 + $0x550] sm:$0xf0]  ;;  %v2818_v28 = vor.u32 %v3619_v16, %v2815_v19  ;;  %v3606_v8 = vld [vmem:[#allocation3 + $0x2d4] sm:$0xf0] }
  0x5b   :  { %1393 = vmatpush.bf16.msra.mxu2 %v3010_v39  ;;  %v3683_v23 = vld [vmem:[#allocation3 + $0x544] sm:$0xf]  ;;  %v2671_v27 = vld [vmem:[#allocation3 + $0x230] sm:$0xf0]  ;;  %v2946_v29 = vor.u32 %v3651_v21, %v2943_v22  ;;  %v2758_v15 = vor.u32 %v3606_v8, %v2757_v7  ;;  %v2485_v16 = vld [vmem:[#allocation3 + $0xa8] sm:$0xf] }
  0x5c   :  { %1406 = vmatpush.bf16.msra.mxu3 %v3138_v43  ;;  %v3583_v26 = vld [vmem:[#allocation3 + $0x224] sm:$0xf]  ;;  %v2799_v31 = vld [vmem:[#allocation3 + $0x330] sm:$0xf0]  ;;  %v3074_v34 = vor.u32 %v3683_v23, %v3071_v24  ;;  %v2613_v19 = vld [vmem:[#allocation3 + $0x1a8] sm:$0xf] }
  0x5d   :  { %1368 = vmatpush.bf16.msra.mxu0 %v2738_v49  ;;  %v3615_v30 = vld [vmem:[#allocation3 + $0x324] sm:$0xf]  ;;  %v2927_v35 = vld [vmem:[#allocation3 + $0x430] sm:$0xf0]  ;;  %v2674_v39 = vor.u32 %v3583_v26, %v2671_v27  ;;  %v3570_v22 = vld [vmem:[#allocation3 + $0x1b4] sm:$0xf0] }
  0x5e   :  { %1381 = vmatpush.bf16.msra.mxu1 %v2866_v50  ;;  %v3647_v32 = vld [vmem:[#allocation3 + $0x424] sm:$0xf]  ;;  %v3055_v38 = vld [vmem:[#allocation3 + $0x530] sm:$0xf0]  ;;  %v2802_v42 = vor.u32 %v3615_v30, %v2799_v31  ;;  %v2741_v23 = vld [vmem:[#allocation3 + $0x2a8] sm:$0xf] }
  0x5f   :  { %1394 = vmatpush.bf16.msra.mxu2 %v2994_v51  ;;  %v3679_v37 = vld [vmem:[#allocation3 + $0x524] sm:$0xf]  ;;  %v2655_v41 = vld [vmem:[#allocation3 + $0x210] sm:$0xf0]  ;;  %v2930_v43 = vor.u32 %v3647_v32, %v2927_v35  ;;  %v2517_v51 = vld [vmem:[#allocation3 + $0xe8] sm:$0xf] }
  0x60   :  { %1407 = vmatpush.bf16.msra.mxu3 %v3122_v55  ;;  %v3579_v40 = vld [vmem:[#allocation3 + $0x204] sm:$0xf]  ;;  %v2783_v45 = vld [vmem:[#allocation3 + $0x310] sm:$0xf0]  ;;  %v3058_v47 = vor.u32 %v3679_v37, %v3055_v38  ;;  %v3578_v55 = vld [vmem:[#allocation3 + $0x1f4] sm:$0xf0] }
  0x61   :  { %1369 = vmatpush.bf16.msra.mxu0 %v2722_v61  ;;  %v3611_v44 = vld [vmem:[#allocation3 + $0x304] sm:$0xf]  ;;  %v2911_v48 = vld [vmem:[#allocation3 + $0x410] sm:$0xf0]  ;;  %v2658_v54 = vor.u32 %v3579_v40, %v2655_v41  ;;  %v3642_v61 = vld [vmem:[#allocation3 + $0x3f4] sm:$0xf0]  ;;  %v2646_v0 = vor.u32 %v3578_v55, %v2645_v53 }
  0x62   :  { %1382 = vmatpush.bf16.msra.mxu1 %v2850_v62  ;;  %v3643_v46 = vld [vmem:[#allocation3 + $0x404] sm:$0xf]  ;;  %v3039_v50 = vld [vmem:[#allocation3 + $0x510] sm:$0xf0]  ;;  %v2786_v58 = vor.u32 %v3611_v44, %v2783_v45  ;;  %v2902_v5 = vor.u32 %v3642_v61, %v2901_v60  ;;  %v3602_v24 = vld [vmem:[#allocation3 + $0x2b4] sm:$0xf0] }
  0x63   :  { %1395 = vmatpush.bf16.msra.mxu2 %v2978_v63  ;;  %v3675_v49 = vld [vmem:[#allocation3 + $0x504] sm:$0xf]  ;;  %v2914_v59 = vor.u32 %v3643_v46, %v2911_v48  ;;  %v2518_v63 = vor.u32 %v3546_v52, %v2517_v51  ;;  %v3634_v26 = vld [vmem:[#allocation3 + $0x3b4] sm:$0xf0]  ;;  %v2469_v30 = vld [vmem:[#allocation3 + $0x88] sm:$0xf] }
  0x64   :  { %1408 = vmatpush.bf16.msra.mxu3 %v3106_v3  ;;  %v3042_v62 = vor.u32 %v3675_v49, %v3039_v50  ;;  %v3542_v3 = vld [vmem:[#allocation3 + $0xd4] sm:$0xf0]  ;;  %v2597_v32 = vld [vmem:[#allocation3 + $0x188] sm:$0xf] }
  0x65   :  { %1370 = vmatpush.bf16.msra.mxu0 %v2706_v11  ;;  %v2885_v11 = vld [vmem:[#allocation3 + $0x3c8] sm:$0xf]  ;;  %v3534_v31 = vld [vmem:[#allocation3 + $0x94] sm:$0xf0] }
  0x66   :  { %1383 = vmatpush.bf16.msra.mxu1 %v2834_v12  ;;  %v3638_v12 = vld [vmem:[#allocation3 + $0x3d4] sm:$0xf0]  ;;  %v2725_v37 = vld [vmem:[#allocation3 + $0x288] sm:$0xf]  ;;  %v2470_v41 = vor.u32 %v3534_v31, %v2469_v30 }
  0x67   :  { %1396 = vmatpush.bf16.msra.mxu2 %v2962_v13  ;;  %v2502_v13 = vor.u32 %v3542_v3, %v2501_v2  ;;  %v2886_v21 = vor.u32 %v3638_v12, %v2885_v11  ;;  %v3566_v35 = vld [vmem:[#allocation3 + $0x194] sm:$0xf0]  ;;  %v2453_v44 = vld [vmem:[#allocation3 + $0x68] sm:$0xf] }
  0x68   :  { %1409 = vmatpush.bf16.msra.mxu3 %v3090_v18  ;;  %v3538_v18 = vld [vmem:[#allocation3 + $0xb4] sm:$0xf0]  ;;  %v2581_v46 = vld [vmem:[#allocation3 + $0x168] sm:$0xf] }
  0x69   :  { %1371 = vmatpush.bf16.msra.mxu0 %v2690_v25  ;;  %v2869_v25 = vld [vmem:[#allocation3 + $0x3a8] sm:$0xf]  ;;  %v2486_v27 = vor.u32 %v3538_v18, %v2485_v16  ;;  %v3598_v38 = vld [vmem:[#allocation3 + $0x294] sm:$0xf0] }
  0x6a   :  { %1384 = vmatpush.bf16.msra.mxu1 %v2818_v28  ;;  %v2614_v28 = vor.u32 %v3570_v22, %v2613_v19  ;;  %v3630_v40 = vld [vmem:[#allocation3 + $0x394] sm:$0xf0]  ;;  %v2709_v49 = vld [vmem:[#allocation3 + $0x268] sm:$0xf] }
  0x6b   :  { %1397 = vmatpush.bf16.msra.mxu2 %v2946_v29  ;;  %v2742_v29 = vor.u32 %v3602_v24, %v2741_v23  ;;  %v3530_v45 = vld [vmem:[#allocation3 + $0x74] sm:$0xf0]  ;;  %v2837_v51 = vld [vmem:[#allocation3 + $0x368] sm:$0xf] }
  0x6c   :  { %1410 = vmatpush.bf16.msra.mxu3 %v3074_v34  ;;  %v2870_v34 = vor.u32 %v3634_v26, %v2869_v25  ;;  %v3562_v48 = vld [vmem:[#allocation3 + $0x174] sm:$0xf0]  ;;  %v2454_v53 = vor.u32 %v3530_v45, %v2453_v44  ;;  %v2437_v56 = vld [vmem:[#allocation3 + $0x48] sm:$0xf] }
  0x6d   :  { %1372 = vmatpush.bf16.msra.mxu0 %v2674_v39  ;;  %v2853_v39 = vld [vmem:[#allocation3 + $0x388] sm:$0xf]  ;;  %v3594_v50 = vld [vmem:[#allocation3 + $0x274] sm:$0xf0] }
  0x6e   :  { %1385 = vmatpush.bf16.msra.mxu1 %v2802_v42  ;;  %v2598_v42 = vor.u32 %v3566_v35, %v2597_v32  ;;  %v3626_v52 = vld [vmem:[#allocation3 + $0x374] sm:$0xf0]  ;;  %v2710_v55 = vor.u32 %v3594_v50, %v2709_v49  ;;  %v2693_v61 = vld [vmem:[#allocation3 + $0x248] sm:$0xf]  ;;  %v3544_v35 = vld [vmem:[#allocation3 + $0xec] sm:$0xf] }
  0x6f   :  { %1398 = vmatpush.bf16.msra.mxu2 %v2930_v43  ;;  %v2726_v43 = vor.u32 %v3598_v38, %v2725_v37  ;;  %v3526_v57 = vld [vmem:[#allocation3 + $0x54] sm:$0xf0]  ;;  %v2421_v4 = vld [vmem:[#allocation3 + $0x28] sm:$0xf]  ;;  %v2519_v37 = vld [vmem:[#allocation3 + $0xf8] sm:$0xf0] }
  0x70   :  { %1411 = vmatpush.bf16.msra.mxu3 %v3058_v47  ;;  %v2854_v47 = vor.u32 %v3630_v40, %v2853_v39  ;;  %v3558_v60 = vld [vmem:[#allocation3 + $0x154] sm:$0xf0]  ;;  %v2549_v6 = vld [vmem:[#allocation3 + $0x128] sm:$0xf]  ;;  %v3576_v40 = vld [vmem:[#allocation3 + $0x1ec] sm:$0xf]  ;;  %v2522_v45 = vor.u32 %v3544_v35, %v2519_v37 }
  0x71   :  { %1373 = vmatpush.bf16.msra.mxu0 %v2658_v54  ;;  %v2582_v54 = vor.u32 %v3562_v48, %v2581_v46  ;;  %v3554_v8 = vld [vmem:[#allocation3 + $0x134] sm:$0xf0]  ;;  %v2677_v11 = vld [vmem:[#allocation3 + $0x228] sm:$0xf] }
  0x72   :  { %1386 = vmatpush.bf16.msra.mxu1 %v2786_v58  ;;  %v2565_v58 = vld [vmem:[#allocation3 + $0x148] sm:$0xf]  ;;  %v3586_v12 = vld [vmem:[#allocation3 + $0x234] sm:$0xf0]  ;;  %v2550_v19 = vor.u32 %v3554_v8, %v2549_v6 }
  0x73   :  { %1399 = vmatpush.bf16.msra.mxu2 %v2914_v59  ;;  %v2838_v59 = vor.u32 %v3626_v52, %v2837_v51  ;;  %v2566_v2 = vor.u32 %v3558_v60, %v2565_v58  ;;  %v2405_v16 = vld [vmem:[#allocation3 + $0x8] sm:$0xf]  ;;  %v3518_v18 = vld [vmem:[#allocation3 + $0x14] sm:$0xf0]  ;;  %v3540_v51 = vld [vmem:[#allocation3 + $0xcc] sm:$0xf] }
  0x74   :  { %1412 = vmatpush.bf16.msra.mxu3 %v3042_v62  ;;  %1374 = vmatmul.bf16.vlgmr.msra.gmra.mxu0 %v4001_v10  ;;  %v3590_v62 = vld [vmem:[#allocation3 + $0x254] sm:$0xf0]  ;;  %v2533_v22 = vld [vmem:[#allocation3 + $0x108] sm:$0xf]  ;;  %v2406_v32 = vor.u32 %v3518_v18, %v2405_v16  ;;  %v2503_v52 = vld [vmem:[#allocation3 + $0xd8] sm:$0xf0] }
  0x75   :  { %1418 = vmatpush.bf16.msrb.mxu0 %v2518_v63  ;;  %1387 = vmatmul.bf16.vlgmr.msra.gmra.mxu1 %v4013_v20  ;;  %v2821_v63 = vld [vmem:[#allocation3 + $0x348] sm:$0xf]  ;;  %v2694_v3 = vor.u32 %v3590_v62, %v2693_v61  ;;  %v3550_v23 = vld [vmem:[#allocation3 + $0x114] sm:$0xf0]  ;;  %v2599_v16 = vld [vmem:[#allocation3 + $0x198] sm:$0xf0] }
  0x76   :  { %1431 = vmatpush.bf16.msrb.mxu1 %v2646_v0  ;;  %1400 = vmatmul.bf16.vlgmr.msra.gmra.mxu2 %v4023_v33  ;;  %v3622_v0 = vld [vmem:[#allocation3 + $0x354] sm:$0xf0]  ;;  %v2661_v24 = vld [vmem:[#allocation3 + $0x208] sm:$0xf]  ;;  %v2534_v38 = vor.u32 %v3550_v23, %v2533_v22 }
  0x77   :  { %1444 = vmatpush.bf16.msrb.mxu2 %v2774_v1  ;;  %1413 = vmatmul.bf16.vlgmr.msra.gmra.mxu3 %v4025_v36  ;;  %v2438_v1 = vor.u32 %v3526_v57, %v2437_v56  ;;  %v2822_v7 = vor.u32 %v3622_v0, %v2821_v63  ;;  %v3582_v26 = vld [vmem:[#allocation3 + $0x214] sm:$0xf0]  ;;  %v3157_v31 = vld [vmem:[#allocation3 + $0x5e8] sm:$0xf]  ;;  %v2506_v57 = vor.u32 %v3540_v51, %v2503_v52  ;;  %v3536_v63 = vld [vmem:[#allocation3 + $0xac] sm:$0xf] }
  0x78   :  { %1457 = vmatpush.bf16.msrb.mxu3 %v2902_v5  ;;  %v3522_v5 = vld [vmem:[#allocation3 + $0x34] sm:$0xf0]  ;;  %v2662_v39 = vor.u32 %v3582_v26, %v2661_v24  ;;  %v3013_v46 = vld [vmem:[#allocation3 + $0x4c8] sm:$0xf]  ;;  %v2487_v0 = vld [vmem:[#allocation3 + $0xb8] sm:$0xf0] }
  0x79   :  { %1419 = vmatpush.bf16.msrb.mxu0 %v2502_v13  ;;  %v2805_v13 = vld [vmem:[#allocation3 + $0x328] sm:$0xf]  ;;  %v3674_v30 = vld [vmem:[#allocation3 + $0x4f4] sm:$0xf0] }
  0x7a   :  { %1432 = vmatpush.bf16.msrb.mxu1 %v2630_v14  ;;  %v3618_v14 = vld [vmem:[#allocation3 + $0x334] sm:$0xf0]  ;;  %v3141_v48 = vld [vmem:[#allocation3 + $0x5c8] sm:$0xf] }
  0x7b   :  { %1445 = vmatpush.bf16.msrb.mxu2 %v2758_v15  ;;  %v2422_v15 = vor.u32 %v3522_v5, %v2421_v4  ;;  %v2806_v25 = vor.u32 %v3618_v14, %v2805_v13  ;;  %v3702_v50 = vld [vmem:[#allocation3 + $0x5d4] sm:$0xf0]  ;;  %v2997_v58 = vld [vmem:[#allocation3 + $0x4a8] sm:$0xf]  ;;  %v2490_v5 = vor.u32 %v3536_v63, %v2487_v0  ;;  %v3532_v13 = vld [vmem:[#allocation3 + $0x8c] sm:$0xf] }
  0x7c   :  { %1458 = vmatpush.bf16.msrb.mxu3 %v2886_v21  ;;  %v2678_v21 = vor.u32 %v3586_v12, %v2677_v11  ;;  %v3142_v56 = vor.u32 %v3702_v50, %v3141_v48  ;;  %v3125_v60 = vld [vmem:[#allocation3 + $0x5a8] sm:$0xf]  ;;  %v3698_v62 = vld [vmem:[#allocation3 + $0x5b4] sm:$0xf0]  ;;  %v2471_v14 = vld [vmem:[#allocation3 + $0x98] sm:$0xf0] }
  0x7d   :  { %1420 = vmatpush.bf16.msrb.mxu0 %v2486_v27  ;;  %v2789_v27 = vld [vmem:[#allocation3 + $0x308] sm:$0xf]  ;;  %v3126_v4 = vor.u32 %v3698_v62, %v3125_v60  ;;  %v3694_v12 = vld [vmem:[#allocation3 + $0x594] sm:$0xf0]  ;;  %v3516_v0 = vld [vmem:[#allocation3 + $0xc] sm:$0xf] }
  0x7e   :  { %1433 = vmatpush.bf16.msrb.mxu1 %v2614_v28  ;;  %v3614_v28 = vld [vmem:[#allocation3 + $0x314] sm:$0xf0]  ;;  %v2981_v6 = vld [vmem:[#allocation3 + $0x488] sm:$0xf] }
  0x7f   :  { %1446 = vmatpush.bf16.msrb.mxu2 %v2742_v29  ;;  %v3029_v29 = vld [vmem:[#allocation3 + $0x4e8] sm:$0xf]  ;;  %v3658_v23 = vld [vmem:[#allocation3 + $0x474] sm:$0xf0] }
  0x80   :  { %1459 = vmatpush.bf16.msrb.mxu3 %v2870_v34  ;;  %v3706_v34 = vld [vmem:[#allocation3 + $0x5f4] sm:$0xf0]  ;;  %v3109_v8 = vld [vmem:[#allocation3 + $0x588] sm:$0xf] }
  0x81   :  { %1421 = vmatpush.bf16.msrb.mxu0 %v2470_v41  ;;  %v2647_v41 = vld [vmem:[#allocation3 + $0x1f8] sm:$0xf0]  ;;  %v3158_v44 = vor.u32 %v3706_v34, %v3157_v31  ;;  %v2965_v22 = vld [vmem:[#allocation3 + $0x468] sm:$0xf]  ;;  %v3690_v26 = vld [vmem:[#allocation3 + $0x574] sm:$0xf0] }
  0x82   :  { %1434 = vmatpush.bf16.msrb.mxu1 %v2598_v42  ;;  %v2790_v42 = vor.u32 %v3614_v28, %v2789_v27  ;;  %v2650_v49 = vor.u32 %v3576_v40, %v2647_v41  ;;  %v3093_v24 = vld [vmem:[#allocation3 + $0x568] sm:$0xf]  ;;  %v3528_v27 = vld [vmem:[#allocation3 + $0x6c] sm:$0xf]  ;;  %v2455_v28 = vld [vmem:[#allocation3 + $0x78] sm:$0xf0]  ;;  %v2966_v31 = vor.u32 %v3658_v23, %v2965_v22 }
  0x83   :  { %1447 = vmatpush.bf16.msrb.mxu2 %v2726_v43  ;;  %v3030_v43 = vor.u32 %v3674_v30, %v3029_v29  ;;  %v3560_v29 = vld [vmem:[#allocation3 + $0x16c] sm:$0xf]  ;;  %v2583_v30 = vld [vmem:[#allocation3 + $0x178] sm:$0xf0]  ;;  %v2458_v34 = vor.u32 %v3528_v27, %v2455_v28  ;;  %v2949_v35 = vld [vmem:[#allocation3 + $0x448] sm:$0xf] }
  0x84   :  { %1460 = vmatpush.bf16.msrb.mxu3 %v2854_v47  ;;  %v3670_v47 = vld [vmem:[#allocation3 + $0x4d4] sm:$0xf0]  ;;  %v3524_v41 = vld [vmem:[#allocation3 + $0x4c] sm:$0xf]  ;;  %v2933_v48 = vld [vmem:[#allocation3 + $0x428] sm:$0xf] }
  0x85   :  { %1422 = vmatpush.bf16.msrb.mxu0 %v2454_v53  ;;  %v3572_v53 = vld [vmem:[#allocation3 + $0x1cc] sm:$0xf]  ;;  %v3654_v37 = vld [vmem:[#allocation3 + $0x454] sm:$0xf0]  ;;  %v3061_v50 = vld [vmem:[#allocation3 + $0x528] sm:$0xf] }
  0x86   :  { %1435 = vmatpush.bf16.msrb.mxu1 %v2582_v54  ;;  %v2631_v54 = vld [vmem:[#allocation3 + $0x1d8] sm:$0xf0]  ;;  %v3686_v40 = vld [vmem:[#allocation3 + $0x554] sm:$0xf0]  ;;  %v3045_v62 = vld [vmem:[#allocation3 + $0x508] sm:$0xf] }
  0x87   :  { %1448 = vmatpush.bf16.msrb.mxu2 %v2710_v55  ;;  %v3014_v55 = vor.u32 %v3670_v47, %v3013_v46  ;;  %v2634_v61 = vor.u32 %v3572_v53, %v2631_v54  ;;  %v3682_v52 = vld [vmem:[#allocation3 + $0x534] sm:$0xf0]  ;;  %v3520_v53 = vld [vmem:[#allocation3 + $0x2c] sm:$0xf]  ;;  %v2423_v54 = vld [vmem:[#allocation3 + $0x38] sm:$0xf0] }
  0x88   :  { %1461 = vmatpush.bf16.msrb.mxu3 %v2838_v59  ;;  %v3666_v59 = vld [vmem:[#allocation3 + $0x4b4] sm:$0xf0]  ;;  %v3062_v60 = vor.u32 %v3682_v52, %v3061_v50  ;;  %v2887_v28 = vld [vmem:[#allocation3 + $0x3d8] sm:$0xf0]  ;;  %v3596_v50 = vld [vmem:[#allocation3 + $0x28c] sm:$0xf] }
  0x89   :  { %1423 = vmatpush.bf16.msrb.mxu0 %v2438_v1  ;;  %v3568_v1 = vld [vmem:[#allocation3 + $0x1ac] sm:$0xf]  ;;  %v3678_v63 = vld [vmem:[#allocation3 + $0x514] sm:$0xf0] }
  0x8a   :  { %1436 = vmatpush.bf16.msrb.mxu1 %v2566_v2  ;;  %v2615_v2 = vld [vmem:[#allocation3 + $0x1b8] sm:$0xf0]  ;;  %v3628_v52 = vld [vmem:[#allocation3 + $0x38c] sm:$0xf] }
  0x8b   :  { %1449 = vmatpush.bf16.msrb.mxu2 %v2694_v3  ;;  %v2998_v3 = vor.u32 %v3666_v59, %v2997_v58  ;;  %v2618_v11 = vor.u32 %v3568_v1, %v2615_v2  ;;  %v2917_v58 = vld [vmem:[#allocation3 + $0x408] sm:$0xf]  ;;  %v3646_v59 = vld [vmem:[#allocation3 + $0x414] sm:$0xf0]  ;;  %v2407_v2 = vld [vmem:[#allocation3 + $0x18] sm:$0xf0] }
  0x8c   :  { %1462 = vmatpush.bf16.msrb.mxu3 %v2822_v7  ;;  %v3662_v7 = vld [vmem:[#allocation3 + $0x494] sm:$0xf0] }
  0x8d   :  { %1424 = vmatpush.bf16.msrb.mxu0 %v2422_v15  ;;  %v3564_v15 = vld [vmem:[#allocation3 + $0x18c] sm:$0xf]  ;;  %v2982_v18 = vor.u32 %v3662_v7, %v2981_v6  ;;  %v2775_v6 = vld [vmem:[#allocation3 + $0x2f8] sm:$0xf0] }
  0x8e   :  { %1437 = vmatpush.bf16.msrb.mxu1 %v2550_v19  ;;  %v3110_v19 = vor.u32 %v3694_v12, %v3109_v8  ;;  %v3640_v7 = vld [vmem:[#allocation3 + $0x3ec] sm:$0xf]  ;;  %v2918_v8 = vor.u32 %v3646_v59, %v2917_v58 }
  0x8f   :  { %1450 = vmatpush.bf16.msrb.mxu2 %v2678_v21  ;;  %v2474_v21 = vor.u32 %v3532_v13, %v2471_v14  ;;  %v3672_v12 = vld [vmem:[#allocation3 + $0x4ec] sm:$0xf]  ;;  %v3031_v13 = vld [vmem:[#allocation3 + $0x4f8] sm:$0xf0]  ;;  %v3046_v14 = vor.u32 %v3678_v63, %v3045_v62 }
  0x90   :  { %1463 = vmatpush.bf16.msrb.mxu3 %v2806_v25  ;;  %v2602_v25 = vor.u32 %v3564_v15, %v2599_v16  ;;  %v2410_v15 = vor.u32 %v3516_v0, %v2407_v2  ;;  %v3704_v16 = vld [vmem:[#allocation3 + $0x5ec] sm:$0xf]  ;;  %v3034_v23 = vor.u32 %v3672_v12, %v3031_v13  ;;  %v2839_v0 = vld [vmem:[#allocation3 + $0x378] sm:$0xf0] }
  0x91   :  { %1425 = vmatpush.bf16.msrb.mxu0 %v2406_v32  ;;  %v3094_v32 = vor.u32 %v3690_v26, %v3093_v24  ;;  %v3604_v24 = vld [vmem:[#allocation3 + $0x2cc] sm:$0xf]  ;;  %v2967_v2 = vld [vmem:[#allocation3 + $0x478] sm:$0xf0] }
  0x92   :  { %1438 = vmatpush.bf16.msrb.mxu1 %v2534_v38  ;;  %v3077_v38 = vld [vmem:[#allocation3 + $0x548] sm:$0xf]  ;;  %v3636_v26 = vld [vmem:[#allocation3 + $0x3cc] sm:$0xf]  ;;  %v2695_v12 = vld [vmem:[#allocation3 + $0x258] sm:$0xf0] }
  0x93   :  { %1451 = vmatpush.bf16.msrb.mxu2 %v2662_v39  ;;  %v2586_v39 = vor.u32 %v3560_v29, %v2583_v30  ;;  %v3078_v46 = vor.u32 %v3686_v40, %v3077_v38  ;;  %v3668_v29 = vld [vmem:[#allocation3 + $0x4cc] sm:$0xf]  ;;  %v3015_v30 = vld [vmem:[#allocation3 + $0x4d8] sm:$0xf0] }
  0x94   :  { %1464 = vmatpush.bf16.msrb.mxu3 %v2790_v42  ;;  %1426 = vmatmul.bf16.vlgmr.msrb.gmra.mxu0 %v3999_v9  ;;  %v2439_v42 = vld [vmem:[#allocation3 + $0x58] sm:$0xf0]  ;;  %v3600_v38 = vld [vmem:[#allocation3 + $0x2ac] sm:$0xf] }
  0x95   :  { %1470 = vmatpush.bf16.msra.mxu0 %v3030_v43  ;;  %1439 = vmatmul.bf16.vlgmr.msrb.gmra.mxu1 %v4009_v17  ;;  %v3556_v43 = vld [vmem:[#allocation3 + $0x14c] sm:$0xf]  ;;  %v2442_v47 = vor.u32 %v3524_v41, %v2439_v42  ;;  %v2871_v42 = vld [vmem:[#allocation3 + $0x3b8] sm:$0xf0] }
  0x96   :  { %1483 = vmatpush.bf16.msra.mxu1 %v3158_v44  ;;  %1452 = vmatmul.bf16.vlgmr.msrb.gmra.mxu2 %v4001_v10  ;;  %v2567_v44 = vld [vmem:[#allocation3 + $0x158] sm:$0xf0]  ;;  %v3632_v40 = vld [vmem:[#allocation3 + $0x3ac] sm:$0xf] }
  0x97   :  { %1496 = vmatpush.bf16.msra.mxu2 %v2522_v45  ;;  %1465 = vmatmul.bf16.vlgmr.msrb.gmra.mxu3 %v4013_v20  ;;  %v2950_v45 = vor.u32 %v3654_v37, %v2949_v35  ;;  %v2570_v51 = vor.u32 %v3556_v43, %v2567_v44  ;;  %v2890_v35 = vor.u32 %v3636_v26, %v2887_v28  ;;  %v3664_v43 = vld [vmem:[#allocation3 + $0x4ac] sm:$0xf]  ;;  %v2999_v44 = vld [vmem:[#allocation3 + $0x4b8] sm:$0xf0] }
  0x98   :  { %1509 = vmatpush.bf16.msra.mxu3 %v2650_v49  ;;  %v3650_v49 = vld [vmem:[#allocation3 + $0x434] sm:$0xf0]  ;;  %v3018_v37 = vor.u32 %v3668_v29, %v3015_v30  ;;  %v3624_v62 = vld [vmem:[#allocation3 + $0x36c] sm:$0xf]  ;;  %v2807_v30 = vld [vmem:[#allocation3 + $0x338] sm:$0xf0] }
  0x99   :  { %1471 = vmatpush.bf16.msra.mxu0 %v3014_v55  ;;  %v3552_v55 = vld [vmem:[#allocation3 + $0x12c] sm:$0xf] }
  0x9a   :  { %1484 = vmatpush.bf16.msra.mxu1 %v3142_v56  ;;  %v2551_v56 = vld [vmem:[#allocation3 + $0x138] sm:$0xf0]  ;;  %v3620_v13 = vld [vmem:[#allocation3 + $0x34c] sm:$0xf] }
  0x9b   :  { %1497 = vmatpush.bf16.msra.mxu2 %v2506_v57  ;;  %v2934_v57 = vor.u32 %v3650_v49, %v2933_v48  ;;  %v2554_v1 = vor.u32 %v3552_v55, %v2551_v56  ;;  %v2874_v48 = vor.u32 %v3632_v40, %v2871_v42  ;;  %v3002_v49 = vor.u32 %v3664_v43, %v2999_v44  ;;  %v3660_v55 = vld [vmem:[#allocation3 + $0x48c] sm:$0xf]  ;;  %v2983_v56 = vld [vmem:[#allocation3 + $0x498] sm:$0xf0] }
  0x9c   :  { %1510 = vmatpush.bf16.msra.mxu3 %v2634_v61  ;;  %v2426_v61 = vor.u32 %v3520_v53, %v2423_v54  ;;  %v2855_v54 = vld [vmem:[#allocation3 + $0x398] sm:$0xf0]  ;;  %v3584_v26 = vld [vmem:[#allocation3 + $0x22c] sm:$0xf] }
  0x9d   :  { %1472 = vmatpush.bf16.msra.mxu0 %v2998_v3  ;;  %v3548_v3 = vld [vmem:[#allocation3 + $0x10c] sm:$0xf]  ;;  %v2858_v59 = vor.u32 %v3628_v52, %v2855_v54  ;;  %v2663_v40 = vld [vmem:[#allocation3 + $0x218] sm:$0xf0]  ;;  %v3221_v54 = vld [vmem:[#allocation6 + $0x70] sm:$0xf] }
  0x9e   :  { %1485 = vmatpush.bf16.msra.mxu1 %v3126_v4  ;;  %v2535_v4 = vld [vmem:[#allocation3 + $0x118] sm:$0xf0]  ;;  %v3616_v28 = vld [vmem:[#allocation3 + $0x32c] sm:$0xf] }
  0x9f   :  { %1498 = vmatpush.bf16.msra.mxu2 %v2490_v5  ;;  %v3608_v5 = vld [vmem:[#allocation3 + $0x2ec] sm:$0xf]  ;;  %v2810_v43 = vor.u32 %v3616_v28, %v2807_v30  ;;  %v3047_v52 = vld [vmem:[#allocation3 + $0x518] sm:$0xf0]  ;;  %v3730_v28 = vld [vmem:[#allocation6 + $0xb4] sm:$0xf0] }
  0xa0   :  { %1511 = vmatpush.bf16.msra.mxu3 %v2618_v11  ;;  %v2903_v11 = vld [vmem:[#allocation3 + $0x3f8] sm:$0xf0] }
  0xa1   :  { %1473 = vmatpush.bf16.msra.mxu0 %v2982_v18  ;;  %v3159_v18 = vld [vmem:[#allocation3 + $0x5f8] sm:$0xf0]  ;;  %v2906_v22 = vor.u32 %v3640_v7, %v2903_v11  ;;  %v2842_v7 = vor.u32 %v3624_v62, %v2839_v0  ;;  %v3588_v11 = vld [vmem:[#allocation3 + $0x24c] sm:$0xf]  ;;  %v3213_v0 = vld [vmem:[#allocation6 + $0x60] sm:$0xf] }
  0xa2   :  { %1486 = vmatpush.bf16.msra.mxu1 %v3110_v19  ;;  %v2538_v19 = vor.u32 %v3548_v3, %v2535_v4  ;;  %v3162_v27 = vor.u32 %v3704_v16, %v3159_v18  ;;  %v3688_v3 = vld [vmem:[#allocation3 + $0x56c] sm:$0xf]  ;;  %v3095_v4 = vld [vmem:[#allocation3 + $0x578] sm:$0xf0] }
  0xa3   :  { %1499 = vmatpush.bf16.msra.mxu2 %v2474_v21  ;;  %v2778_v21 = vor.u32 %v3608_v5, %v2775_v6  ;;  %v2823_v16 = vld [vmem:[#allocation3 + $0x358] sm:$0xf0]  ;;  %v3652_v18 = vld [vmem:[#allocation3 + $0x44c] sm:$0xf] }
  0xa4   :  { %1512 = vmatpush.bf16.msra.mxu3 %v2602_v25  ;;  %v2759_v25 = vld [vmem:[#allocation3 + $0x2d8] sm:$0xf0] }
  0xa5   :  { %1474 = vmatpush.bf16.msra.mxu0 %v2966_v31  ;;  %v3700_v31 = vld [vmem:[#allocation3 + $0x5cc] sm:$0xf] }
  0xa6   :  { %1487 = vmatpush.bf16.msra.mxu1 %v3094_v32  ;;  %v3143_v32 = vld [vmem:[#allocation3 + $0x5d8] sm:$0xf0] }
  0xa7   :  { %1500 = vmatpush.bf16.msra.mxu2 %v2458_v34  ;;  %v2762_v34 = vor.u32 %v3604_v24, %v2759_v25  ;;  %v3146_v41 = vor.u32 %v3700_v31, %v3143_v32  ;;  %v2826_v24 = vor.u32 %v3620_v13, %v2823_v16  ;;  %v3648_v31 = vld [vmem:[#allocation3 + $0x42c] sm:$0xf]  ;;  %v2935_v32 = vld [vmem:[#allocation3 + $0x438] sm:$0xf0]  ;;  %v3269_v13 = vld [vmem:[#allocation6 + $0xd0] sm:$0xf] }
  0xa8   :  { %1513 = vmatpush.bf16.msra.mxu3 %v2586_v39  ;;  %v2743_v39 = vld [vmem:[#allocation3 + $0x2b8] sm:$0xf0]  ;;  %v2938_v44 = vor.u32 %v3648_v31, %v2935_v32  ;;  %v3181_v31 = vld [vmem:[#allocation6 + $0x20] sm:$0xf]  ;;  %v3712_v32 = vld [vmem:[#allocation6 + $0x24] sm:$0xf0] }
  0xa9   :  { %1475 = vmatpush.bf16.msra.mxu0 %v2950_v45  ;;  %v3696_v45 = vld [vmem:[#allocation3 + $0x5ac] sm:$0xf] }
  0xaa   :  { %1488 = vmatpush.bf16.msra.mxu1 %v3078_v46  ;;  %v3127_v46 = vld [vmem:[#allocation3 + $0x5b8] sm:$0xf0] }
  0xab   :  { %1501 = vmatpush.bf16.msra.mxu2 %v2442_v47  ;;  %v2746_v47 = vor.u32 %v3600_v38, %v2743_v39  ;;  %v3130_v53 = vor.u32 %v3696_v45, %v3127_v46  ;;  %v3580_v39 = vld [vmem:[#allocation3 + $0x20c] sm:$0xf]  ;;  %v2791_v46 = vld [vmem:[#allocation3 + $0x318] sm:$0xf0] }
  0xac   :  { %1514 = vmatpush.bf16.msra.mxu3 %v2570_v51  ;;  %v2727_v51 = vld [vmem:[#allocation3 + $0x298] sm:$0xf0]  ;;  %v3612_v45 = vld [vmem:[#allocation3 + $0x30c] sm:$0xf] }
  0xad   :  { %1476 = vmatpush.bf16.msra.mxu0 %v2934_v57  ;;  %v3692_v57 = vld [vmem:[#allocation3 + $0x58c] sm:$0xf]  ;;  %v2730_v58 = vor.u32 %v3596_v50, %v2727_v51  ;;  %v2919_v50 = vld [vmem:[#allocation3 + $0x418] sm:$0xf0] }
  0xae   :  { %1489 = vmatpush.bf16.msra.mxu1 %v3062_v60  ;;  %v3592_v60 = vld [vmem:[#allocation3 + $0x26c] sm:$0xf] }
  0xaf   :  { %1502 = vmatpush.bf16.msra.mxu2 %v2426_v61  ;;  %v2711_v61 = vld [vmem:[#allocation3 + $0x278] sm:$0xf0]  ;;  %v3676_v51 = vld [vmem:[#allocation3 + $0x50c] sm:$0xf] }
  0xb0   :  { %1515 = vmatpush.bf16.msra.mxu3 %v2554_v1  ;;  %v3656_v1 = vld [vmem:[#allocation3 + $0x46c] sm:$0xf]  ;;  %v2714_v5 = vor.u32 %v3592_v60, %v2711_v61  ;;  %v3050_v60 = vor.u32 %v3676_v51, %v3047_v52  ;;  %v3165_v51 = vld [vmem:[#allocation6] sm:$0xf] }
  0xb1   :  { %1477 = vmatpush.bf16.msra.mxu0 %v2918_v8  ;;  %v2970_v8 = vor.u32 %v3656_v1, %v2967_v2  ;;  %v3720_v1 = vld [vmem:[#allocation6 + $0x64] sm:$0xf0] }
  0xb2   :  { %1490 = vmatpush.bf16.msra.mxu1 %v3046_v14  ;;  %v4045_v14 = vpop.f32.mrf.mxu1 }
  0xb3   :  { %1503 = vmatpush.bf16.msra.mxu2 %v2410_v15  ;;  %v3098_v15 = vor.u32 %v3688_v3, %v3095_v4  ;;  %v3277_v3 = vld [vmem:[#allocation6 + $0xe0] sm:$0xf]  ;;  %v3736_v4 = vld [vmem:[#allocation6 + $0xe4] sm:$0xf0] }
  0xb4   :  { %1516 = vmatpush.bf16.msra.mxu3 %v2538_v19  ;;  %1478 = vmatmul.bf16.vlgmr.msra.gmra.mxu0 %v4023_v33  ;;  %v2951_v19 = vld [vmem:[#allocation3 + $0x458] sm:$0xf0] }
  0xb5   :  { %1522 = vmatpush.bf16.msrb.mxu0 %v2778_v21  ;;  %1491 = vmatmul.bf16.vlgmr.msra.gmra.mxu1 %v4025_v36  ;;  %v3684_v21 = vld [vmem:[#allocation3 + $0x54c] sm:$0xf]  ;;  %v2954_v25 = vor.u32 %v3652_v18, %v2951_v19  ;;  %v3197_v19 = vld [vmem:[#allocation6 + $0x40] sm:$0xf] }
  0xb6   :  { %1535 = vmatpush.bf16.msrb.mxu1 %v2906_v22  ;;  %1504 = vmatmul.bf16.vlgmr.msra.gmra.mxu2 %v3999_v9  ;;  %v3111_v9 = vld [vmem:[#allocation3 + $0x598] sm:$0xf0] }
  0xb7   :  { %1548 = vmatpush.bf16.msrb.mxu2 %v3034_v23  ;;  %1517 = vmatmul.bf16.vlgmr.msra.gmra.mxu3 %v4009_v17  ;;  %v2986_v17 = vor.u32 %v3660_v55, %v2983_v56  ;;  %v3114_v63 = vor.u32 %v3692_v57, %v3111_v9  ;;  %v3079_v22 = vld [vmem:[#allocation3 + $0x558] sm:$0xf0]  ;;  %v2698_v23 = vor.u32 %v3588_v11, %v2695_v12  ;;  %v3722_v55 = vld [vmem:[#allocation6 + $0x74] sm:$0xf0]  ;;  %v3285_v9 = vld [vmem:[#allocation6 + $0xf0] sm:$0xf] }
  0xb8   :  { %1561 = vmatpush.bf16.msrb.mxu3 %v3162_v27  ;;  %v2679_v27 = vld [vmem:[#allocation3 + $0x238] sm:$0xf0]  ;;  %v3082_v29 = vor.u32 %v3684_v21, %v3079_v22  ;;  %v2666_v57 = vor.u32 %v3580_v39, %v2663_v40  ;;  %v3222_v61 = vor.u32 %v3722_v55, %v3221_v54  ;;  %v3205_v11 = vld [vmem:[#allocation6 + $0x50] sm:$0xf]  ;;  %v3718_v12 = vld [vmem:[#allocation6 + $0x54] sm:$0xf0] }
  0xb9   :  { %1523 = vmatpush.bf16.msrb.mxu0 %v2762_v34  ;;  %v4043_v6 = vpop.f32.mrf.mxu0  ;;  %v2682_v38 = vor.u32 %v3584_v26, %v2679_v27  ;;  %v3206_v16 = vor.u32 %v3718_v12, %v3205_v11  ;;  %v3261_v21 = vld [vmem:[#allocation6 + $0xc0] sm:$0xf]  ;;  %v3732_v22 = vld [vmem:[#allocation6 + $0xc4] sm:$0xf0]  ;;  %v3714_v26 = vld [vmem:[#allocation6 + $0x34] sm:$0xf0] }
  0xba   :  { %1536 = vmatpush.bf16.msrb.mxu1 %v2890_v35  ;;  %v3680_v35 = vld [vmem:[#allocation3 + $0x52c] sm:$0xf]  ;;  %v3262_v27 = vor.u32 %v3732_v22, %v3261_v21  ;;  %v3721_v54 = vld [vmem:[#allocation6 + $0x74] sm:$0xf]  ;;  %v3271_v22 = vld [vmem:[#allocation6 + $0xd8] sm:$0xf0] }
  0xbb   :  { %1549 = vmatpush.bf16.msrb.mxu2 %v3018_v37  ;;  %v3063_v37 = vld [vmem:[#allocation3 + $0x538] sm:$0xf0]  ;;  %v3733_v21 = vld [vmem:[#allocation6 + $0xd4] sm:$0xf] }
  0xbc   :  { %1562 = vmatpush.bf16.msrb.mxu3 %v3146_v41  ;;  %v4052_v41 = vld [vmem:[%s4113_s2] sm:$0xf] }
  0xbd   :  { %1524 = vmatpush.bf16.msrb.mxu0 %v2746_v47  ;;  %v3644_v47 = vld [vmem:[#allocation3 + $0x40c] sm:$0xf]  ;;  %v294_v56 = vperm.slane %v4052_v41, 0 }
  0xbe   :  { %1537 = vmatpush.bf16.msrb.mxu1 %v2874_v48  ;;  %v1286_v48 = vpop.f32.mrf.mxu1 }
  0xbf   :  { %1550 = vmatpush.bf16.msrb.mxu2 %v3002_v49  ;;  %v3066_v49 = vor.u32 %v3680_v35, %v3063_v37  ;;  %v3245_v37 = vld [vmem:[#allocation6 + $0xa0] sm:$0xf]  ;;  %v3237_v48 = vld [vmem:[#allocation6 + $0x90] sm:$0xf] }
  0xc0   :  { %1563 = vmatpush.bf16.msrb.mxu3 %v3130_v53  ;;  %v4047_v34 = vpop.f32.mrf.mxu2  ;;  %v1310_v53 = vpop.f32.mrf.mxu3 }
  0xc1   :  { %1525 = vmatpush.bf16.msrb.mxu0 %v2730_v58  ;;  %v1273_v42 = vpop.f32.mrf.mxu0  ;;  %v3738_v58 = vld [vmem:[#allocation6 + $0xf4] sm:$0xf0] }
  0xc2   :  { %1538 = vmatpush.bf16.msrb.mxu1 %v2858_v59  ;;  %v2794_v59 = vor.u32 %v3612_v45, %v2791_v46  ;;  %v3286_v2 = vor.u32 %v3738_v58, %v3285_v9  ;;  %v3182_v42 = vor.u32 %v3712_v32, %v3181_v31  ;;  %v3173_v45 = vld [vmem:[#allocation6 + $0x10] sm:$0xf]  ;;  %v3710_v46 = vld [vmem:[#allocation6 + $0x14] sm:$0xf0]  ;;  %v3229_v9 = vld [vmem:[#allocation6 + $0x80] sm:$0xf] }
  0xc3   :  { %1551 = vmatpush.bf16.msrb.mxu2 %v2986_v17  ;;  %v2922_v17 = vor.u32 %v3644_v47, %v2919_v50  ;;  %v3174_v50 = vor.u32 %v3710_v46, %v3173_v45  ;;  %v3724_v58 = vld [vmem:[#allocation6 + $0x84] sm:$0xf0]  ;;  %v3713_v32 = vld [vmem:[#allocation6 + $0x34] sm:$0xf]  ;;  %v3255_v45 = vld [vmem:[#allocation6 + $0xb8] sm:$0xf0] }
  0xc4   :  { %1564 = vmatpush.bf16.msrb.mxu3 %v3114_v63  ;;  %v1272_v63 = vadd.f32 %v4043_v6, %v294_v56  ;;  %v3278_v6 = vor.u32 %v3736_v4, %v3277_v3  ;;  %v3223_v56 = vld [vmem:[#allocation6 + $0x78] sm:$0xf0]  ;;  %v295_v4 = vperm.slane %v4052_v41, 1 }
  0xc5   :  { %1526 = vmatpush.bf16.msrb.mxu0 %v2714_v5  ;;  %v3214_v5 = vor.u32 %v3720_v1, %v3213_v0  ;;  %v3230_v0 = vor.u32 %v3724_v58, %v3229_v9  ;;  %v3719_v1 = vld [vmem:[#allocation6 + $0x64] sm:$0xf] }
  0xc6   :  { %1539 = vmatpush.bf16.msrb.mxu1 %v2842_v7 }
  0xc7   :  { %1552 = vmatpush.bf16.msrb.mxu2 %v2970_v8  ;;  %v1285_v8 = vadd.f32 %v4045_v14, %v1272_v63  ;;  %v3226_v63 = vor.u32 %v3721_v54, %v3223_v56  ;;  %v3727_v54 = vld [vmem:[#allocation6 + $0xa4] sm:$0xf] }
  0xc8   :  { %1565 = vmatpush.bf16.msrb.mxu3 %v3098_v15  ;;  %v1299_v62 = vpop.f32.mrf.mxu2  ;;  %v1312_v7 = vpop.f32.mrf.mxu3  ;;  %v3734_v15 = vld [vmem:[#allocation6 + $0xd4] sm:$0xf0] }
  0xc9   :  { %1527 = vmatpush.bf16.msrb.mxu0 %v2698_v23  ;;  %v1298_v18 = vadd.f32 %v4047_v34, %v1285_v8  ;;  %v3270_v14 = vor.u32 %v3734_v15, %v3269_v13  ;;  %v3279_v7 = vld [vmem:[#allocation6 + $0xe8] sm:$0xf0]  ;;  %v3349_v8 = vld [vmem:[#allocation6 + $0x170] sm:$0xf]  ;;  %v3754_v13 = vld [vmem:[#allocation6 + $0x174] sm:$0xf0] }
  0xca   :  { %1540 = vmatpush.bf16.msrb.mxu1 %v2826_v24  ;;  %v3207_v15 = vld [vmem:[#allocation6 + $0x58] sm:$0xf0] }
  0xcb   :  { %1553 = vmatpush.bf16.msrb.mxu2 %v2954_v25  ;;  %v1311_v25 = vadd.f32 %v1310_v53, %v1298_v18  ;;  %v3708_v53 = vld [vmem:[#allocation6 + $0x4] sm:$0xf0]  ;;  %v3350_v18 = vor.u32 %v3754_v13, %v3349_v8  ;;  %v3301_v8 = vld [vmem:[#allocation6 + $0x110] sm:$0xf]  ;;  %v3707_v13 = vld [vmem:[#allocation6 + $0x4] sm:$0xf] }
  0xcc   :  { %1566 = vmatpush.bf16.msrb.mxu3 %v3082_v29 }
  0xcd   :  { %1528 = vmatpush.bf16.msrb.mxu0 %v2682_v38  ;;  %v3728_v38 = vld [vmem:[#allocation6 + $0xa4] sm:$0xf0] }
  0xce   :  { %1541 = vmatpush.bf16.msrb.mxu1 %v2810_v43  ;;  %v3246_v47 = vor.u32 %v3728_v38, %v3245_v37  ;;  %v3325_v38 = vld [vmem:[#allocation6 + $0x140] sm:$0xf] }
  0xcf   :  { %1554 = vmatpush.bf16.msrb.mxu2 %v2938_v44 }
  0xd0   :  { %1567 = vmatpush.bf16.msrb.mxu3 %v3066_v49  ;;  %v3726_v49 = vld [vmem:[#allocation6 + $0x94] sm:$0xf0] }
  0xd1   :  { %1529 = vmatpush.bf16.msrb.mxu0 %v2666_v57  ;;  %v1323_v23 = vpop.f32.mrf.mxu0  ;;  %v3238_v55 = vor.u32 %v3726_v49, %v3237_v48  ;;  %v3317_v48 = vld [vmem:[#allocation6 + $0x130] sm:$0xf]  ;;  %v3746_v49 = vld [vmem:[#allocation6 + $0x134] sm:$0xf0] }
  0xd2   :  { %1542 = vmatpush.bf16.msrb.mxu1 %v2794_v59  ;;  %v1324_v30 = vadd.f32 %v1323_v23, %v1311_v25  ;;  %v3750_v25 = vld [vmem:[#allocation6 + $0x154] sm:$0xf0]  ;;  %v3318_v9 = vor.u32 %v3746_v49, %v3317_v48  ;;  %v3397_v48 = vld [vmem:[#allocation6 + $0x1d0] sm:$0xf] }
  0xd3   :  { %1555 = vmatpush.bf16.msrb.mxu2 %v2922_v17  ;;  %v3737_v17 = vld [vmem:[#allocation6 + $0xf4] sm:$0xf]  ;;  %v3766_v49 = vld [vmem:[#allocation6 + $0x1d4] sm:$0xf0] }
  0xd4   :  { %1568 = vmatpush.bf16.msrb.mxu3 %v3050_v60  ;;  %1530 = vmatmul.bf16.vlgmr.msrb.gmra.mxu0 %v4001_v10  ;;  %v3716_v10 = vld [vmem:[#allocation6 + $0x44] sm:$0xf0]  ;;  %v3287_v60 = vld [vmem:[#allocation6 + $0xf8] sm:$0xf0] }
  0xd5   :  { %1976 = vmatpush.bf16.msra.mxu0 %v3222_v61  ;;  %1543 = vmatmul.bf16.vlgmr.msrb.gmra.mxu1 %v4013_v20  ;;  %v3198_v24 = vor.u32 %v3716_v10, %v3197_v19  ;;  %v1336_v20 = vpop.f32.mrf.mxu1  ;;  %v3166_v61 = vor.u32 %v3708_v53, %v3165_v51  ;;  %v3290_v3 = vor.u32 %v3737_v17, %v3287_v60  ;;  %v3341_v19 = vld [vmem:[#allocation6 + $0x160] sm:$0xf]  ;;  %v3752_v10 = vld [vmem:[#allocation6 + $0x164] sm:$0xf0]  ;;  %v3183_v51 = vld [vmem:[#allocation6 + $0x28] sm:$0xf0] }
  0xd6   :  { %1989 = vmatpush.bf16.msra.mxu1 %v3286_v2  ;;  %1556 = vmatmul.bf16.vlgmr.msrb.gmra.mxu2 %v4023_v33  ;;  %v3189_v33 = vld [vmem:[#allocation6 + $0x30] sm:$0xf]  ;;  %v1337_v44 = vadd.f32 %v1336_v20, %v1324_v30  ;;  %v3215_v2 = vld [vmem:[#allocation6 + $0x68] sm:$0xf0]  ;;  %v3342_v23 = vor.u32 %v3752_v10, %v3341_v19  ;;  %v3744_v17 = vld [vmem:[#allocation6 + $0x124] sm:$0xf0] }
  0xd7   :  { %1569 = vmatmul.bf16.vlgmr.msrb.gmra.mxu3 %v4025_v36  ;;  %v3253_v36 = vld [vmem:[#allocation6 + $0xb0] sm:$0xf]  ;;  %v3190_v29 = vor.u32 %v3714_v26, %v3189_v33  ;;  %v3218_v12 = vor.u32 %v3719_v1, %v3215_v2  ;;  %2002 = vmatpush.bf16.msra.mxu2 %v3350_v18  ;;  %v3715_v33 = vld [vmem:[#allocation6 + $0x44] sm:$0xf]  ;;  %v3199_v26 = vld [vmem:[#allocation6 + $0x48] sm:$0xf0] }
  0xd8   :  { %v3254_v34 = vor.u32 %v3730_v28, %v3253_v36  ;;  %v1574_v52 = vmul.f32 0.2, %v1337_v44  ;;  %v3333_v20 = vld [vmem:[#allocation6 + $0x150] sm:$0xf]  ;;  %v3731_v28 = vld [vmem:[#allocation6 + $0xc4] sm:$0xf]  ;;  %v3202_v31 = vor.u32 %v3715_v33, %v3199_v26 }
  0xd9   :  { %1977 = vmatpush.bf16.msra.mxu0 %v3214_v5  ;;  %v1349_v35 = vpop.f32.mrf.mxu2  ;;  %v1325_v40 = vpop.f32.mrf.mxu0  ;;  %v3735_v5 = vld [vmem:[#allocation6 + $0xe4] sm:$0xf]  ;;  %v3334_v30 = vor.u32 %v3750_v25, %v3333_v20  ;;  %v3740_v20 = vld [vmem:[#allocation6 + $0x104] sm:$0xf0]  ;;  %v3753_v25 = vld [vmem:[#allocation6 + $0x174] sm:$0xf] }
  0xda   :  { %1990 = vmatpush.bf16.msra.mxu1 %v3278_v6  ;;  %v4062_v39 = vpop.f32.mrf.mxu3  ;;  %v1578_v62 = vmax.f32 %v1337_v44, %v1574_v52  ;;  %v3717_v6 = vld [vmem:[#allocation6 + $0x54] sm:$0xf]  ;;  %v3748_v40 = vld [vmem:[#allocation6 + $0x144] sm:$0xf0]  ;;  %v3723_v10 = vld [vmem:[#allocation6 + $0x84] sm:$0xf] }
  0xdb   :  { %2003 = vmatpush.bf16.msra.mxu2 %v3342_v23  ;;  %v3729_v44 = vld [vmem:[#allocation6 + $0xb4] sm:$0xf]  ;;  %v3326_v46 = vor.u32 %v3748_v40, %v3325_v38  ;;  %v3351_v33 = vld [vmem:[#allocation6 + $0x178] sm:$0xf0] }
  0xdc   :  { %v4065_v11 = vpack.c.bf16 %v1578_v62, %v1578_v62  ;;  %v3258_v52 = vor.u32 %v3729_v44, %v3255_v45  ;;  %v3175_v62 = vld [vmem:[#allocation6 + $0x18] sm:$0xf0]  ;;  %v3749_v38 = vld [vmem:[#allocation6 + $0x154] sm:$0xf]  ;;  %v3768_v44 = vld [vmem:[#allocation6 + $0x1e4] sm:$0xf0] }
  0xdd   :  { %1978 = vmatpush.bf16.msra.mxu0 %v3206_v16  ;;  %v1338_v43 = vpop.f32.mrf.mxu1  ;;  %v3282_v16 = vor.u32 %v3735_v5, %v3279_v7  ;;  %v3335_v40 = vld [vmem:[#allocation6 + $0x158] sm:$0xf0]  ;;  %v3747_v45 = vld [vmem:[#allocation6 + $0x144] sm:$0xf] }
  0xde   :  { %1991 = vmatpush.bf16.msra.mxu1 %v3270_v14  ;;  %v1350_v14 = vadd.f32 %v1349_v35, %v295_v4  ;;  %v3191_v35 = vld [vmem:[#allocation6 + $0x38] sm:$0xf0] }
  0xdf   :  { %2004 = vmatpush.bf16.msra.mxu2 %v3334_v30  ;;  %v3239_v4 = vld [vmem:[#allocation6 + $0x98] sm:$0xf0] }
  0xe0   :  { %v1363_v36 = vadd.f32 %v4062_v39, %v1350_v14  ;;  %v3231_v14 = vld [vmem:[#allocation6 + $0x88] sm:$0xf0] }
  0xe1   :  { %1979 = vmatpush.bf16.msra.mxu0 %v3198_v24  ;;  %v1351_v57 = vpop.f32.mrf.mxu2  ;;  %v3210_v24 = vor.u32 %v3717_v6, %v3207_v15  ;;  %v3167_v15 = vld [vmem:[#allocation6 + $0x8] sm:$0xf0]  ;;  %v3234_v26 = vor.u32 %v3723_v10, %v3231_v14 }
  0xe2   :  { %1992 = vmatpush.bf16.msra.mxu1 %v3262_v27  ;;  %v1364_v59 = vpop.f32.mrf.mxu3  ;;  %v3274_v27 = vor.u32 %v3733_v21, %v3271_v22  ;;  %v3170_v23 = vor.u32 %v3707_v13, %v3167_v15  ;;  %v3295_v13 = vld [vmem:[#allocation6 + $0x108] sm:$0xf0] }
  0xe3   :  { %2005 = vmatpush.bf16.msra.mxu2 %v3326_v46  ;;  %v3309_v59 = vld [vmem:[#allocation6 + $0x120] sm:$0xf]  ;;  %v3327_v46 = vld [vmem:[#allocation6 + $0x148] sm:$0xf0] }
  0xe4   :  { %v3310_v5 = vor.u32 %v3744_v17, %v3309_v59  ;;  %v3311_v59 = vld [vmem:[#allocation6 + $0x128] sm:$0xf0]  ;;  %v296_v17 = vperm.slane %v4052_v41, 2 }
  0xe5   :  { %1980 = vmatpush.bf16.msra.mxu0 %v3190_v29  ;;  %v3263_v29 = vld [vmem:[#allocation6 + $0xc8] sm:$0xf0] }
  0xe6   :  { %1993 = vmatpush.bf16.msra.mxu1 %v3254_v34  ;;  %v3266_v37 = vor.u32 %v3731_v28, %v3263_v29  ;;  %v3751_v28 = vld [vmem:[#allocation6 + $0x164] sm:$0xf]  ;;  %v3343_v29 = vld [vmem:[#allocation6 + $0x168] sm:$0xf0] }
  0xe7   :  { %2006 = vmatpush.bf16.msra.mxu2 %v3318_v9  ;;  %v3346_v30 = vor.u32 %v3751_v28, %v3343_v29  ;;  %v3764_v9 = vld [vmem:[#allocation6 + $0x1c4] sm:$0xf0]  ;;  %v3767_v29 = vld [vmem:[#allocation6 + $0x1e4] sm:$0xf] }
  0xe9   :  { %1981 = vmatpush.bf16.msra.mxu0 %v3182_v42 }
  0xea   :  { %1994 = vmatpush.bf16.msra.mxu1 %v3246_v47  ;;  %v3194_v47 = vor.u32 %v3713_v32, %v3191_v35  ;;  %v3770_v32 = vld [vmem:[#allocation6 + $0x1f4] sm:$0xf0] }
  0xeb   :  { %2007 = vmatpush.bf16.msra.mxu2 %v3310_v5  ;;  %v3373_v5 = vld [vmem:[#allocation6 + $0x1a0] sm:$0xf] }
  0xed   :  { %1982 = vmatpush.bf16.msra.mxu0 %v3174_v50  ;;  %v3711_v50 = vld [vmem:[#allocation6 + $0x24] sm:$0xf] }
  0xee   :  { %1995 = vmatpush.bf16.msra.mxu1 %v3238_v55  ;;  %v3247_v55 = vld [vmem:[#allocation6 + $0xa8] sm:$0xf0]  ;;  %v3186_v58 = vor.u32 %v3711_v50, %v3183_v51 }
  0xf1   :  { %1983 = vmatpush.bf16.msra.mxu0 %v3166_v61  ;;  %v1375_v34 = vpop.f32.mrf.mxu0  ;;  %v3709_v61 = vld [vmem:[#allocation6 + $0x14] sm:$0xf] }
  0xf2   :  { %1996 = vmatpush.bf16.msra.mxu1 %v3230_v0  ;;  %v1376_v42 = vadd.f32 %v1375_v34, %v1363_v36  ;;  %v1388_v43 = vpop.f32.mrf.mxu1  ;;  %v3178_v7 = vor.u32 %v3709_v61, %v3175_v62  ;;  %v3354_v36 = vor.u32 %v3753_v25, %v3351_v33  ;;  %v3381_v61 = vld [vmem:[#allocation6 + $0x1b0] sm:$0xf]  ;;  %v3762_v62 = vld [vmem:[#allocation6 + $0x1b4] sm:$0xf0]  ;;  %v3769_v25 = vld [vmem:[#allocation6 + $0x1f4] sm:$0xf] }
  0xf3   :  { %v3415_v33 = vld [vmem:[#allocation6 + $0x1f8] sm:$0xf0] }
  0xf4   :  { %1984 = vmatmul.bf16.vlgmr.msra.gmra.mxu0 %v4065_v11  ;;  %v1389_v39 = vadd.f32 %v1388_v43, %v1376_v42  ;;  %v3338_v42 = vor.u32 %v3749_v38, %v3335_v40  ;;  %v3405_v43 = vld [vmem:[#allocation6 + $0x1e0] sm:$0xf] }
  0xf5   :  { %2028 = vmatpush.bf16.msrb.mxu0 %v3226_v63  ;;  %v3250_v63 = vor.u32 %v3727_v54, %v3247_v55  ;;  %v3745_v54 = vld [vmem:[#allocation6 + $0x134] sm:$0xf]  ;;  %v3319_v55 = vld [vmem:[#allocation6 + $0x138] sm:$0xf0] }
  0xf6   :  { %2041 = vmatpush.bf16.msrb.mxu1 %v3290_v3  ;;  %v3725_v3 = vld [vmem:[#allocation6 + $0x94] sm:$0xf] }
  0xf9   :  { %2029 = vmatpush.bf16.msrb.mxu0 %v3218_v12  ;;  %v1401_v53 = vpop.f32.mrf.mxu2  ;;  %v1377_v0 = vpop.f32.mrf.mxu0  ;;  %v3742_v12 = vld [vmem:[#allocation6 + $0x114] sm:$0xf0] }
  0xfa   :  { %2042 = vmatpush.bf16.msrb.mxu1 %v3282_v16  ;;  %v1402_v56 = vadd.f32 %v1401_v53, %v1389_v39  ;;  %v1414_v57 = vpop.f32.mrf.mxu3  ;;  %v1390_v1 = vpop.f32.mrf.mxu1  ;;  %v3242_v16 = vor.u32 %v3725_v3, %v3239_v4  ;;  %v3302_v22 = vor.u32 %v3742_v12, %v3301_v8  ;;  %v3330_v39 = vor.u32 %v3747_v45, %v3327_v46  ;;  %v3741_v0 = vld [vmem:[#allocation6 + $0x114] sm:$0xf]  ;;  %v3763_v46 = vld [vmem:[#allocation6 + $0x1c4] sm:$0xf] }
  0xfb   :  { %v3303_v1 = vld [vmem:[#allocation6 + $0x118] sm:$0xf0] }
  0xfc   :  { %v1415_v60 = vadd.f32 %v1414_v57, %v1402_v56  ;;  %2008 = vmatpush.bf16.msra.mxu2 %v3302_v22  ;;  %v3389_v56 = vld [vmem:[#allocation6 + $0x1c0] sm:$0xf]  ;;  %v3322_v57 = vor.u32 %v3745_v54, %v3319_v55  ;;  %v3306_v12 = vor.u32 %v3741_v0, %v3303_v1 }
  0xfd   :  { %2030 = vmatpush.bf16.msrb.mxu0 %v3210_v24  ;;  %v3293_v24 = vld [vmem:[#allocation6 + $0x100] sm:$0xf] }
  0xfe   :  { %2043 = vmatpush.bf16.msrb.mxu1 %v3274_v27  ;;  %v1575_v2 = vmul.f32 0.2, %v1415_v60  ;;  %v3294_v27 = vor.u32 %v3740_v20, %v3293_v24  ;;  %v3756_v24 = vld [vmem:[#allocation6 + $0x184] sm:$0xf0] }
 0x100   :  { %v1579_v6 = vmax.f32 %v1415_v60, %v1575_v2  ;;  %2009 = vmatpush.bf16.msra.mxu2 %v3294_v27  ;;  %v3390_v60 = vor.u32 %v3764_v9, %v3389_v56  ;;  %v3382_v2 = vor.u32 %v3762_v62, %v3381_v61  ;;  %v3757_v56 = vld [vmem:[#allocation6 + $0x194] sm:$0xf]  ;;  %v297_v9 = vperm.slane %v4052_v41, 3 }
 0x101   :  { %2031 = vmatpush.bf16.msrb.mxu0 %v3202_v31  ;;  %v1403_v18 = vpop.f32.mrf.mxu2  ;;  %v3413_v31 = vld [vmem:[#allocation6 + $0x1f0] sm:$0xf] }
 0x102   :  { %2044 = vmatpush.bf16.msrb.mxu1 %v3266_v37  ;;  %v1583_v19 = vpack.c.bf16 %v1579_v6, %v1579_v6  ;;  %v1416_v21 = vpop.f32.mrf.mxu3  ;;  %v3414_v35 = vor.u32 %v3770_v32, %v3413_v31  ;;  %v3739_v6 = vld [vmem:[#allocation6 + $0x104] sm:$0xf]  ;;  %v3365_v18 = vld [vmem:[#allocation6 + $0x190] sm:$0xf] }
 0x103   :  { %v3298_v10 = vor.u32 %v3739_v6, %v3295_v13 }
 0x104   :  { %1997 = vmatmul.bf16.vlgmr.msra.gmra.mxu1 %v1583_v19  ;;  %2054 = vmatpush.bf16.msrb.mxu2 %v3354_v36 }
 0x105   :  { %2032 = vmatpush.bf16.msrb.mxu0 %v3194_v47  ;;  %2015 = vmatpush.bf16.msra.mxu3 %v3414_v35  ;;  %v3765_v35 = vld [vmem:[#allocation6 + $0x1d4] sm:$0xf] }
 0x106   :  { %2045 = vmatpush.bf16.msrb.mxu1 %v3258_v52  ;;  %v3398_v52 = vor.u32 %v3766_v49, %v3397_v48  ;;  %v3761_v48 = vld [vmem:[#allocation6 + $0x1b4] sm:$0xf]  ;;  %v3383_v49 = vld [vmem:[#allocation6 + $0x1b8] sm:$0xf0] }
 0x108   :  { %2055 = vmatpush.bf16.msrb.mxu2 %v3346_v30  ;;  %v3407_v30 = vld [vmem:[#allocation6 + $0x1e8] sm:$0xf0] }
 0x109   :  { %2033 = vmatpush.bf16.msrb.mxu0 %v3186_v58  ;;  %v3743_v58 = vld [vmem:[#allocation6 + $0x124] sm:$0xf]  ;;  %v3410_v32 = vor.u32 %v3767_v29, %v3407_v30  ;;  %v3778_v29 = vld [vmem:[#allocation8 + $0x38] sm:$0xff]  ;;  %v3777_v30 = vld [vmem:[#allocation8 + $0x30] sm:$0xff] }
 0x10a   :  { %2046 = vmatpush.bf16.msrb.mxu1 %v3250_v63  ;;  %v3314_v63 = vor.u32 %v3743_v58, %v3311_v59 }
 0x10c   :  { %2056 = vmatpush.bf16.msrb.mxu2 %v3338_v42 }
 0x10d   :  { %2034 = vmatpush.bf16.msrb.mxu0 %v3178_v7  ;;  %v3760_v7 = vld [vmem:[#allocation6 + $0x1a4] sm:$0xf0] }
 0x10e   :  { %2047 = vmatpush.bf16.msrb.mxu1 %v3242_v16  ;;  %v3374_v15 = vor.u32 %v3760_v7, %v3373_v5 }
 0x110   :  { %2057 = vmatpush.bf16.msrb.mxu2 %v3330_v39  ;;  %v3391_v39 = vld [vmem:[#allocation6 + $0x1c8] sm:$0xf0] }
 0x111   :  { %2035 = vmatpush.bf16.msrb.mxu0 %v3170_v23  ;;  %v1427_v34 = vpop.f32.mrf.mxu0  ;;  %v3357_v23 = vld [vmem:[#allocation6 + $0x180] sm:$0xf] }
 0x112   :  { %2048 = vmatpush.bf16.msrb.mxu1 %v3234_v26  ;;  %v1440_v37 = vpop.f32.mrf.mxu1  ;;  %v1428_v3 = vadd.f32 %v1427_v34, %v296_v17  ;;  %v3358_v20 = vor.u32 %v3756_v24, %v3357_v23  ;;  %v3418_v26 = vor.u32 %v3769_v25, %v3415_v33  ;;  %v3755_v17 = vld [vmem:[#allocation6 + $0x184] sm:$0xf] }
 0x114   :  { %2036 = vmatmul.bf16.vlgmr.msrb.gmra.mxu0 %v4065_v11  ;;  %v3406_v11 = vor.u32 %v3768_v44, %v3405_v43  ;;  %2058 = vmatpush.bf16.msrb.mxu2 %v3322_v57  ;;  %v1441_v16 = vadd.f32 %v1440_v37, %v1428_v3  ;;  %v3399_v37 = vld [vmem:[#allocation6 + $0x1d8] sm:$0xf0] }
 0x115   :  { %2049 = vmatmul.bf16.vlgmr.msrb.gmra.mxu1 %v1583_v19  ;;  %v3758_v19 = vld [vmem:[#allocation6 + $0x194] sm:$0xf0]  ;;  %v3402_v42 = vor.u32 %v3765_v35, %v3399_v37  ;;  %v3367_v57 = vld [vmem:[#allocation6 + $0x198] sm:$0xf0]  ;;  %2218 = vmatpush.bf16.msra.mxu0 %v3778_v29  ;;  %v3785_v35 = vld [vmem:[#allocation8 + $0x70] sm:$0xff] }
 0x116   :  { %2016 = vmatpush.bf16.msra.mxu3 %v3406_v11  ;;  %v3366_v14 = vor.u32 %v3758_v19, %v3365_v18  ;;  %v3370_v58 = vor.u32 %v3757_v56, %v3367_v57  ;;  %v3774_v37 = vld [vmem:[#allocation8 + $0x18] sm:$0xff] }
 0x118   :  { %2059 = vmatpush.bf16.msrb.mxu2 %v3314_v63 }
 0x119   :  { %v1453_v47 = vpop.f32.mrf.mxu2  ;;  %v1429_v50 = vpop.f32.mrf.mxu0  ;;  %2219 = vmatpush.bf16.msra.mxu0 %v3777_v30 }
 0x11a   :  { %v1466_v51 = vpop.f32.mrf.mxu3  ;;  %v1442_v53 = vpop.f32.mrf.mxu1  ;;  %2017 = vmatpush.bf16.msra.mxu3 %v3398_v52  ;;  %v1454_v21 = vadd.f32 %v1453_v47, %v1441_v16  ;;  %v3394_v47 = vor.u32 %v3763_v46, %v3391_v39  ;;  %v3759_v52 = vld [vmem:[#allocation6 + $0x1a4] sm:$0xf]  ;;  %v3782_v46 = vld [vmem:[#allocation8 + $0x58] sm:$0xff]  ;;  %v3781_v39 = vld [vmem:[#allocation8 + $0x50] sm:$0xff] }
 0x11b   :  { %v3375_v53 = vld [vmem:[#allocation6 + $0x1a8] sm:$0xf0] }
 0x11c   :  { %2060 = vmatpush.bf16.msrb.mxu2 %v3306_v12  ;;  %v1467_v22 = vadd.f32 %v1466_v51, %v1454_v21  ;;  %v3386_v51 = vor.u32 %v3761_v48, %v3383_v49  ;;  %v3378_v55 = vor.u32 %v3759_v52, %v3375_v53  ;;  %v3780_v48 = vld [vmem:[#allocation8 + $0x48] sm:$0xff] }
 0x11d   :  { %v3793_v52 = vld [vmem:[%s4118_s7 + $0x30] sm:$0xff] }
 0x11e   :  { %2018 = vmatpush.bf16.msra.mxu3 %v3390_v60  ;;  %v3359_v60 = vld [vmem:[#allocation6 + $0x188] sm:$0xf0] }
 0x11f   :  { %v3362_v61 = vor.u32 %v3755_v17, %v3359_v60 }
 0x120   :  { %2061 = vmatpush.bf16.msrb.mxu2 %v3298_v10  ;;  %v1650_v10 = vld [vmem:[%s4115_s4] sm:$0x3] }
 0x121   :  { %v1455_v4 = vpop.f32.mrf.mxu2  ;;  %v1653_v25 = vperm.slane %v1650_v10, 1 }
 0x122   :  { %v1468_v8 = vpop.f32.mrf.mxu3  ;;  %2019 = vmatpush.bf16.msra.mxu3 %v3382_v2 }
 0x126   :  { %2020 = vmatpush.bf16.msra.mxu3 %v3374_v15 }
 0x12a   :  { %2021 = vmatpush.bf16.msra.mxu3 %v3366_v14  ;;  %v1652_v14 = vperm.slane %v1650_v10, 0 }
 0x12e   :  { %2022 = vmatpush.bf16.msra.mxu3 %v3358_v20 }
 0x131   :  { %v1479_v27 = vpop.f32.mrf.mxu0 }
 0x132   :  { %v1480_v36 = vadd.f32 %v1479_v27, %v1467_v22  ;;  %v1492_v28 = vpop.f32.mrf.mxu1  ;;  %2067 = vmatpush.bf16.msrb.mxu3 %v3418_v26 }
 0x134   :  { %v1493_v31 = vadd.f32 %v1492_v28, %v1480_v36 }
 0x136   :  { %v1576_v34 = vmul.f32 0.2, %v1493_v31  ;;  %2068 = vmatpush.bf16.msrb.mxu3 %v3410_v32  ;;  %v3775_v32 = vld [vmem:[#allocation8 + $0x20] sm:$0xff] }
 0x138   :  { %v1580_v38 = vmax.f32 %v1493_v31, %v1576_v34  ;;  %v3776_v31 = vld [vmem:[#allocation8 + $0x28] sm:$0xff]  ;;  %v3786_v34 = vld [vmem:[#allocation8 + $0x78] sm:$0xff] }
 0x139   :  { %v1505_v40 = vpop.f32.mrf.mxu2  ;;  %v1481_v44 = vpop.f32.mrf.mxu0  ;;  %2220 = vmatpush.bf16.msra.mxu0 %v3776_v31  ;;  %2231 = vmatpush.bf16.msra.mxu1 %v3786_v34 }
 0x13a   :  { %v1518_v43 = vpop.f32.mrf.mxu3  ;;  %v1584_v11 = vpack.c.bf16 %v1580_v38, %v1580_v38  ;;  %v1494_v45 = vpop.f32.mrf.mxu1  ;;  %2069 = vmatpush.bf16.msrb.mxu3 %v3402_v42  ;;  %v1506_v59 = vadd.f32 %v1505_v40, %v297_v9  ;;  %v3773_v38 = vld [vmem:[#allocation8 + $0x10] sm:$0xff]  ;;  %v3772_v42 = vld [vmem:[#allocation8 + $0x8] sm:$0xff] }
 0x13b   :  { %v3783_v45 = vld [vmem:[#allocation8 + $0x60] sm:$0xff] }
 0x13c   :  { %2010 = vmatmul.bf16.vlgmr.msra.gmra.mxu2 %v1584_v11  ;;  %v1519_v62 = vadd.f32 %v1518_v43, %v1506_v59  ;;  %v3784_v43 = vld [vmem:[#allocation8 + $0x68] sm:$0xff] }
 0x13d   :  { %2221 = vmatpush.bf16.msra.mxu0 %v3775_v32  ;;  %2232 = vmatpush.bf16.msra.mxu1 %v3785_v35 }
 0x13e   :  { %2070 = vmatpush.bf16.msrb.mxu3 %v3394_v47 }
 0x141   :  { %v1507_v50 = vpop.f32.mrf.mxu2  ;;  %2222 = vmatpush.bf16.msra.mxu0 %v3774_v37  ;;  %2233 = vmatpush.bf16.msra.mxu1 %v3784_v43 }
 0x142   :  { %v1520_v54 = vpop.f32.mrf.mxu3  ;;  %2071 = vmatpush.bf16.msrb.mxu3 %v3386_v51  ;;  %v3779_v50 = vld [vmem:[#allocation8 + $0x40] sm:$0xff]  ;;  %v3794_v51 = vld [vmem:[%s4118_s7 + $0x38] sm:$0xff] }
 0x143   :  { %2315 = vmatpush.bf16.msra.mxu2 %v3794_v51 }
 0x145   :  { %2223 = vmatpush.bf16.msra.mxu0 %v3773_v38  ;;  %2234 = vmatpush.bf16.msra.mxu1 %v3783_v45 }
 0x146   :  { %2072 = vmatpush.bf16.msrb.mxu3 %v3378_v55 }
 0x147   :  { %2316 = vmatpush.bf16.msra.mxu2 %v3793_v52 }
 0x149   :  { %2224 = vmatpush.bf16.msra.mxu0 %v3772_v42  ;;  %2235 = vmatpush.bf16.msra.mxu1 %v3782_v46 }
 0x14a   :  { %2073 = vmatpush.bf16.msrb.mxu3 %v3370_v58 }
 0x14c   :  { %2062 = vmatmul.bf16.vlgmr.msrb.gmra.mxu2 %v1584_v11  ;;  %v3771_v11 = vld [vmem:[#allocation8] sm:$0xff] }
 0x14d   :  { %2225 = vmatpush.bf16.msra.mxu0 %v3771_v11  ;;  %2236 = vmatpush.bf16.msra.mxu1 %v3781_v39 }
 0x14e   :  { %2074 = vmatpush.bf16.msrb.mxu3 %v3362_v61 }
 0x151   :  { %v1531_v63 = vpop.f32.mrf.mxu0  ;;  %2237 = vmatpush.bf16.msra.mxu1 %v3780_v48 }
 0x152   :  { %v1544_v0 = vpop.f32.mrf.mxu1  ;;  %v1532_v1 = vadd.f32 %v1531_v63, %v1519_v62 }
 0x154   :  { %v1545_v2 = vadd.f32 %v1544_v0, %v1532_v1  ;;  %v3792_v1 = vld [vmem:[%s4118_s7 + $0x28] sm:$0xff] }
 0x155   :  { %2238 = vmatpush.bf16.msra.mxu1 %v3779_v50  ;;  %2317 = vmatpush.bf16.msra.mxu2 %v3792_v1 }
 0x159   :  { %v1557_v3 = vpop.f32.mrf.mxu2  ;;  %v1533_v7 = vpop.f32.mrf.mxu0 }
 0x15a   :  { %v1558_v4 = vadd.f32 %v1557_v3, %v1545_v2  ;;  %v1570_v5 = vpop.f32.mrf.mxu3  ;;  %v1546_v8 = vpop.f32.mrf.mxu1  ;;  %v3791_v2 = vld [vmem:[%s4118_s7 + $0x20] sm:$0xff]  ;;  %v3790_v3 = vld [vmem:[%s4118_s7 + $0x18] sm:$0xff] }
 0x15b   :  { %2318 = vmatpush.bf16.msra.mxu2 %v3791_v2  ;;  %v3787_v7 = vld [vmem:[%s4118_s7] sm:$0xff] }
 0x15c   :  { %v1571_v41 = vadd.f32 %v1570_v5, %v1558_v4  ;;  %v3789_v4 = vld [vmem:[%s4118_s7 + $0x10] sm:$0xff]  ;;  %v3788_v5 = vld [vmem:[%s4118_s7 + $0x8] sm:$0xff] }
 0x15e   :  { %v1577_v12 = vmul.f32 0.2, %v1571_v41 }
 0x15f   :  { %2319 = vmatpush.bf16.msra.mxu2 %v3790_v3 }
 0x160   :  { %v1581_v6 = vmax.f32 %v1571_v41, %v1577_v12  ;;  %v3806_v12 = vld [vmem:[%s4117_s6] ss:$0 sm:$0xff]  ;;  %s3920_s6 = smov [#allocation9]  }
 0x161   :  { %v1559_v13 = vpop.f32.mrf.mxu2 }
 0x162   :  { %v1585_v15 = vpack.c.bf16 %v1581_v6, %v1581_v6  ;;  %v1572_v16 = vpop.f32.mrf.mxu3 }
 0x163   :  { %2320 = vmatpush.bf16.msra.mxu2 %v3789_v4 }
 0x164   :  { %2023 = vmatmul.bf16.vlgmr.msra.gmra.mxu3 %v1585_v15 }
 0x167   :  { %2321 = vmatpush.bf16.msra.mxu2 %v3788_v5 }
 0x16b   :  { %2322 = vmatpush.bf16.msra.mxu2 %v3787_v7 }
 0x171   :  { %v1985_v18 = vpop.f32.mrf.mxu0 }
 0x172   :  { %v1986_v21 = vadd.f32 %v1985_v18, %v1652_v14  ;;  %v2330_v14 = vld [vmem:[%s4120_s9] sm:$0x1]  ;;  %s2382_s9 = sshll.u32 %s3920_s6, 4  ;;  %s2383_s9 = int_to_ptr.vmem [resolvable:$true] %s2382_s9 }
 0x174   :  { %2075 = vmatmul.bf16.vlgmr.msrb.gmra.mxu3 %v1585_v15 }
 0x179   :  { %v1987_v19 = vpop.f32.mrf.mxu0 }
 0x181   :  { %v1998_v22 = vpop.f32.mrf.mxu1 }
 0x182   :  { %v1999_v23 = vadd.f32 %v1998_v22, %v1986_v21  ;;  %v3807_v21 = vld [vmem:[%s4119_s8] ss:$0 sm:$0xff]  ;;  %v2331_v22 = vunpack.c.l.bf16 %v2330_v14  ;;  %s2384_s8 = sshll.u32 %s4122_s11, 4  ;;  %s2385_s8 = int_to_ptr.hbm [resolvable:$true] %s2384_s8 }
 0x189   :  { %v2000_v20 = vpop.f32.mrf.mxu1 }
 0x191   :  { %v2037_v24 = vpop.f32.mrf.mxu0 }
 0x192   :  { %v2038_v26 = vadd.f32 %v2037_v24, %v1653_v25  ;;  %v2050_v27 = vpop.f32.mrf.mxu1  ;;  %v2332_v25 = vperm.slane %v2331_v22, 0 }
 0x194   :  { %v2051_v36 = vadd.f32 %v2050_v27, %v2038_v26 }
 0x199   :  { %v2039_v33 = vpop.f32.mrf.mxu0 }
 0x19a   :  { %v2052_v28 = vpop.f32.mrf.mxu1 }
 0x19b   :  { %v3808_v28 = vld [vmem:[#allocation2] ss:$0 sm:$0xff] }
 0x1bf   :  { %v2011_v40 = vpop.f32.mrf.mxu2 }
 0x1c0   :  { %v2012_v53 = vadd.f32 %v2011_v40, %v1999_v23 }
 0x1c7   :  { %v2013_v44 = vpop.f32.mrf.mxu2 }
 0x1cf   :  { %v2063_v47 = vpop.f32.mrf.mxu2 }
 0x1d0   :  { %v2064_v59 = vadd.f32 %v2063_v47, %v2051_v36 }
 0x1d7   :  { %v2065_v49 = vpop.f32.mrf.mxu2 }
 0x1e7   :  { %v2024_v54 = vpop.f32.mrf.mxu3 }
 0x1e8   :  { %v2025_v55 = vadd.f32 %v2024_v54, %v2012_v53 }
 0x1ea   :  { %v2080_v56 = vmul.f32 0.2, %v2025_v55 }
 0x1ec   :  { %v2082_v57 = vmax.f32 %v2025_v55, %v2080_v56 }
 0x1ee   :  { %v2084_v9 = vpack.c.bf16 %v2082_v57, %v2082_v57 }
 0x1ef   :  { %v2026_v58 = vpop.f32.mrf.mxu3 }
 0x1f0   :  { %2226 = vmatmul.bf16.vlgmr.msra.gmra.mxu0 %v2084_v9 }
 0x1f7   :  { %v2076_v17 = vpop.f32.mrf.mxu3 }
 0x1f8   :  { %v2077_v60 = vadd.f32 %v2076_v17, %v2064_v59 }
 0x1fa   :  { %v2081_v61 = vmul.f32 0.2, %v2077_v60 }
 0x1fc   :  { %v2083_v62 = vmax.f32 %v2077_v60, %v2081_v61 }
 0x1fe   :  { %v2085_v63 = vpack.c.bf16 %v2083_v62, %v2083_v62 }
 0x1ff   :  { %v2078_v0 = vpop.f32.mrf.mxu3 }
 0x200   :  { %2239 = vmatmul.bf16.vlgmr.msra.gmra.mxu1 %v2085_v63 }
 0x26d   :  { %v2227_v8 = vpop.f32.mrf.mxu0 }
 0x26e   :  { %v2228_v6 = vadd.f32 %v3806_v12, %v2227_v8 }
 0x275   :  { %v2229_v41 = vpop.f32.mrf.mxu0 }
 0x27d   :  { %v2240_v13 = vpop.f32.mrf.mxu1 }
 0x27e   :  { %v2241_v15 = vadd.f32 %v2240_v13, %v2228_v6 }
 0x280   :  { %v2244_v16 = vmul.f32 0.2, %v2241_v15 }
 0x282   :  { %v2245_v18 = vmax.f32 %v2241_v15, %v2244_v16 }
 0x284   :  { %v2246_v19 = vpack.c.bf16 %v2245_v18, %v2245_v18 }
 0x285   :  { %v2242_v10 = vpop.f32.mrf.mxu1 }
 0x286   :  { %2323 = vmatmul.bf16.vlgmr.msra.gmra.mxu2 %v2246_v19 }
 0x309   :  { %v2324_v23 = vpop.f32.mrf.mxu2 }
 0x30a   :  { %v2325_v24 = vadd.f32 %v3807_v21, %v2324_v23 }
 0x30c   :  { %v2328_v20 = vmul.f32 0.2, %v2325_v24 }
 0x30e   :  { %v2329_v33 = vmax.f32 %v2325_v24, %v2328_v20 }
 0x310   :  { %v2333_v26 = vmul.f32 %v2332_v25, %v2329_v33 }
 0x311   :  { %v2326_v27 = vpop.f32.mrf.mxu2 }
 0x312   :  { %v2335_v36 = vsel %vm2334_vm0, %v2333_v26, 0.0 }
 0x313   :  { %2336 = vadd.xlane.f32.xlu0 %v2335_v36 }
 0x386   :  { %v2337_v29 = vpop.xlane.xlu0 %2336 }
 0x387   :  { %v2342_v30 = vadd.f32 %v3808_v28, %v2337_v29 }
 0x389   :  { %2343 = vxpose.xlu0.b32.start.end [1/1] (short) (narrow) %v2342_v30, 8 }
 0x42d   :  { %v2359_v31 = vpop.trf.xlu0 }
 0x42e   :  { %2376 = vst.msk [vmem:[#allocation9] sm:$0x1] %vm2375_vm1, %v2359_v31 }
 0x42f   :  { %2387 = dma.vmem_to_hbm [thread:$0]  %s2383_s9, 16, %s2385_s8, [#allocation5]  }
 0x430   :  { %3909 = dma.done.wait [#allocation5], 16  }
 0x431   :  { %3910 = vsyncadd [#allocation5], 4294967280 }
 0x432   :  { %2392 = vsyncpa [#allocation4], 1 }
 0x433   :  { %2393 = vsyncpa [#allocation7], 1 }
 0x434   :  { %2394 = vsyncpa [#allocation5], 1 }

</bundles_post_ra>
